<compile_context>
chip_gen: v6e
topology: v6e:2x2x1
jax: 0.10.0
libtpu: 0.0.40
codegen_flags: <defaults>
</compile_context>

<pallas_src>
import functools

import jax
import jax.numpy as jnp
import numpy as np
from jax.experimental import pallas as pl
from jax.experimental.pallas import tpu as pltpu

# ---------------- config (matches the PyTorch Config) ----------------
SEQ_LEN = 12
PRED_LEN = 1
E_LAYERS = 2
ENC_IN = 10
D_MODEL = 32
BN_EPS = 1e-5

LC = SEQ_LEN * ENC_IN          # 120  flattened (l, c) residual-stream rows
MC = D_MODEL * ENC_IN          # 320  temporal-mix hidden rows
LM = SEQ_LEN * D_MODEL         # 384  channel-mix hidden rows
PC = PRED_LEN * ENC_IN         # 10   output rows


# ---------------- Pallas kernel ----------------
def conv_ts_mixer_kernel(
    x_ref,                    # [LC, TB]   flattened input, batch on lanes
    a0_ref, c0_ref,           # [LC, LC], [LC, 1]   depthwise conv + 1x1 mix + BN(eval), folded
    w1_ref, b1_ref,           # [E, MC, LC], [E, MC, 1]   temporal mix  (W1 (x) I_C)
    w2_ref, b2_ref,           # [E, LC, MC], [E, LC, 1]   temporal mix  (W2 (x) I_C)
    w3_ref, b3_ref,           # [E, LM, LC], [E, LM, 1]   channel  mix  (I_L (x) W3)
    w4_ref, b4_ref,           # [E, LC, LM], [E, LC, 1]   channel  mix  (I_L (x) W4)
    wp_ref, bp_ref,           # [PC, LC], [PC, 1]         projection    (Wp (x) I_C)
    out_ref,                  # [PC, TB]
):
    f32 = jnp.float32
    x = x_ref[...].astype(f32)

    # Stage 1: ChannelMixingConv1D (k=3 depthwise conv + 1x1 mix + BN eval) + ReLU,
    # folded into one [LC, LC] matrix applied to the lane-dense batch columns.
    y = jnp.maximum(
        jnp.dot(a0_ref[...], x, preferred_element_type=f32) + c0_ref[...], 0.0)

    # ResBlocks (Dropout = identity in eval mode).  Static Python unroll over layers
    # keeps the whole chain visible to the LLO scheduler.
    for i in range(E_LAYERS):
        # temporal mixing (Linear over seq_len)
        h1 = jnp.maximum(
            jnp.dot(w1_ref[i], y, preferred_element_type=f32) + b1_ref[i], 0.0)
        y = y + jnp.dot(w2_ref[i], h1, preferred_element_type=f32) + b2_ref[i]
        # channel mixing (Linear over enc_in)
        h2 = jnp.maximum(
            jnp.dot(w3_ref[i], y, preferred_element_type=f32) + b3_ref[i], 0.0)
        y = y + jnp.dot(w4_ref[i], h2, preferred_element_type=f32) + b4_ref[i]

    # projection: seq_len -> pred_len
    out = jnp.dot(wp_ref[...], y, preferred_element_type=f32) + bp_ref[...]
    out_ref[...] = out.astype(out_ref.dtype)


# ---------------- wrapper ----------------
def _pick_block_b(batch):
    # Amortize per-grid-step overhead over many samples, but keep >=2 grid steps when the
    # batch allows it so v7x's two TensorCores both get a share of the parallel axis.
    tb = pl.cdiv(pl.cdiv(batch, 2), 128) * 128
    return int(max(128, min(1024, tb)))


def conv_ts_mixer_forward(x_enc, eparams, x_mark_enc=None, x_dec=None,
                          x_mark_dec=None, block_b=None):
    """x_enc: [B, seq_len, enc_in] -> [B, pred_len, enc_in]."""
    del x_mark_enc, x_dec, x_mark_dec                  # unused (as in the PyTorch forward)
    B, L, C = x_enc.shape
    assert L == SEQ_LEN and C == ENC_IN

    if block_b is None:
        block_b = _pick_block_b(B)
    n_blocks = int(pl.cdiv(B, block_b))
    Bp = n_blocks * block_b

    # one wrapper-side transpose: [B, L, C] -> [L*C, B]  (batch on the lane axis)
    x_flat = x_enc.reshape(B, LC).T
    if Bp != B:
        x_flat = jnp.pad(x_flat, ((0, 0), (0, Bp - B)))

    weights = (eparams["a0"], eparams["c0"],
               eparams["w1"], eparams["b1"], eparams["w2"], eparams["b2"],
               eparams["w3"], eparams["b3"], eparams["w4"], eparams["b4"],
               eparams["wp"], eparams["bp"])

    def resident(a):            # constant block index -> DMA'd once, stays resident in VMEM
        return pl.BlockSpec(a.shape, lambda i: (0,) * a.ndim)

    out_flat = pl.pallas_call(
        conv_ts_mixer_kernel,
        out_shape=jax.ShapeDtypeStruct((PC, Bp), jnp.float32),
        grid=(n_blocks,),
        in_specs=[pl.BlockSpec((LC, block_b), lambda i: (0, i))]
                 + [resident(a) for a in weights],
        out_specs=pl.BlockSpec((PC, block_b), lambda i: (0, i)),
        compiler_params=pltpu.CompilerParams(
            dimension_semantics=("parallel",),
            vmem_limit_bytes=32 * 1024 * 1024),
    )(x_flat, *weights)

    return out_flat[:, :B].T.reshape(B, PRED_LEN, C)


# ---------------- raw (PyTorch-style) parameters ----------------
def init_raw_params(key):
    ks = jax.random.split(key, 16)
    f32 = jnp.float32

    def w(k, shape, scale=0.1):
        return (scale * jax.random.normal(k, shape)).astype(f32)

    rp = {}
    rp["dww"] = w(ks[0], (3, ENC_IN))                      # per-channel Conv1d(1,1,3) taps
    rp["dwb"] = w(ks[1], (ENC_IN,), 0.01)
    rp["wmix"] = w(ks[2], (ENC_IN, ENC_IN))                # mix_conv.weight[o, c]
    rp["bmix"] = w(ks[3], (ENC_IN,), 0.01)
    rp["bn_gamma"] = jnp.ones((ENC_IN,), f32)              # BatchNorm1d default init, eval mode
    rp["bn_beta"] = jnp.zeros((ENC_IN,), f32)
    rp["bn_mean"] = jnp.zeros((ENC_IN,), f32)
    rp["bn_var"] = jnp.ones((ENC_IN,), f32)
    rp["w1"] = w(ks[4], (E_LAYERS, D_MODEL, SEQ_LEN))      # Linear(seq_len, d_model).weight
    rp["b1"] = w(ks[5], (E_LAYERS, D_MODEL), 0.01)
    rp["w2"] = w(ks[6], (E_LAYERS, SEQ_LEN, D_MODEL))      # Linear(d_model, seq_len).weight
    rp["b2"] = w(ks[7], (E_LAYERS, SEQ_LEN), 0.01)
    rp["w3"] = w(ks[8], (E_LAYERS, D_MODEL, ENC_IN))       # Linear(enc_in, d_model).weight
    rp["b3"] = w(ks[9], (E_LAYERS, D_MODEL), 0.01)
    rp["w4"] = w(ks[10], (E_LAYERS, ENC_IN, D_MODEL))      # Linear(d_model, enc_in).weight
    rp["b4"] = w(ks[11], (E_LAYERS, ENC_IN), 0.01)
    rp["wp"] = w(ks[12], (PRED_LEN, SEQ_LEN))              # Linear(seq_len, pred_len).weight
    rp["bp"] = w(ks[13], (PRED_LEN,), 0.01)
    return rp


# ---------------- one-time expansion to the kernel's flattened layout ----------------
def expand_params(rp):
    f32 = jnp.float32
    eye_c = jnp.eye(ENC_IN, dtype=f32)
    eye_l = jnp.eye(SEQ_LEN, dtype=f32)

    # BN eval folded into scale/shift
    scale = rp["bn_gamma"] / jnp.sqrt(rp["bn_var"] + BN_EPS)           # [C]
    shift = rp["bn_beta"] - rp["bn_mean"] * scale                      # [C]

    # Stage 1: depthwise k=3 conv along L + 1x1 mix over C + BN, as one [LC, LC] matrix.
    ll = jnp.arange(SEQ_LEN)
    # S[k, l, lp] = 1 iff lp == l + (k - 1)  (zero padding == dropping out-of-range lp)
    S = jnp.stack([(ll[None, :] == (ll[:, None] + (k - 1))).astype(f32)
                   for k in range(3)], axis=0)                          # [3, L, L]
    T = jnp.einsum("kc,klp->lpc", rp["dww"], S)                         # [L, L, C]
    wmix_s = scale[:, None] * rp["wmix"]                                # [O, C]
    a0 = jnp.einsum("oc,lpc->lopc", wmix_s, T).reshape(LC, LC)          # row l*C+o, col lp*C+c
    c0 = scale * (rp["wmix"] @ rp["dwb"] + rp["bmix"]) + shift          # [C]
    c0 = jnp.tile(c0, SEQ_LEN).reshape(LC, 1)

    ex = {"a0": a0, "c0": c0}
    w1e, b1e, w2e, b2e, w3e, b3e, w4e, b4e = ([] for _ in range(8))
    for i in range(E_LAYERS):
        w1e.append(jnp.kron(rp["w1"][i], eye_c))                        # [MC, LC]
        b1e.append(jnp.repeat(rp["b1"][i], ENC_IN)[:, None])            # [MC, 1]
        w2e.append(jnp.kron(rp["w2"][i], eye_c))                        # [LC, MC]
        b2e.append(jnp.repeat(rp["b2"][i], ENC_IN)[:, None])            # [LC, 1]
        w3e.append(jnp.kron(eye_l, rp["w3"][i]))                        # [LM, LC]
        b3e.append(jnp.tile(rp["b3"][i], SEQ_LEN)[:, None])             # [LM, 1]
        w4e.append(jnp.kron(eye_l, rp["w4"][i]))                        # [LC, LM]
        b4e.append(jnp.tile(rp["b4"][i], SEQ_LEN)[:, None])             # [LC, 1]
    ex["w1"], ex["b1"] = jnp.stack(w1e), jnp.stack(b1e)
    ex["w2"], ex["b2"] = jnp.stack(w2e), jnp.stack(b2e)
    ex["w3"], ex["b3"] = jnp.stack(w3e), jnp.stack(b3e)
    ex["w4"], ex["b4"] = jnp.stack(w4e), jnp.stack(b4e)
    ex["wp"] = jnp.kron(rp["wp"], eye_c)                                # [PC, LC]
    ex["bp"] = jnp.repeat(rp["bp"], ENC_IN)[:, None]                    # [PC, 1]
    return ex


# ---------------- pure-JAX reference (straightforward [B, L, C] math) ----------------
def reference_forward(x, rp):
    B, L, C = x.shape
    xp = jnp.pad(x, ((0, 0), (1, 0), (0, 0)))[:, :L, :]
    xn = jnp.pad(x, ((0, 0), (0, 1), (0, 0)))[:, 1:, :]
    dww = rp["dww"]
    h = xp * dww[0] + x * dww[1] + xn * dww[2] + rp["dwb"]
    z = jnp.einsum("blc,oc->blo", h, rp["wmix"]) + rp["bmix"]
    scale = rp["bn_gamma"] / jnp.sqrt(rp["bn_var"] + BN_EPS)
    shift = rp["bn_beta"] - rp["bn_mean"] * scale
    y = jnp.maximum(z * scale + shift, 0.0)
    for i in range(E_LAYERS):
        h1 = jnp.maximum(jnp.einsum("ml,blc->bmc", rp["w1"][i], y)
                         + rp["b1"][i][None, :, None], 0.0)
        y = y + jnp.einsum("lm,bmc->blc", rp["w2"][i], h1) + rp["b2"][i][None, :, None]
        h2 = jnp.maximum(jnp.einsum("blc,mc->blm", y, rp["w3"][i])
                         + rp["b3"][i][None, None, :], 0.0)
        y = y + jnp.einsum("blm,cm->blc", h2, rp["w4"][i]) + rp["b4"][i][None, None, :]
    out = jnp.einsum("pl,blc->bpc", rp["wp"], y) + rp["bp"][None, :, None]
    return out[:, -PRED_LEN:, :]


if __name__ == "__main__":
    key = jax.random.PRNGKey(0)
    k_x, k_p = jax.random.split(key)

    B = 256   # 2 grid steps of 128 samples each (exercises batch tiling + v7x parallel axis)
    x_enc = jax.random.normal(k_x, (B, SEQ_LEN, ENC_IN), dtype=jnp.float32)
    x_mark_enc = jnp.zeros((B, SEQ_LEN, 4), dtype=jnp.float32)   # unused (as in PyTorch forward)
    x_dec = jnp.zeros((B, PRED_LEN, ENC_IN), dtype=jnp.float32)  # unused
    x_mark_dec = jnp.zeros((B, PRED_LEN, 4), dtype=jnp.float32)  # unused

    raw_params = init_raw_params(k_p)
    eparams = expand_params(raw_params)

    fwd = jax.jit(functools.partial(conv_ts_mixer_forward, eparams=eparams))
    out = fwd(x_enc, x_mark_enc=x_mark_enc, x_dec=x_dec, x_mark_dec=x_mark_dec)
    out = jax.block_until_ready(out)

    ref = jax.block_until_ready(reference_forward(x_enc, raw_params))
    assert out.shape == (B, PRED_LEN, ENC_IN), out.shape
    np.testing.assert_allclose(np.asarray(out), np.asarray(ref), rtol=1e-2, atol=2e-3)

    print("KERNEL_OK")
</pallas_src>

<mosaic_0001>
module attributes {stable_mosaic.version = 11 : i64} {
  func.func @conv_ts_mixer_kernel(%arg0: i32, %arg1: memref<120x128xf32, #tpu.memory_space<vmem>>, %arg2: memref<120x120xf32, #tpu.memory_space<vmem>>, %arg3: memref<120x1xf32, #tpu.memory_space<vmem>>, %arg4: memref<2x320x120xf32, #tpu.memory_space<vmem>>, %arg5: memref<2x320x1xf32, #tpu.memory_space<vmem>>, %arg6: memref<2x120x320xf32, #tpu.memory_space<vmem>>, %arg7: memref<2x120x1xf32, #tpu.memory_space<vmem>>, %arg8: memref<2x384x120xf32, #tpu.memory_space<vmem>>, %arg9: memref<2x384x1xf32, #tpu.memory_space<vmem>>, %arg10: memref<2x120x384xf32, #tpu.memory_space<vmem>>, %arg11: memref<2x120x1xf32, #tpu.memory_space<vmem>>, %arg12: memref<10x120xf32, #tpu.memory_space<vmem>>, %arg13: memref<10x1xf32, #tpu.memory_space<vmem>>, %arg14: memref<10x128xf32, #tpu.memory_space<vmem>>) attributes {dimension_semantics = [#tpu.dimension_semantics<parallel>], iteration_bounds = array<i64: 2>, scalar_prefetch = 0 : i64, scratch_operands = 0 : i64, tpu.core_type = #tpu.core_type<tc>, window_params = [{transform_indices = @transform_0, window_bounds = array<i64: 120, 128>}, {pipeline_mode = #tpu.pipeline_mode<synchronous>, transform_indices = @transform_1, window_bounds = array<i64: 120, 120>}, {pipeline_mode = #tpu.pipeline_mode<synchronous>, transform_indices = @transform_2, window_bounds = array<i64: 120, 1>}, {pipeline_mode = #tpu.pipeline_mode<synchronous>, transform_indices = @transform_3, window_bounds = array<i64: 2, 320, 120>}, {pipeline_mode = #tpu.pipeline_mode<synchronous>, transform_indices = @transform_4, window_bounds = array<i64: 2, 320, 1>}, {pipeline_mode = #tpu.pipeline_mode<synchronous>, transform_indices = @transform_5, window_bounds = array<i64: 2, 120, 320>}, {pipeline_mode = #tpu.pipeline_mode<synchronous>, transform_indices = @transform_6, window_bounds = array<i64: 2, 120, 1>}, {pipeline_mode = #tpu.pipeline_mode<synchronous>, transform_indices = @transform_7, window_bounds = array<i64: 2, 384, 120>}, {pipeline_mode = #tpu.pipeline_mode<synchronous>, transform_indices = @transform_8, window_bounds = array<i64: 2, 384, 1>}, {pipeline_mode = #tpu.pipeline_mode<synchronous>, transform_indices = @transform_9, window_bounds = array<i64: 2, 120, 384>}, {pipeline_mode = #tpu.pipeline_mode<synchronous>, transform_indices = @transform_10, window_bounds = array<i64: 2, 120, 1>}, {pipeline_mode = #tpu.pipeline_mode<synchronous>, transform_indices = @transform_11, window_bounds = array<i64: 10, 120>}, {pipeline_mode = #tpu.pipeline_mode<synchronous>, transform_indices = @transform_12, window_bounds = array<i64: 10, 1>}, {transform_indices = @transform_13, window_bounds = array<i64: 10, 128>}]} {
    %c0 = arith.constant 0 : index
    %c0_0 = arith.constant 0 : index
    %0 = vector.load %arg1[%c0, %c0_0] : memref<120x128xf32, #tpu.memory_space<vmem>>, vector<120x128xf32>
    %c0_1 = arith.constant 0 : index
    %c0_2 = arith.constant 0 : index
    %1 = vector.load %arg2[%c0_1, %c0_2] : memref<120x120xf32, #tpu.memory_space<vmem>>, vector<120x120xf32>
    %cst = arith.constant dense<0.000000e+00> : vector<120x128xf32>
    %2 = tpu.matmul %1, %0, %cst {dimension_numbers = #tpu.dot_dimension_numbers<[1], [0], [0], [1], [0, 0, 1, 1], [], []>} : vector<120x120xf32>, vector<120x128xf32>, vector<120x128xf32> -> vector<120x128xf32>
    %c0_3 = arith.constant 0 : index
    %c0_4 = arith.constant 0 : index
    %3 = vector.load %arg3[%c0_3, %c0_4] : memref<120x1xf32, #tpu.memory_space<vmem>>, vector<120x1xf32>
    %4 = vector.broadcast %3 : vector<120x1xf32> to vector<120x128xf32>
    %5 = arith.addf %2, %4 : vector<120x128xf32>
    %cst_5 = arith.constant 0.000000e+00 : f32
    %6 = vector.broadcast %cst_5 : f32 to vector<120x128xf32>
    %7 = arith.maximumf %5, %6 : vector<120x128xf32>
    %c0_6 = arith.constant 0 : index
    %c0_7 = arith.constant 0 : index
    %c0_8 = arith.constant 0 : index
    %8 = vector.load %arg4[%c0_6, %c0_7, %c0_8] : memref<2x320x120xf32, #tpu.memory_space<vmem>>, vector<1x320x120xf32>
    %9 = vector.shape_cast %8 : vector<1x320x120xf32> to vector<320x120xf32>
    %cst_9 = arith.constant dense<0.000000e+00> : vector<320x128xf32>
    %10 = tpu.matmul %9, %7, %cst_9 {dimension_numbers = #tpu.dot_dimension_numbers<[1], [0], [0], [1], [0, 0, 1, 1], [], []>} : vector<320x120xf32>, vector<120x128xf32>, vector<320x128xf32> -> vector<320x128xf32>
    %c0_10 = arith.constant 0 : index
    %c0_11 = arith.constant 0 : index
    %c0_12 = arith.constant 0 : index
    %11 = vector.load %arg5[%c0_10, %c0_11, %c0_12] : memref<2x320x1xf32, #tpu.memory_space<vmem>>, vector<1x320x1xf32>
    %12 = vector.shape_cast %11 : vector<1x320x1xf32> to vector<320x1xf32>
    %13 = vector.broadcast %12 : vector<320x1xf32> to vector<320x128xf32>
    %14 = arith.addf %10, %13 : vector<320x128xf32>
    %cst_13 = arith.constant 0.000000e+00 : f32
    %15 = vector.broadcast %cst_13 : f32 to vector<320x128xf32>
    %16 = arith.maximumf %14, %15 : vector<320x128xf32>
    %c0_14 = arith.constant 0 : index
    %c0_15 = arith.constant 0 : index
    %c0_16 = arith.constant 0 : index
    %17 = vector.load %arg6[%c0_14, %c0_15, %c0_16] : memref<2x120x320xf32, #tpu.memory_space<vmem>>, vector<1x120x320xf32>
    %18 = vector.shape_cast %17 : vector<1x120x320xf32> to vector<120x320xf32>
    %cst_17 = arith.constant dense<0.000000e+00> : vector<120x128xf32>
    %19 = tpu.matmul %18, %16, %cst_17 {dimension_numbers = #tpu.dot_dimension_numbers<[1], [0], [0], [1], [0, 0, 1, 1], [], []>} : vector<120x320xf32>, vector<320x128xf32>, vector<120x128xf32> -> vector<120x128xf32>
    %20 = arith.addf %7, %19 : vector<120x128xf32>
    %c0_18 = arith.constant 0 : index
    %c0_19 = arith.constant 0 : index
    %c0_20 = arith.constant 0 : index
    %21 = vector.load %arg7[%c0_18, %c0_19, %c0_20] : memref<2x120x1xf32, #tpu.memory_space<vmem>>, vector<1x120x1xf32>
    %22 = vector.shape_cast %21 : vector<1x120x1xf32> to vector<120x1xf32>
    %23 = vector.broadcast %22 : vector<120x1xf32> to vector<120x128xf32>
    %24 = arith.addf %20, %23 : vector<120x128xf32>
    %c0_21 = arith.constant 0 : index
    %c0_22 = arith.constant 0 : index
    %c0_23 = arith.constant 0 : index
    %25 = vector.load %arg8[%c0_21, %c0_22, %c0_23] : memref<2x384x120xf32, #tpu.memory_space<vmem>>, vector<1x384x120xf32>
    %26 = vector.shape_cast %25 : vector<1x384x120xf32> to vector<384x120xf32>
    %cst_24 = arith.constant dense<0.000000e+00> : vector<384x128xf32>
    %27 = tpu.matmul %26, %24, %cst_24 {dimension_numbers = #tpu.dot_dimension_numbers<[1], [0], [0], [1], [0, 0, 1, 1], [], []>} : vector<384x120xf32>, vector<120x128xf32>, vector<384x128xf32> -> vector<384x128xf32>
    %c0_25 = arith.constant 0 : index
    %c0_26 = arith.constant 0 : index
    %c0_27 = arith.constant 0 : index
    %28 = vector.load %arg9[%c0_25, %c0_26, %c0_27] : memref<2x384x1xf32, #tpu.memory_space<vmem>>, vector<1x384x1xf32>
    %29 = vector.shape_cast %28 : vector<1x384x1xf32> to vector<384x1xf32>
    %30 = vector.broadcast %29 : vector<384x1xf32> to vector<384x128xf32>
    %31 = arith.addf %27, %30 : vector<384x128xf32>
    %cst_28 = arith.constant 0.000000e+00 : f32
    %32 = vector.broadcast %cst_28 : f32 to vector<384x128xf32>
    %33 = arith.maximumf %31, %32 : vector<384x128xf32>
    %c0_29 = arith.constant 0 : index
    %c0_30 = arith.constant 0 : index
    %c0_31 = arith.constant 0 : index
    %34 = vector.load %arg10[%c0_29, %c0_30, %c0_31] : memref<2x120x384xf32, #tpu.memory_space<vmem>>, vector<1x120x384xf32>
    %35 = vector.shape_cast %34 : vector<1x120x384xf32> to vector<120x384xf32>
    %cst_32 = arith.constant dense<0.000000e+00> : vector<120x128xf32>
    %36 = tpu.matmul %35, %33, %cst_32 {dimension_numbers = #tpu.dot_dimension_numbers<[1], [0], [0], [1], [0, 0, 1, 1], [], []>} : vector<120x384xf32>, vector<384x128xf32>, vector<120x128xf32> -> vector<120x128xf32>
    %37 = arith.addf %24, %36 : vector<120x128xf32>
    %c0_33 = arith.constant 0 : index
    %c0_34 = arith.constant 0 : index
    %c0_35 = arith.constant 0 : index
    %38 = vector.load %arg11[%c0_33, %c0_34, %c0_35] : memref<2x120x1xf32, #tpu.memory_space<vmem>>, vector<1x120x1xf32>
    %39 = vector.shape_cast %38 : vector<1x120x1xf32> to vector<120x1xf32>
    %40 = vector.broadcast %39 : vector<120x1xf32> to vector<120x128xf32>
    %41 = arith.addf %37, %40 : vector<120x128xf32>
    %c1 = arith.constant 1 : index
    %c0_36 = arith.constant 0 : index
    %c0_37 = arith.constant 0 : index
    %42 = vector.load %arg4[%c1, %c0_36, %c0_37] : memref<2x320x120xf32, #tpu.memory_space<vmem>>, vector<1x320x120xf32>
    %43 = vector.shape_cast %42 : vector<1x320x120xf32> to vector<320x120xf32>
    %cst_38 = arith.constant dense<0.000000e+00> : vector<320x128xf32>
    %44 = tpu.matmul %43, %41, %cst_38 {dimension_numbers = #tpu.dot_dimension_numbers<[1], [0], [0], [1], [0, 0, 1, 1], [], []>} : vector<320x120xf32>, vector<120x128xf32>, vector<320x128xf32> -> vector<320x128xf32>
    %c1_39 = arith.constant 1 : index
    %c0_40 = arith.constant 0 : index
    %c0_41 = arith.constant 0 : index
    %45 = vector.load %arg5[%c1_39, %c0_40, %c0_41] : memref<2x320x1xf32, #tpu.memory_space<vmem>>, vector<1x320x1xf32>
    %46 = vector.shape_cast %45 : vector<1x320x1xf32> to vector<320x1xf32>
    %47 = vector.broadcast %46 : vector<320x1xf32> to vector<320x128xf32>
    %48 = arith.addf %44, %47 : vector<320x128xf32>
    %cst_42 = arith.constant 0.000000e+00 : f32
    %49 = vector.broadcast %cst_42 : f32 to vector<320x128xf32>
    %50 = arith.maximumf %48, %49 : vector<320x128xf32>
    %c1_43 = arith.constant 1 : index
    %c0_44 = arith.constant 0 : index
    %c0_45 = arith.constant 0 : index
    %51 = vector.load %arg6[%c1_43, %c0_44, %c0_45] : memref<2x120x320xf32, #tpu.memory_space<vmem>>, vector<1x120x320xf32>
    %52 = vector.shape_cast %51 : vector<1x120x320xf32> to vector<120x320xf32>
    %cst_46 = arith.constant dense<0.000000e+00> : vector<120x128xf32>
    %53 = tpu.matmul %52, %50, %cst_46 {dimension_numbers = #tpu.dot_dimension_numbers<[1], [0], [0], [1], [0, 0, 1, 1], [], []>} : vector<120x320xf32>, vector<320x128xf32>, vector<120x128xf32> -> vector<120x128xf32>
    %54 = arith.addf %41, %53 : vector<120x128xf32>
    %c1_47 = arith.constant 1 : index
    %c0_48 = arith.constant 0 : index
    %c0_49 = arith.constant 0 : index
    %55 = vector.load %arg7[%c1_47, %c0_48, %c0_49] : memref<2x120x1xf32, #tpu.memory_space<vmem>>, vector<1x120x1xf32>
    %56 = vector.shape_cast %55 : vector<1x120x1xf32> to vector<120x1xf32>
    %57 = vector.broadcast %56 : vector<120x1xf32> to vector<120x128xf32>
    %58 = arith.addf %54, %57 : vector<120x128xf32>
    %c1_50 = arith.constant 1 : index
    %c0_51 = arith.constant 0 : index
    %c0_52 = arith.constant 0 : index
    %59 = vector.load %arg8[%c1_50, %c0_51, %c0_52] : memref<2x384x120xf32, #tpu.memory_space<vmem>>, vector<1x384x120xf32>
    %60 = vector.shape_cast %59 : vector<1x384x120xf32> to vector<384x120xf32>
    %cst_53 = arith.constant dense<0.000000e+00> : vector<384x128xf32>
    %61 = tpu.matmul %60, %58, %cst_53 {dimension_numbers = #tpu.dot_dimension_numbers<[1], [0], [0], [1], [0, 0, 1, 1], [], []>} : vector<384x120xf32>, vector<120x128xf32>, vector<384x128xf32> -> vector<384x128xf32>
    %c1_54 = arith.constant 1 : index
    %c0_55 = arith.constant 0 : index
    %c0_56 = arith.constant 0 : index
    %62 = vector.load %arg9[%c1_54, %c0_55, %c0_56] : memref<2x384x1xf32, #tpu.memory_space<vmem>>, vector<1x384x1xf32>
    %63 = vector.shape_cast %62 : vector<1x384x1xf32> to vector<384x1xf32>
    %64 = vector.broadcast %63 : vector<384x1xf32> to vector<384x128xf32>
    %65 = arith.addf %61, %64 : vector<384x128xf32>
    %cst_57 = arith.constant 0.000000e+00 : f32
    %66 = vector.broadcast %cst_57 : f32 to vector<384x128xf32>
    %67 = arith.maximumf %65, %66 : vector<384x128xf32>
    %c1_58 = arith.constant 1 : index
    %c0_59 = arith.constant 0 : index
    %c0_60 = arith.constant 0 : index
    %68 = vector.load %arg10[%c1_58, %c0_59, %c0_60] : memref<2x120x384xf32, #tpu.memory_space<vmem>>, vector<1x120x384xf32>
    %69 = vector.shape_cast %68 : vector<1x120x384xf32> to vector<120x384xf32>
    %cst_61 = arith.constant dense<0.000000e+00> : vector<120x128xf32>
    %70 = tpu.matmul %69, %67, %cst_61 {dimension_numbers = #tpu.dot_dimension_numbers<[1], [0], [0], [1], [0, 0, 1, 1], [], []>} : vector<120x384xf32>, vector<384x128xf32>, vector<120x128xf32> -> vector<120x128xf32>
    %71 = arith.addf %58, %70 : vector<120x128xf32>
    %c1_62 = arith.constant 1 : index
    %c0_63 = arith.constant 0 : index
    %c0_64 = arith.constant 0 : index
    %72 = vector.load %arg11[%c1_62, %c0_63, %c0_64] : memref<2x120x1xf32, #tpu.memory_space<vmem>>, vector<1x120x1xf32>
    %73 = vector.shape_cast %72 : vector<1x120x1xf32> to vector<120x1xf32>
    %74 = vector.broadcast %73 : vector<120x1xf32> to vector<120x128xf32>
    %75 = arith.addf %71, %74 : vector<120x128xf32>
    %c0_65 = arith.constant 0 : index
    %c0_66 = arith.constant 0 : index
    %76 = vector.load %arg12[%c0_65, %c0_66] : memref<10x120xf32, #tpu.memory_space<vmem>>, vector<10x120xf32>
    %cst_67 = arith.constant dense<0.000000e+00> : vector<10x128xf32>
    %77 = tpu.matmul %76, %75, %cst_67 {dimension_numbers = #tpu.dot_dimension_numbers<[1], [0], [0], [1], [0, 0, 1, 1], [], []>} : vector<10x120xf32>, vector<120x128xf32>, vector<10x128xf32> -> vector<10x128xf32>
    %c0_68 = arith.constant 0 : index
    %c0_69 = arith.constant 0 : index
    %78 = vector.load %arg13[%c0_68, %c0_69] : memref<10x1xf32, #tpu.memory_space<vmem>>, vector<10x1xf32>
    %79 = vector.broadcast %78 : vector<10x1xf32> to vector<10x128xf32>
    %80 = arith.addf %77, %79 : vector<10x128xf32>
    %c0_70 = arith.constant 0 : index
    %c0_71 = arith.constant 0 : index
    %81 = vector.load %arg14[%c0_70, %c0_71] : memref<10x128xf32, #tpu.memory_space<vmem>>, vector<10x128xf32>
    tpu.vector_store %arg14[%c0_70, %c0_71], %80 {strides = array<i32>} : memref<10x128xf32, #tpu.memory_space<vmem>>, vector<10x128xf32>,
    return
  }
  func.func @transform_0(%arg0: i32) -> (i32, i32) {
    %c0_i32 = arith.constant 0 : i32
    %c0_i32_0 = arith.constant 0 : i32
    return %c0_i32, %arg0 : i32, i32
  }
  func.func @transform_1(%arg0: i32) -> (i32, i32) {
    %c0_i32 = arith.constant 0 : i32
    %c0_i32_0 = arith.constant 0 : i32
    %c0_i32_1 = arith.constant 0 : i32
    return %c0_i32, %c0_i32_0 : i32, i32
  }
  func.func @transform_2(%arg0: i32) -> (i32, i32) {
    %c0_i32 = arith.constant 0 : i32
    %c0_i32_0 = arith.constant 0 : i32
    %c0_i32_1 = arith.constant 0 : i32
    return %c0_i32, %c0_i32_0 : i32, i32
  }
  func.func @transform_3(%arg0: i32) -> (i32, i32, i32) {
    %c0_i32 = arith.constant 0 : i32
    %c0_i32_0 = arith.constant 0 : i32
    %c0_i32_1 = arith.constant 0 : i32
    %c0_i32_2 = arith.constant 0 : i32
    return %c0_i32, %c0_i32_0, %c0_i32_1 : i32, i32, i32
  }
  func.func @transform_4(%arg0: i32) -> (i32, i32, i32) {
    %c0_i32 = arith.constant 0 : i32
    %c0_i32_0 = arith.constant 0 : i32
    %c0_i32_1 = arith.constant 0 : i32
    %c0_i32_2 = arith.constant 0 : i32
    return %c0_i32, %c0_i32_0, %c0_i32_1 : i32, i32, i32
  }
  func.func @transform_5(%arg0: i32) -> (i32, i32, i32) {
    %c0_i32 = arith.constant 0 : i32
    %c0_i32_0 = arith.constant 0 : i32
    %c0_i32_1 = arith.constant 0 : i32
    %c0_i32_2 = arith.constant 0 : i32
    return %c0_i32, %c0_i32_0, %c0_i32_1 : i32, i32, i32
  }
  func.func @transform_6(%arg0: i32) -> (i32, i32, i32) {
    %c0_i32 = arith.constant 0 : i32
    %c0_i32_0 = arith.constant 0 : i32
    %c0_i32_1 = arith.constant 0 : i32
    %c0_i32_2 = arith.constant 0 : i32
    return %c0_i32, %c0_i32_0, %c0_i32_1 : i32, i32, i32
  }
  func.func @transform_7(%arg0: i32) -> (i32, i32, i32) {
    %c0_i32 = arith.constant 0 : i32
    %c0_i32_0 = arith.constant 0 : i32
    %c0_i32_1 = arith.constant 0 : i32
    %c0_i32_2 = arith.constant 0 : i32
    return %c0_i32, %c0_i32_0, %c0_i32_1 : i32, i32, i32
  }
  func.func @transform_8(%arg0: i32) -> (i32, i32, i32) {
    %c0_i32 = arith.constant 0 : i32
    %c0_i32_0 = arith.constant 0 : i32
    %c0_i32_1 = arith.constant 0 : i32
    %c0_i32_2 = arith.constant 0 : i32
    return %c0_i32, %c0_i32_0, %c0_i32_1 : i32, i32, i32
  }
  func.func @transform_9(%arg0: i32) -> (i32, i32, i32) {
    %c0_i32 = arith.constant 0 : i32
    %c0_i32_0 = arith.constant 0 : i32
    %c0_i32_1 = arith.constant 0 : i32
    %c0_i32_2 = arith.constant 0 : i32
    return %c0_i32, %c0_i32_0, %c0_i32_1 : i32, i32, i32
  }
  func.func @transform_10(%arg0: i32) -> (i32, i32, i32) {
    %c0_i32 = arith.constant 0 : i32
    %c0_i32_0 = arith.constant 0 : i32
    %c0_i32_1 = arith.constant 0 : i32
    %c0_i32_2 = arith.constant 0 : i32
    return %c0_i32, %c0_i32_0, %c0_i32_1 : i32, i32, i32
  }
  func.func @transform_11(%arg0: i32) -> (i32, i32) {
    %c0_i32 = arith.constant 0 : i32
    %c0_i32_0 = arith.constant 0 : i32
    %c0_i32_1 = arith.constant 0 : i32
    return %c0_i32, %c0_i32_0 : i32, i32
  }
  func.func @transform_12(%arg0: i32) -> (i32, i32) {
    %c0_i32 = arith.constant 0 : i32
    %c0_i32_0 = arith.constant 0 : i32
    %c0_i32_1 = arith.constant 0 : i32
    return %c0_i32, %c0_i32_0 : i32, i32
  }
  func.func @transform_13(%arg0: i32) -> (i32, i32) {
    %c0_i32 = arith.constant 0 : i32
    %c0_i32_0 = arith.constant 0 : i32
    return %c0_i32, %arg0 : i32, i32
  }
}

</mosaic_0001>

<bundles_post_ra>
// kernel: conv_ts_mixer_forward.1
= control target key start
LH: loop header
LB: loop body
LE: loop exit
PB: predicated region body
PF: predicated region fallthrough
CT: control target
= control target key end

     0   :  { %s10893_s0 = inlined_call_operand.vmem [shape: f32[120,256], index: 0, kind: input, shape index: {}]   ;;  %s10894_s1 = inlined_call_operand.hbm [shape: f32[120,120], index: 1, kind: input, shape index: {}]   ;;  %s10895_s2 = inlined_call_operand.hbm [shape: f32[120,1], index: 2, kind: input, shape index: {}]   ;;  %s10896_s3 = inlined_call_operand.hbm [shape: f32[2,320,120], index: 3, kind: input, shape index: {}]   ;;  %s10897_s4 = inlined_call_operand.hbm [shape: f32[2,320,1], index: 4, kind: input, shape index: {}]   ;;  %s10898_s5 = inlined_call_operand.hbm [shape: f32[2,120,320], index: 5, kind: input, shape index: {}]   ;;  %s10899_s6 = inlined_call_operand.vmem [shape: f32[2,120,1], index: 6, kind: input, shape index: {}]   ;;  %s10900_s7 = inlined_call_operand.vmem [shape: f32[2,384,120], index: 7, kind: input, shape index: {}]   ;;  %s10901_s8 = inlined_call_operand.hbm [shape: f32[2,384,1], index: 8, kind: input, shape index: {}]   ;;  %s10902_s9 = inlined_call_operand.hbm [shape: f32[2,120,384], index: 9, kind: input, shape index: {}]   ;;  %s10903_s10 = inlined_call_operand.vmem [shape: f32[2,120,1], index: 10, kind: input, shape index: {}]   ;;  %s10904_s11 = inlined_call_operand.vmem [shape: f32[10,120], index: 11, kind: input, shape index: {}]   ;;  %s10905_s12 = inlined_call_operand.vmem [shape: f32[10,1], index: 12, kind: input, shape index: {}]   ;;  %s10906_s13 = inlined_call_operand.vmem [shape: f32[10,256], index: 13, kind: output, shape index: {}]  }
   0x1   :  { %10957 = sst [smem:[#allocation156_spill]] %s10895_s2 }
   0x2   :  { %10958 = sst [smem:[#allocation157_spill]] %s10906_s13 }
   0x3   :  { %18 = vsyncpa [#allocation4], 0 }
   0x4   :  { %19 = vsyncpa [#allocation6], 0 }
   0x5   :  { %20 = vsyncpa [#allocation9], 0 }
   0x6   :  { %21 = vsyncpa [#allocation12], 0  ;;  %s8409_s25 = smov 0   ;;  %s8411_s26 = smov 0  }
   0x7   :  { %s8413_s27 = smov 0  }
   0x8 LB: > { %s8425_s28 = sadd.s32 4294967295, %s8323_s27   ;;  %s8428_s29 = sadd.s32 1, %s8323_s27   ;;  %s8323_s27 = sphi %s8413_s27, %s11323_s27   ;;  %s8319_s26 = sphi %s8411_s26, %s11326_s26   ;;  %s8315_s25 = sphi %s8409_s25, %s11325_s25  }
   0x9   : > { %10959 = sst [smem:[#allocation19_spill]] %s8428_s29  ;;  %s31_s30 = ssub.s32 %s8323_s27, %s8428_s29 }
   0xa   : > { %s34_s14 = sadd.s32 1, %s8319_s26  ;;  %p32_p0 = scmp.eq.s32.totalorder %s31_s30, 0 }
   0xb   : > { %p41_p1 = scmp.ne.s32.totalorder %s8319_s26, %s8315_s25  ;;  %p42_p2 = scmp.eq.s32.totalorder %s8323_s27, 0 }
   0xc   : > { %p323_p3 = scmp.eq.s32.totalorder %s8425_s28, 1  ;;  %p6174_p6 = scmp.ge.s32.totalorder %s8323_s27, 1 }
   0xd   : > { %s8438_s15 = scalar_select %p32_p0, %s8319_s26, %s34_s14  }
   0xe   : > { %p8440_p4 = por %p42_p2, %p41_p1  ;;  %p8444_p5 = por %p323_p3, %p41_p1 }
   0xf   : > { %10960 = sst [smem:[#allocation20_spill]] %s8438_s15  ;;  %p336_p7 = scmp.lt.s32.totalorder %s8323_s27, 3 }
  0x10   : > { %s10962_s17 = scalar_select %p8444_p5, 1, 0 }
  0x11   : > { %p10910_p8 = scmp.eq.s32.totalorder %s8425_s28, 0  ;;  %p8451_p9 = pnand %p6174_p6, %p336_p7 }
  0x12   : > { %10963 = sst [smem:[#allocation21_spill]] %s10962_s17  ;;  %s8325_s19 = smov [#allocation5]  }
  0x13   : > { %p8027_p10 = pneg %p8451_p9  ;;  %s361_s20 = sshll.u32 %s8325_s19, 4  ;;  %s362_s20 = int_to_ptr.vmem [resolvable:$true] %s361_s20 }
  0x14   : > { %s8326_s22 = smov [#allocation8]   ;;  %s8327_s24 = smov [#allocation11]  }
  0x15   : > { %p8459_p11 = pnand %p10910_p8, %p8027_p10  ;;  %s387_s23 = sshll.u32 %s8326_s22, 4  ;;  %s388_s23 = int_to_ptr.vmem [resolvable:$true] %s387_s23 }
  0x16   : > { %s419_s30 = sshll.u32 %s8327_s24, 4  ;;  %s8114_s15 = scalar_lea.vmem %s362_s20, 1920  ;;  %s420_s30 = int_to_ptr.vmem [resolvable:$true] %s419_s30 }
  0x17   : > { %p8465_p12 = pneg %p8459_p11  ;;  %p8115_p13 = scmp.ne.s32.totalorder %s362_s20, %s8114_s15 }
  0x18   : > { %p8122_p2 = scmp.lt.s32.totalorder %s362_s20, %s362_s20  ;;  %p8123_p3 = scmp.lt.s32.totalorder %s8114_s15, %s8114_s15 }
  0x19   : > { %p8117_p0 = pnand %p8115_p13, %p8465_p12 }
  0x1a   : > { %p8124_p6 = por %p8123_p3, %p8122_p2 }
  0x1b   : > { %p8118_p1 = pneg %p8117_p0 }
  0x1d   : > { %p8125_p7 = pnand %p8124_p6, %p8118_p1 }
  0x1f   : > { %8128 = shalt.err (!%p8125_p7)
}
  0x20   : > { %s8328_s19 = smov 128   ;;  %s8329_s22 = smov 8  }
  0x21   : > { %s10967_s2 = sld [smem:[#allocation156_spill]]  ;;  %s8140_s13 = scalar_lea.vmem %s388_s23, 10240 }
  0x22   : > { %p8141_p10 = scmp.ne.s32.totalorder %s388_s23, %s8140_s13  ;;  %p8148_p2 = scmp.lt.s32.totalorder %s388_s23, %s388_s23 }
  0x23   : > { %p8149_p1 = scmp.lt.s32.totalorder %s8140_s13, %s8140_s13 }
  0x24   : > { %p8143_p13 = pnand %p8141_p10, %p8465_p12 }
  0x25   : > { %p8150_p3 = por %p8149_p1, %p8148_p2 }
  0x26   : > { %p8144_p0 = pneg %p8143_p13 }
  0x27   : > { %8033 = dma.hbm_to_vmem [thread:$0]  (!%p8459_p11), %s10967_s2, 1920, %s362_s20, [#allocation6], %s8328_s19, %s8328_s19, %s8329_s22  }
  0x28   : > { %p8151_p6 = pnand %p8150_p3, %p8144_p0 }
  0x2a   : > { %8154 = shalt.err (!%p8151_p6)
}
  0x2b   : > { %8039 = dma.hbm_to_vmem [thread:$0]  (!%p8459_p11), %s10897_s4, 10240, %s388_s23, [#allocation9], %s8328_s19, %s8328_s19, %s8329_s22  }
  0x2c   : > { %s8166_s29 = scalar_lea.vmem %s420_s30, 12288  ;;  %p8174_p8 = scmp.lt.s32.totalorder %s420_s30, %s420_s30 }
  0x2d   : > { %p8167_p7 = scmp.ne.s32.totalorder %s420_s30, %s8166_s29  ;;  %p8175_p2 = scmp.lt.s32.totalorder %s8166_s29, %s8166_s29 }
  0x2f   : > { %p8169_p10 = pnand %p8167_p7, %p8465_p12  ;;  %p8176_p0 = por %p8175_p2, %p8174_p8 }
  0x31   : > { %p8170_p13 = pneg %p8169_p10 }
  0x33   : > { %p8177_p1 = pnand %p8176_p0, %p8170_p13 }
  0x35   : > { %8180 = shalt.err (!%p8177_p1)
}
  0x36   : > { %8045 = dma.hbm_to_vmem [thread:$0]  (!%p8459_p11), %s10901_s8, 12288, %s420_s30, [#allocation12], %s8328_s19, %s8328_s19, %s8329_s22  }
  0x37   : > { %s8330_s20 = smov [#allocation3]   ;;  %s8331_s24 = smov [#allocation7]  }
  0x38   : > { %s348_s23 = sshll.u32 %s8330_s20, 4  ;;  %s374_s15 = sshll.u32 %s8331_s24, 4  ;;  %s349_s23 = int_to_ptr.vmem [resolvable:$true] %s348_s23  ;;  %s375_s15 = int_to_ptr.vmem [resolvable:$true] %s374_s15 }
  0x39   : > { %s8192_s2 = scalar_lea.vmem %s349_s23, 1920  ;;  %p8200_p7 = scmp.lt.s32.totalorder %s349_s23, %s349_s23 }
  0x3a   : > { %p8193_p3 = scmp.ne.s32.totalorder %s349_s23, %s8192_s2  ;;  %p8201_p10 = scmp.lt.s32.totalorder %s8192_s2, %s8192_s2 }
  0x3c   : > { %p8195_p8 = pnand %p8193_p3, %p8465_p12  ;;  %p8202_p13 = por %p8201_p10, %p8200_p7 }
  0x3e   : > { %p8196_p6 = pneg %p8195_p8 }
  0x40   : > { %p8203_p2 = pnand %p8202_p13, %p8196_p6 }
  0x42   : > { %8206 = shalt.err (!%p8203_p2)
}
  0x43   : > { %8030 = dma.hbm_to_vmem [thread:$0]  (!%p8459_p11), %s10894_s1, 1920, %s349_s23, [#allocation4], %s8328_s19, %s8328_s19, %s8329_s22  }
  0x44   : > { %s8218_s13 = scalar_lea.vmem %s375_s15, 10240  ;;  %p8226_p8 = scmp.lt.s32.totalorder %s375_s15, %s375_s15 }
  0x45   : > { %p8219_p0 = scmp.ne.s32.totalorder %s375_s15, %s8218_s13  ;;  %p8227_p7 = scmp.lt.s32.totalorder %s8218_s13, %s8218_s13 }
  0x47   : > { %p8221_p1 = pnand %p8219_p0, %p8465_p12  ;;  %p8228_p6 = por %p8227_p7, %p8226_p8 }
  0x49   : > { %p8222_p3 = pneg %p8221_p1 }
  0x4b   : > { %p8229_p10 = pnand %p8228_p6, %p8222_p3 }
  0x4d   : > { %8232 = shalt.err (!%p8229_p10)
}
  0x4e   : > { %8036 = dma.hbm_to_vmem [thread:$0]  (!%p8459_p11), %s10896_s3, 10240, %s375_s15, [#allocation6], %s8328_s19, %s8328_s19, %s8329_s22  }
  0x4f   : > { %s8332_s20 = smov [#allocation10]  }
  0x50   : > { %s400_s23 = sshll.u32 %s8332_s20, 4  ;;  %s401_s23 = int_to_ptr.vmem [resolvable:$true] %s400_s23 }
  0x51   : > { %s8244_s24 = scalar_lea.vmem %s401_s23, 11520  ;;  %p8252_p1 = scmp.lt.s32.totalorder %s401_s23, %s401_s23 }
  0x52   : > { %p8245_p13 = scmp.ne.s32.totalorder %s401_s23, %s8244_s24  ;;  %p8253_p3 = scmp.lt.s32.totalorder %s8244_s24, %s8244_s24 }
  0x54   : > { %p8247_p2 = pnand %p8245_p13, %p8465_p12  ;;  %p8254_p8 = por %p8253_p3, %p8252_p1 }
  0x56   : > { %p8248_p0 = pneg %p8247_p2 }
  0x58   : > { %p8255_p7 = pnand %p8254_p8, %p8248_p0 }
  0x5a   : > { %8258 = shalt.err (!%p8255_p7)
}
  0x5b   : > { %s8333_s30 = smov 384   ;;  %s8334_s29 = smov 24  }
  0x5c   : > { %8042 = dma.hbm_to_vmem [thread:$0]  (!%p8459_p11), %s10898_s5, 11520, %s401_s23, [#allocation9], %s8333_s30, %s8333_s30, %s8334_s29  }
  0x5d   : > { %s8335_s22 = smov [#allocation13]  }
  0x5e   : > { %s432_s15 = sshll.u32 %s8335_s22, 4  ;;  %s433_s15 = int_to_ptr.vmem [resolvable:$true] %s432_s15 }
  0x5f   : > { %s8270_s2 = scalar_lea.vmem %s433_s15, 11520  ;;  %p8278_p2 = scmp.lt.s32.totalorder %s433_s15, %s433_s15 }
  0x60   : > { %p8271_p6 = scmp.ne.s32.totalorder %s433_s15, %s8270_s2  ;;  %p8279_p0 = scmp.lt.s32.totalorder %s8270_s2, %s8270_s2 }
  0x62   : > { %p8273_p10 = pnand %p8271_p6, %p8465_p12  ;;  %p8280_p1 = por %p8279_p0, %p8278_p2 }
  0x64   : > { %p8274_p13 = pneg %p8273_p10 }
  0x66   : > { %p8281_p3 = pnand %p8280_p1, %p8274_p13 }
  0x68   : > { %8284 = shalt.err (!%p8281_p3)
}
  0x69   : > { %8048 = dma.hbm_to_vmem [thread:$0]  (!%p8459_p11), %s10902_s9, 11520, %s433_s15, [#allocation12], %s8333_s30, %s8333_s30, %s8334_s29  }
  0x6a   : > { %p6182_p8 = scmp.ge.s32.totalorder %s8323_s27, 2 }
  0x6c   : > { %451 = sbr.rel (%p6182_p8) target bundleno = 125 (0x7d), region = 64 }
  0x71   : > { %454 = sbr.rel (!%p8440_p4) target bundleno = 125 (0x7d), region = 68  ;;  %s456_s14 = sand.u32 (%p8440_p4), 1, %s8319_s26  }
  0x72   : > { %s6183_s23 = sshll.u32 (%p8440_p4), %s8323_s27, 3  ;;  %s7997_s24 = smul.u32 (%p8440_p4), 120, %s456_s14 }
  0x73   : > { %s460_s22 = scalar_lea.vmem (%p8440_p4), %s10893_s0, %s6183_s23 }
  0x74   : > { %v517_v0 = vld [vmem:[%s460_s22] sm:$0xff] (%p8440_p4)  ;;  %v519_v1 = vld [vmem:[%s460_s22 + $0x10] sm:$0xff] (%p8440_p4)  ;;  %s458_s21 = scalar_lea.vmem (%p8440_p4), [#allocation2], %s7997_s24 }
  0x75   : > { %v521_v2 = vld [vmem:[%s460_s22 + $0x20] sm:$0xff] (%p8440_p4)  ;;  %v523_v3 = vld [vmem:[%s460_s22 + $0x30] sm:$0xff] (%p8440_p4)  ;;  %518 = vst [vmem:[%s458_s21] sm:$0xff] (%p8440_p4), %v517_v0  ;;  %520 = vst [vmem:[%s458_s21 + $0x8] sm:$0xff] (%p8440_p4), %v519_v1 }
  0x76   : > { %v525_v4 = vld [vmem:[%s460_s22 + $0x40] sm:$0xff]  ;;  %v527_v5 = vld [vmem:[%s460_s22 + $0x50] sm:$0xff]  ;;  %522 = vst [vmem:[%s458_s21 + $0x10] sm:$0xff] %v521_v2  ;;  %524 = vst [vmem:[%s458_s21 + $0x18] sm:$0xff] %v523_v3 }
  0x77   : > { %526 = vst [vmem:[%s458_s21 + $0x20] sm:$0xff] %v525_v4  ;;  %528 = vst [vmem:[%s458_s21 + $0x28] sm:$0xff] %v527_v5  ;;  %v529_v6 = vld [vmem:[%s460_s22 + $0x60] sm:$0xff]  ;;  %v531_v7 = vld [vmem:[%s460_s22 + $0x70] sm:$0xff] }
  0x78   : > { %v533_v8 = vld [vmem:[%s460_s22 + $0x80] sm:$0xff]  ;;  %530 = vst [vmem:[%s458_s21 + $0x30] sm:$0xff] %v529_v6  ;;  %532 = vst [vmem:[%s458_s21 + $0x38] sm:$0xff] %v531_v7  ;;  %v535_v9 = vld [vmem:[%s460_s22 + $0x90] sm:$0xff] }
  0x79   : > { %534 = vst [vmem:[%s458_s21 + $0x40] sm:$0xff] %v533_v8  ;;  %v537_v10 = vld [vmem:[%s460_s22 + $0xa0] sm:$0xff]  ;;  %v539_v11 = vld [vmem:[%s460_s22 + $0xb0] sm:$0xff]  ;;  %536 = vst [vmem:[%s458_s21 + $0x48] sm:$0xff] %v535_v9 }
  0x7a   : > { %538 = vst [vmem:[%s458_s21 + $0x50] sm:$0xff] %v537_v10  ;;  %540 = vst [vmem:[%s458_s21 + $0x58] sm:$0xff] %v539_v11  ;;  %v541_v12 = vld [vmem:[%s460_s22 + $0xc0] sm:$0xff]  ;;  %v543_v13 = vld [vmem:[%s460_s22 + $0xd0] sm:$0xff] }
  0x7b   : > { %v545_v14 = vld [vmem:[%s460_s22 + $0xe0] sm:$0xff]  ;;  %542 = vst [vmem:[%s458_s21 + $0x60] sm:$0xff] %v541_v12  ;;  %544 = vst [vmem:[%s458_s21 + $0x68] sm:$0xff] %v543_v13 }
  0x7c   : > { %546 = vst [vmem:[%s458_s21 + $0x70] sm:$0xff] %v545_v14 }
  0x7d PF: > { %555 = sbr.rel (%p8451_p9) target bundleno = 3114 (0xc2a), region = 106 }
  0x82   : > { %s558_s27 = sand.u32 1, %s8315_s25   ;;  %p10968_p4 = scmp.eq.s32.totalorder %s8425_s28, 0 }
  0x83   : > { %s7998_s16 = smul.u32 120, %s558_s27 }
  0x85   : > { %s8546_s30 = scalar_lea.vmem [#allocation2], %s7998_s16 }
  0x86   : > { %8298 = dma.done.wait (%p10968_p4), [#allocation4], 1920   ;;  %p10969_p11 = pmov %p10968_p4 }
  0x87   : > { %p10970_p12 = pmov %p10968_p4 }
  0x88   : > { %8300 = vsyncadd (%p10969_p11), [#allocation4], 4294965376 }
  0x89   : > { %8302 = dma.done.wait (%p10970_p12), [#allocation6], 12160   ;;  %p10971_p7 = pmov %p10968_p4 }
  0x8a   : > { %p10972_p9 = pmov %p10968_p4 }
  0x8b   : > { %8304 = vsyncadd (%p10971_p7), [#allocation6], 4294955136 }
  0x8c   : > { %8306 = dma.done.wait (%p10972_p9), [#allocation9], 21760   ;;  %p10973_p6 = pmov %p10968_p4 }
  0x8d   : > { %p10974_p10 = pmov %p10968_p4 }
  0x8e   : > { %8308 = vsyncadd (%p10973_p6), [#allocation9], 4294945536 }
  0x8f   : > { %8310 = dma.done.wait (%p10974_p10), [#allocation12], 23808   ;;  %p10975_p13 = pmov %p10968_p4 }
  0x90   : > { %v10911_v15 = vmov 0.0   ;;  %v8337_v16 = vmov 0   ;;  %vm8338_vm0 = vmmov 0   ;;  %v672_v17 = vld [vmem:[#allocation5 + $0x70] sm:$0xff]  ;;  %v670_v18 = vld [vmem:[#allocation5 + $0x60] sm:$0xff]  ;;  %v671_v21 = vld [vmem:[#allocation5 + $0x68] sm:$0xff] }
  0x91   : > { %8312 = vsyncadd (%p10975_p13), [#allocation12], 4294943488  ;;  %7197 = vmatprep.subr.mxu0 %v10911_v15  ;;  %8102 = vset.pattern.permute.xlu1 %v8337_v16  ;;  %v642_v19 = vld [vmem:[%s8546_s30 + $0x70] sm:$0xff]  ;;  %v641_v20 = vld [vmem:[%s8546_s30 + $0x68] sm:$0xff]  ;;  %vm748_vm1 = vcmask 982016   ;;  %vm1699_vm2 = vcmask 523264  }
  0x92   : > { %8101 = vset.pattern.permute.xlu0 %v8337_v16  ;;  %7227 = vmatprep.mubr.msk.f32.mxu0 %vm8338_vm0, %v10911_v15  ;;  %v669_v22 = vld [vmem:[#allocation5 + $0x58] sm:$0xff]  ;;  %v639_v24 = vld [vmem:[%s8546_s30 + $0x58] sm:$0xff]  ;;  %v638_v27 = vld [vmem:[%s8546_s30 + $0x50] sm:$0xff]  ;;  %s6192_s20 = sshll.u32 %s558_s27, 4  ;;  %s6495_s24 = sshll.u32 (%p8444_p5), %s8425_s28, 3 }
  0x93   : > { %745 = vperm.xlu0 %8101, %v672_v17   ;;  %735 = vperm.xlu1 %8102, %v670_v18   ;;  %v640_v23 = vld [vmem:[%s8546_s30 + $0x60] sm:$0xff]  ;;  %v667_v26 = vld [vmem:[#allocation5 + $0x48] sm:$0xff]  ;;  %v637_v28 = vld [vmem:[%s8546_s30 + $0x48] sm:$0xff]  ;;  %s627_s14 = scalar_lea.vmem [#allocation14], %s6192_s20  ;;  %s11322_s25 = sld [smem:[#allocation157_spill]] (%p8444_p5) }
  0x94   : > { %7198 = vmatpush3.msra.mxu0 %v642_v19  ;;  %v668_v25 = vld [vmem:[#allocation5 + $0x50] sm:$0xff]  ;;  %v666_v29 = vld [vmem:[#allocation5 + $0x40] sm:$0xff]  ;;  %v665_v30 = vld [vmem:[#allocation5 + $0x38] sm:$0xff] }
  0x95   : > { %7199 = vmatprep.subr.mxu0 %v10911_v15  ;;  %v636_v31 = vld [vmem:[%s8546_s30 + $0x40] sm:$0xff]  ;;  %v635_v32 = vld [vmem:[%s8546_s30 + $0x38] sm:$0xff]  ;;  %v634_v35 = vld [vmem:[%s8546_s30 + $0x30] sm:$0xff] }
  0x96   : > { %7200 = vmatpush3.msra.mxu0 %v641_v20  ;;  %v664_v33 = vld [vmem:[#allocation5 + $0x30] sm:$0xff]  ;;  %v663_v34 = vld [vmem:[#allocation5 + $0x28] sm:$0xff]  ;;  %v633_v36 = vld [vmem:[%s8546_s30 + $0x28] sm:$0xff] }
  0x97   : > { %7201 = vmatprep.subr.mxu0 %v10911_v15  ;;  %740 = vperm.xlu0 %8101, %v671_v21   ;;  %v662_v37 = vld [vmem:[#allocation5 + $0x20] sm:$0xff]  ;;  %v661_v38 = vld [vmem:[#allocation5 + $0x18] sm:$0xff]  ;;  %v631_v40 = vld [vmem:[%s8546_s30 + $0x18] sm:$0xff] }
  0x98   : > { %730 = vperm.xlu1 %8102, %v669_v22   ;;  %7202 = vmatpush3.msra.mxu0 %v640_v23  ;;  %v632_v39 = vld [vmem:[%s8546_s30 + $0x20] sm:$0xff]  ;;  %v659_v42 = vld [vmem:[#allocation5 + $0x8] sm:$0xff]  ;;  %v629_v44 = vld [vmem:[%s8546_s30 + $0x8] sm:$0xff] }
  0x99   : > { %7203 = vmatprep.subr.mxu0 %v10911_v15  ;;  %v660_v41 = vld [vmem:[#allocation5 + $0x10] sm:$0xff]  ;;  %v630_v43 = vld [vmem:[%s8546_s30 + $0x10] sm:$0xff]  ;;  %v645_v54 = vld [vmem:[#allocation3 + $0x10] sm:$0xff]  ;;  %s6009_s27 = scalar_lea.vmem (%p8444_p5), %s11322_s25, %s6495_s24 }
  0x9a   : > { %7204 = vmatpush3.msra.mxu0 %v639_v24  ;;  %v658_v45 = vld [vmem:[#allocation5] sm:$0xff]  ;;  %v1020_v46 = vld [vmem:[#allocation8 + $0xf8] sm:$0xff]  ;;  %v643_v48 = vld [vmem:[#allocation3] sm:$0xff] }
  0x9b   : > { %7205 = vmatprep.subr.mxu0 %v10911_v15  ;;  %725 = vperm.xlu0 %8101, %v668_v25   ;;  %v628_v47 = vld [vmem:[%s8546_s30] sm:$0xff]  ;;  %v1019_v50 = vld [vmem:[#allocation8 + $0xf0] sm:$0xff]  ;;  %v1018_v53 = vld [vmem:[#allocation8 + $0xe8] sm:$0xff] }
  0x9c   : > { %720 = vperm.xlu1 %8102, %v667_v26   ;;  %7206 = vmatpush3.msra.mxu0 %v638_v27  ;;  %v1004_v49 = vld [vmem:[#allocation8 + $0x78] sm:$0xff]  ;;  %v1003_v52 = vld [vmem:[#allocation8 + $0x70] sm:$0xff]  ;;  %v1002_v55 = vld [vmem:[#allocation8 + $0x68] sm:$0xff] }
  0x9d   : > { %7207 = vmatprep.subr.mxu0 %v10911_v15  ;;  %v644_v51 = vld [vmem:[#allocation3 + $0x8] sm:$0xff]  ;;  %v1017_v56 = vld [vmem:[#allocation8 + $0xe0] sm:$0xff]  ;;  %v646_v57 = vld [vmem:[#allocation3 + $0x18] sm:$0xff] }
  0x9e   : > { %7208 = vmatpush3.msra.mxu0 %v637_v28  ;;  %v1001_v58 = vld [vmem:[#allocation8 + $0x60] sm:$0xff]  ;;  %v1016_v59 = vld [vmem:[#allocation8 + $0xd8] sm:$0xff]  ;;  %v647_v60 = vld [vmem:[#allocation3 + $0x20] sm:$0xff] }
  0x9f   : > { %7209 = vmatprep.subr.mxu0 %v10911_v15  ;;  %715 = vperm.xlu0 %8101, %v666_v29   ;;  %v1000_v61 = vld [vmem:[#allocation8 + $0x58] sm:$0xff]  ;;  %v1015_v62 = vld [vmem:[#allocation8 + $0xd0] sm:$0xff]  ;;  %v1014_v1 = vld [vmem:[#allocation8 + $0xc8] sm:$0xff] }
  0xa0   : > { %710 = vperm.xlu1 %8102, %v665_v30   ;;  %7210 = vmatpush3.msra.mxu0 %v636_v31  ;;  %v648_v63 = vld [vmem:[#allocation3 + $0x28] sm:$0xff]  ;;  %v999_v0 = vld [vmem:[#allocation8 + $0x50] sm:$0xff]  ;;  %v649_v2 = vld [vmem:[#allocation3 + $0x30] sm:$0xff] }
  0xa1   : > { %7211 = vmatprep.subr.mxu0 %v10911_v15  ;;  %v998_v3 = vld [vmem:[#allocation8 + $0x48] sm:$0xff]  ;;  %v1013_v4 = vld [vmem:[#allocation8 + $0xc0] sm:$0xff]  ;;  %v1012_v7 = vld [vmem:[#allocation8 + $0xb8] sm:$0xff] }
  0xa2   : > { %7212 = vmatpush3.msra.mxu0 %v635_v32  ;;  %v650_v5 = vld [vmem:[#allocation3 + $0x38] sm:$0xff]  ;;  %v997_v6 = vld [vmem:[#allocation8 + $0x40] sm:$0xff]  ;;  %v651_v8 = vld [vmem:[#allocation3 + $0x40] sm:$0xff] }
  0xa3   : > { %7213 = vmatprep.subr.mxu0 %v10911_v15  ;;  %705 = vperm.xlu0 %8101, %v664_v33   ;;  %v996_v9 = vld [vmem:[#allocation8 + $0x38] sm:$0xff]  ;;  %v1011_v10 = vld [vmem:[#allocation8 + $0xb0] sm:$0xff]  ;;  %v1010_v13 = vld [vmem:[#allocation8 + $0xa8] sm:$0xff] }
  0xa4   : > { %700 = vperm.xlu1 %8102, %v663_v34   ;;  %7214 = vmatpush3.msra.mxu0 %v634_v35  ;;  %v652_v11 = vld [vmem:[#allocation3 + $0x48] sm:$0xff]  ;;  %v995_v12 = vld [vmem:[#allocation8 + $0x30] sm:$0xff]  ;;  %v653_v14 = vld [vmem:[#allocation3 + $0x50] sm:$0xff] }
  0xa5   : > { %7215 = vmatprep.subr.mxu0 %v10911_v15  ;;  %v994_v16 = vld [vmem:[#allocation8 + $0x28] sm:$0xff]  ;;  %v1009_v17 = vld [vmem:[#allocation8 + $0xa0] sm:$0xff]  ;;  %v1008_v20 = vld [vmem:[#allocation8 + $0x98] sm:$0xff] }
  0xa6   : > { %7216 = vmatpush3.msra.mxu0 %v633_v36  ;;  %v654_v18 = vld [vmem:[#allocation3 + $0x58] sm:$0xff]  ;;  %v993_v19 = vld [vmem:[#allocation8 + $0x20] sm:$0xff]  ;;  %v655_v21 = vld [vmem:[#allocation3 + $0x60] sm:$0xff] }
  0xa7   : > { %7217 = vmatprep.subr.mxu0 %v10911_v15  ;;  %695 = vperm.xlu0 %8101, %v662_v37   ;;  %v992_v22 = vld [vmem:[#allocation8 + $0x18] sm:$0xff]  ;;  %v1007_v23 = vld [vmem:[#allocation8 + $0x90] sm:$0xff]  ;;  %v1006_v26 = vld [vmem:[#allocation8 + $0x88] sm:$0xff] }
  0xa8   : > { %690 = vperm.xlu1 %8102, %v661_v38   ;;  %7218 = vmatpush3.msra.mxu0 %v632_v39  ;;  %v656_v24 = vld [vmem:[#allocation3 + $0x68] sm:$0xff]  ;;  %v991_v25 = vld [vmem:[#allocation8 + $0x10] sm:$0xff]  ;;  %v657_v27 = vld [vmem:[#allocation3 + $0x70] sm:$0xff] }
  0xa9   : > { %7219 = vmatprep.subr.mxu0 %v10911_v15  ;;  %v990_v28 = vld [vmem:[#allocation8 + $0x8] sm:$0xff]  ;;  %v1005_v29 = vld [vmem:[#allocation8 + $0x80] sm:$0xff]  ;;  %v1028_v31 = vld [vmem:[#allocation8 + $0x138] sm:$0xff] }
  0xaa   : > { %7220 = vmatpush3.msra.mxu0 %v631_v40  ;;  %v989_v30 = vld [vmem:[#allocation8] sm:$0xff]  ;;  %v1027_v32 = vld [vmem:[#allocation8 + $0x130] sm:$0xff]  ;;  %v1026_v33 = vld [vmem:[#allocation8 + $0x128] sm:$0xff] }
  0xab   : > { %7221 = vmatprep.subr.mxu0 %v10911_v15  ;;  %685 = vperm.xlu0 %8101, %v660_v41   ;;  %v1025_v34 = vld [vmem:[#allocation8 + $0x120] sm:$0xff]  ;;  %v1024_v35 = vld [vmem:[#allocation8 + $0x118] sm:$0xff]  ;;  %v1023_v36 = vld [vmem:[#allocation8 + $0x110] sm:$0xff] }
  0xac   : > { %680 = vperm.xlu1 %8102, %v659_v42   ;;  %7222 = vmatpush3.msra.mxu0 %v630_v43  ;;  %v1022_v37 = vld [vmem:[#allocation8 + $0x108] sm:$0xff]  ;;  %v1021_v38 = vld [vmem:[#allocation8 + $0x100] sm:$0xff]  ;;  %v2054_v39 = vld [vmem:[%s10899_s6 + $0x70] sm:$0xff] }
  0xad   : > { %7223 = vmatprep.subr.mxu0 %v10911_v15  ;;  %v2053_v40 = vld [vmem:[%s10899_s6 + $0x68] sm:$0xff]  ;;  %v2052_v41 = vld [vmem:[%s10899_s6 + $0x60] sm:$0xff]  ;;  %v2051_v42 = vld [vmem:[%s10899_s6 + $0x58] sm:$0xff] }
  0xae   : > { %7224 = vmatpush3.msra.mxu0 %v629_v44  ;;  %v2050_v43 = vld [vmem:[%s10899_s6 + $0x50] sm:$0xff]  ;;  %v2049_v44 = vld [vmem:[%s10899_s6 + $0x48] sm:$0xff] }
  0xaf   : > { %7225 = vmatprep.subr.mxu0 %v10911_v15  ;;  %675 = vperm.xlu0 %8101, %v658_v45   ;;  %v2048_v45 = vld [vmem:[%s10899_s6 + $0x40] sm:$0xff] }
  0xb0   : > { %1186 = vperm.xlu1 %8102, %v1020_v46   ;;  %7226 = vmatpush3.msra.mxu0 %v628_v47  ;;  %v2047_v46 = vld [vmem:[%s10899_s6 + $0x38] sm:$0xff]  ;;  %v2046_v47 = vld [vmem:[%s10899_s6 + $0x30] sm:$0xff] }
  0xb1   : > { %7228 = vmatmul.mubr.msk.f32.vlgmr.msra.gmra.mxu0 %vm748_vm1, %v643_v48 }
  0xb2   : > { %7230 = vmatprep.mubr.msk.f32.mxu0 %vm8338_vm0, %v10911_v15 }
  0xb3   : > { %1106 = vperm.xlu0 %8101, %v1004_v49  }
  0xb4   : > { %1181 = vperm.xlu1 %8102, %v1019_v50   ;;  %v2045_v50 = vld [vmem:[%s10899_s6 + $0x28] sm:$0xff] }
  0xb5   : > { %7231 = vmatmul.mubr.msk.f32.gmra.mxu0 %vm748_vm1, %v644_v51  ;;  %v2044_v51 = vld [vmem:[%s10899_s6 + $0x20] sm:$0xff] }
  0xb6   : > { %7233 = vmatprep.mubr.msk.f32.mxu0 %vm8338_vm0, %v10911_v15 }
  0xb7   : > { %1101 = vperm.xlu0 %8101, %v1003_v52  }
  0xb8   : > { %1176 = vperm.xlu1 %8102, %v1018_v53  }
  0xb9   : > { %7234 = vmatmul.mubr.msk.f32.gmra.mxu0 %vm748_vm1, %v645_v54  ;;  %v2043_v54 = vld [vmem:[%s10899_s6 + $0x18] sm:$0xff] }
  0xba   : > { %7236 = vmatprep.mubr.msk.f32.mxu0 %vm8338_vm0, %v10911_v15 }
  0xbb   : > { %1096 = vperm.xlu0 %8101, %v1002_v55   ;;  %v2042_v55 = vld [vmem:[%s10899_s6 + $0x10] sm:$0xff] }
  0xbc   : > { %1171 = vperm.xlu1 %8102, %v1017_v56  }
  0xbd   : > { %7237 = vmatmul.mubr.msk.f32.gmra.mxu0 %vm748_vm1, %v646_v57 }
  0xbe   : > { %7239 = vmatprep.mubr.msk.f32.mxu0 %vm8338_vm0, %v10911_v15 }
  0xbf   : > { %1091 = vperm.xlu0 %8101, %v1001_v58   ;;  %v2041_v58 = vld [vmem:[%s10899_s6 + $0x8] sm:$0xff] }
  0xc0   : > { %1166 = vperm.xlu1 %8102, %v1016_v59   ;;  %v2040_v59 = vld [vmem:[%s10899_s6] sm:$0xff] }
  0xc1   : > { %7240 = vmatmul.mubr.msk.f32.gmra.mxu0 %vm748_vm1, %v647_v60 }
  0xc2   : > { %7242 = vmatprep.mubr.msk.f32.mxu0 %vm8338_vm0, %v10911_v15 }
  0xc3   : > { %1086 = vperm.xlu0 %8101, %v1000_v61  }
  0xc4   : > { %1161 = vperm.xlu1 %8102, %v1015_v62   ;;  %v2224_v62 = vld [vmem:[#allocation11 + $0xf8] sm:$0xff] }
  0xc5   : > { %7243 = vmatmul.mubr.msk.f32.gmra.mxu0 %vm748_vm1, %v648_v63  ;;  %v2208_v63 = vld [vmem:[#allocation11 + $0x78] sm:$0xff] }
  0xc6   : > { %7245 = vmatprep.mubr.msk.f32.mxu0 %vm8338_vm0, %v10911_v15 }
  0xc7   : > { %1081 = vperm.xlu0 %8101, %v999_v0  }
  0xc8   : > { %1156 = vperm.xlu1 %8102, %v1014_v1  }
  0xc9   : > { %7246 = vmatmul.mubr.msk.f32.gmra.mxu0 %vm748_vm1, %v649_v2  ;;  %v2223_v2 = vld [vmem:[#allocation11 + $0xf0] sm:$0xff] }
  0xca   : > { %7248 = vmatprep.mubr.msk.f32.mxu0 %vm8338_vm0, %v10911_v15 }
  0xcb   : > { %1076 = vperm.xlu0 %8101, %v998_v3   ;;  %v2207_v3 = vld [vmem:[#allocation11 + $0x70] sm:$0xff] }
  0xcc   : > { %1151 = vperm.xlu1 %8102, %v1013_v4  }
  0xcd   : > { %7249 = vmatmul.mubr.msk.f32.gmra.mxu0 %vm748_vm1, %v650_v5 }
  0xce   : > { %7251 = vmatprep.mubr.msk.f32.mxu0 %vm8338_vm0, %v10911_v15 }
  0xcf   : > { %1071 = vperm.xlu0 %8101, %v997_v6   ;;  %v2222_v6 = vld [vmem:[#allocation11 + $0xe8] sm:$0xff] }
  0xd0   : > { %1146 = vperm.xlu1 %8102, %v1012_v7   ;;  %v2206_v7 = vld [vmem:[#allocation11 + $0x68] sm:$0xff] }
  0xd1   : > { %7252 = vmatmul.mubr.msk.f32.gmra.mxu0 %vm748_vm1, %v651_v8 }
  0xd2   : > { %7254 = vmatprep.mubr.msk.f32.mxu0 %vm8338_vm0, %v10911_v15 }
  0xd3   : > { %1066 = vperm.xlu0 %8101, %v996_v9  }
  0xd4   : > { %1141 = vperm.xlu1 %8102, %v1011_v10   ;;  %v2221_v10 = vld [vmem:[#allocation11 + $0xe0] sm:$0xff] }
  0xd5   : > { %7255 = vmatmul.mubr.msk.f32.gmra.mxu0 %vm748_vm1, %v652_v11  ;;  %v2205_v11 = vld [vmem:[#allocation11 + $0x60] sm:$0xff] }
  0xd6   : > { %7257 = vmatprep.mubr.msk.f32.mxu0 %vm8338_vm0, %v10911_v15 }
  0xd7   : > { %1061 = vperm.xlu0 %8101, %v995_v12  }
  0xd8   : > { %1136 = vperm.xlu1 %8102, %v1010_v13  }
  0xd9   : > { %7258 = vmatmul.mubr.msk.f32.gmra.mxu0 %vm748_vm1, %v653_v14  ;;  %v2220_v14 = vld [vmem:[#allocation11 + $0xd8] sm:$0xff] }
  0xda   : > { %7260 = vmatprep.mubr.msk.f32.mxu0 %vm8338_vm0, %v10911_v15 }
  0xdb   : > { %1056 = vperm.xlu0 %8101, %v994_v16   ;;  %v2204_v16 = vld [vmem:[#allocation11 + $0x58] sm:$0xff] }
  0xdc   : > { %1131 = vperm.xlu1 %8102, %v1009_v17  }
  0xdd   : > { %7261 = vmatmul.mubr.msk.f32.gmra.mxu0 %vm748_vm1, %v654_v18 }
  0xde   : > { %7263 = vmatprep.mubr.msk.f32.mxu0 %vm8338_vm0, %v10911_v15 }
  0xdf   : > { %1051 = vperm.xlu0 %8101, %v993_v19   ;;  %v2219_v19 = vld [vmem:[#allocation11 + $0xd0] sm:$0xff] }
  0xe0   : > { %1126 = vperm.xlu1 %8102, %v1008_v20   ;;  %v2203_v20 = vld [vmem:[#allocation11 + $0x50] sm:$0xff] }
  0xe1   : > { %7264 = vmatmul.mubr.msk.f32.gmra.mxu0 %vm748_vm1, %v655_v21 }
  0xe2   : > { %7266 = vmatprep.mubr.msk.f32.mxu0 %vm8338_vm0, %v10911_v15 }
  0xe3   : > { %1046 = vperm.xlu0 %8101, %v992_v22  }
  0xe4   : > { %1121 = vperm.xlu1 %8102, %v1007_v23   ;;  %v2218_v23 = vld [vmem:[#allocation11 + $0xc8] sm:$0xff] }
  0xe5   : > { %7267 = vmatmul.mubr.msk.f32.gmra.mxu0 %vm748_vm1, %v656_v24  ;;  %v2202_v24 = vld [vmem:[#allocation11 + $0x48] sm:$0xff] }
  0xe6   : > { %7269 = vmatprep.mubr.msk.f32.mxu0 %vm8338_vm0, %v10911_v15 }
  0xe7   : > { %1041 = vperm.xlu0 %8101, %v991_v25  }
  0xe8   : > { %1116 = vperm.xlu1 %8102, %v1006_v26  }
  0xe9   : > { %7270 = vmatmul.mubr.msk.f32.gmra.mxu0 %vm748_vm1, %v657_v27  ;;  %v2217_v27 = vld [vmem:[#allocation11 + $0xc0] sm:$0xff] }
  0xeb   : > { %1036 = vperm.xlu0 %8101, %v990_v28   ;;  %v2201_v28 = vld [vmem:[#allocation11 + $0x40] sm:$0xff] }
  0xec   : > { %1111 = vperm.xlu1 %8102, %v1005_v29  }
  0xef   : > { %1031 = vperm.xlu0 %8101, %v989_v30  }
  0xf0   : > { %1226 = vperm.xlu1 %8102, %v1028_v31   ;;  %v2216_v31 = vld [vmem:[#allocation11 + $0xb8] sm:$0xff] }
  0xf3   : > { %1221 = vperm.xlu0 %8101, %v1027_v32   ;;  %v2200_v32 = vld [vmem:[#allocation11 + $0x38] sm:$0xff] }
  0xf4   : > { %1216 = vperm.xlu1 %8102, %v1026_v33  }
  0xf7   : > { %1211 = vperm.xlu0 %8101, %v1025_v34  }
  0xf8   : > { %1206 = vperm.xlu1 %8102, %v1024_v35   ;;  %v2215_v35 = vld [vmem:[#allocation11 + $0xb0] sm:$0xff] }
  0xfb   : > { %1201 = vperm.xlu0 %8101, %v1023_v36   ;;  %v2199_v36 = vld [vmem:[#allocation11 + $0x30] sm:$0xff] }
  0xfc   : > { %1196 = vperm.xlu1 %8102, %v1022_v37  }
  0xff   : > { %1191 = vperm.xlu0 %8101, %v1021_v38  }
 0x100   : > { %2127 = vperm.xlu1 %8102, %v2054_v39   ;;  %v2214_v39 = vld [vmem:[#allocation11 + $0xa8] sm:$0xff] }
 0x103   : > { %2122 = vperm.xlu0 %8101, %v2053_v40   ;;  %v2198_v40 = vld [vmem:[#allocation11 + $0x28] sm:$0xff] }
 0x104   : > { %2117 = vperm.xlu1 %8102, %v2052_v41  }
 0x107   : > { %2112 = vperm.xlu0 %8101, %v2051_v42  }
 0x108   : > { %2107 = vperm.xlu1 %8102, %v2050_v43   ;;  %v2213_v43 = vld [vmem:[#allocation11 + $0xa0] sm:$0xff] }
 0x10b   : > { %2102 = vperm.xlu0 %8101, %v2049_v44   ;;  %v2197_v44 = vld [vmem:[#allocation11 + $0x20] sm:$0xff] }
 0x10c   : > { %2097 = vperm.xlu1 %8102, %v2048_v45  }
 0x10e   : > { %v8666_v48 = vpop.permute.xlu0 %745  ;;  %v8668_v49 = vpop.permute.xlu1 %735 }
 0x10f   : > { %2092 = vperm.xlu0 %8101, %v2047_v46   ;;  %v949_v46 = vld [vmem:[#allocation7] sm:$0xff] }
 0x110   : > { %2087 = vperm.xlu1 %8102, %v2046_v47   ;;  %7302 = vmatprep.mubr.msk.f32.mxu1 %vm748_vm1, %v949_v46 }
 0x112   : > { %v8676_v52 = vpop.permute.xlu0 %740 }
 0x113   : > { %v8678_v53 = vpop.permute.xlu1 %730  ;;  %2082 = vperm.xlu0 %8101, %v2045_v50   ;;  %v2212_v50 = vld [vmem:[#allocation11 + $0x98] sm:$0xff] }
 0x114   : > { %2077 = vperm.xlu1 %8102, %v2044_v51   ;;  %v2196_v51 = vld [vmem:[#allocation11 + $0x18] sm:$0xff] }
 0x116   : > { %v8686_v56 = vpop.permute.xlu0 %725 }
 0x117   : > { %v8688_v57 = vpop.permute.xlu1 %720  ;;  %2072 = vperm.xlu0 %8101, %v2043_v54  }
 0x118   : > { %2067 = vperm.xlu1 %8102, %v2042_v55  }
 0x11a   : > { %v8696_v60 = vpop.permute.xlu0 %715 }
 0x11b   : > { %v8698_v61 = vpop.permute.xlu1 %710  ;;  %2062 = vperm.xlu0 %8101, %v2041_v58   ;;  %v2211_v58 = vld [vmem:[#allocation11 + $0x90] sm:$0xff] }
 0x11c   : > { %2057 = vperm.xlu1 %8102, %v2040_v59   ;;  %v2195_v59 = vld [vmem:[#allocation11 + $0x10] sm:$0xff] }
 0x11e   : > { %v8700_v0 = vpop.permute.xlu0 %705 }
 0x11f   : > { %v8702_v1 = vpop.permute.xlu1 %700  ;;  %2398 = vperm.xlu0 %8101, %v2224_v62  }
 0x120   : > { %2318 = vperm.xlu1 %8102, %v2208_v63  }
 0x122   : > { %v8704_v4 = vpop.permute.xlu0 %695 }
 0x123   : > { %v8706_v5 = vpop.permute.xlu1 %690  ;;  %2393 = vperm.xlu0 %8101, %v2223_v2   ;;  %v2210_v2 = vld [vmem:[#allocation11 + $0x88] sm:$0xff] }
 0x124   : > { %2313 = vperm.xlu1 %8102, %v2207_v3   ;;  %v2194_v3 = vld [vmem:[#allocation11 + $0x8] sm:$0xff] }
 0x126   : > { %v8708_v8 = vpop.permute.xlu0 %685 }
 0x127   : > { %v8710_v9 = vpop.permute.xlu1 %680  ;;  %2388 = vperm.xlu0 %8101, %v2222_v6  }
 0x128   : > { %2308 = vperm.xlu1 %8102, %v2206_v7  }
 0x12a   : > { %v8712_v12 = vpop.permute.xlu0 %675 }
 0x12b   : > { %v8714_v13 = vpop.permute.xlu1 %1186  ;;  %2383 = vperm.xlu0 %8101, %v2221_v10   ;;  %v2209_v10 = vld [vmem:[#allocation11 + $0x80] sm:$0xff] }
 0x12c   : > { %2303 = vperm.xlu1 %8102, %v2205_v11   ;;  %v2193_v11 = vld [vmem:[#allocation11] sm:$0xff] }
 0x12e   : > { %v8716_v17 = vpop.permute.xlu0 %1106 }
 0x12f   : > { %v8718_v18 = vpop.permute.xlu1 %1181  ;;  %2378 = vperm.xlu0 %8101, %v2220_v14  }
 0x130   : > { %2298 = vperm.xlu1 %8102, %v2204_v16  }
 0x132   : > { %v8720_v21 = vpop.permute.xlu0 %1101 }
 0x133   : > { %v8722_v22 = vpop.permute.xlu1 %1176  ;;  %2373 = vperm.xlu0 %8101, %v2219_v19   ;;  %v2240_v19 = vld [vmem:[#allocation11 + $0x178] sm:$0xff] }
 0x134   : > { %2293 = vperm.xlu1 %8102, %v2203_v20   ;;  %v2239_v20 = vld [vmem:[#allocation11 + $0x170] sm:$0xff] }
 0x136   : > { %v8724_v25 = vpop.permute.xlu0 %1096 }
 0x137   : > { %v8726_v26 = vpop.permute.xlu1 %1171  ;;  %2368 = vperm.xlu0 %8101, %v2218_v23  }
 0x138   : > { %2288 = vperm.xlu1 %8102, %v2202_v24  }
 0x13a   : > { %v8728_v29 = vpop.permute.xlu0 %1091 }
 0x13b   : > { %v8730_v30 = vpop.permute.xlu1 %1166  ;;  %2363 = vperm.xlu0 %8101, %v2217_v27   ;;  %v2238_v27 = vld [vmem:[#allocation11 + $0x168] sm:$0xff] }
 0x13c   : > { %2283 = vperm.xlu1 %8102, %v2201_v28   ;;  %v2237_v28 = vld [vmem:[#allocation11 + $0x160] sm:$0xff] }
 0x13e   : > { %v8732_v33 = vpop.permute.xlu0 %1086 }
 0x13f   : > { %v8734_v34 = vpop.permute.xlu1 %1161  ;;  %2358 = vperm.xlu0 %8101, %v2216_v31  }
 0x140   : > { %2278 = vperm.xlu1 %8102, %v2200_v32  }
 0x142   : > { %v8736_v37 = vpop.permute.xlu0 %1081 }
 0x143   : > { %v8738_v38 = vpop.permute.xlu1 %1156  ;;  %2353 = vperm.xlu0 %8101, %v2215_v35   ;;  %v2236_v35 = vld [vmem:[#allocation11 + $0x158] sm:$0xff] }
 0x144   : > { %2273 = vperm.xlu1 %8102, %v2199_v36   ;;  %v2235_v36 = vld [vmem:[#allocation11 + $0x150] sm:$0xff] }
 0x146   : > { %v8740_v41 = vpop.permute.xlu0 %1076 }
 0x147   : > { %v8742_v42 = vpop.permute.xlu1 %1151  ;;  %2348 = vperm.xlu0 %8101, %v2214_v39  }
 0x148   : > { %2268 = vperm.xlu1 %8102, %v2198_v40  }
 0x14a   : > { %v8744_v45 = vpop.permute.xlu0 %1071 }
 0x14b   : > { %v8746_v47 = vpop.permute.xlu1 %1146  ;;  %2343 = vperm.xlu0 %8101, %v2213_v43   ;;  %v2234_v43 = vld [vmem:[#allocation11 + $0x148] sm:$0xff] }
 0x14c   : > { %2263 = vperm.xlu1 %8102, %v2197_v44   ;;  %v2233_v44 = vld [vmem:[#allocation11 + $0x140] sm:$0xff] }
 0x14e   : > { %v8749_v54 = vpop.permute.xlu0 %1066 }
 0x14f   : > { %v8751_v55 = vpop.permute.xlu1 %1141  ;;  %2338 = vperm.xlu0 %8101, %v2212_v50  }
 0x150   : > { %2258 = vperm.xlu1 %8102, %v2196_v51   ;;  %v2232_v51 = vld [vmem:[#allocation11 + $0x138] sm:$0xff] }
 0x152   : > { %v8753_v62 = vpop.permute.xlu0 %1061 }
 0x153   : > { %v8755_v63 = vpop.permute.xlu1 %1136  ;;  %2333 = vperm.xlu0 %8101, %v2211_v58   ;;  %v2231_v58 = vld [vmem:[#allocation11 + $0x130] sm:$0xff] }
 0x154   : > { %2253 = vperm.xlu1 %8102, %v2195_v59  }
 0x156   : > { %v8757_v6 = vpop.permute.xlu0 %1056 }
 0x157   : > { %10976 = vst [vmem:[#allocation22_spill] sm:$0xff] %v8757_v6  ;;  %v8759_v7 = vpop.permute.xlu1 %1131  ;;  %2328 = vperm.xlu0 %8101, %v2210_v2  }
 0x158   : > { %10977 = vst [vmem:[#allocation23_spill] sm:$0xff] %v8759_v7  ;;  %2248 = vperm.xlu1 %8102, %v2194_v3   ;;  %v2230_v3 = vld [vmem:[#allocation11 + $0x128] sm:$0xff] }
 0x15a   : > { %v8761_v14 = vpop.permute.xlu0 %1051 }
 0x15b   : > { %10978 = vst [vmem:[#allocation24_spill] sm:$0xff] %v8761_v14  ;;  %v8763_v16 = vpop.permute.xlu1 %1126  ;;  %2323 = vperm.xlu0 %8101, %v2209_v10  }
 0x15c   : > { %10979 = vst [vmem:[#allocation25_spill] sm:$0xff] %v8763_v16  ;;  %2243 = vperm.xlu1 %8102, %v2193_v11   ;;  %v2229_v11 = vld [vmem:[#allocation11 + $0x120] sm:$0xff]  ;;  %v3494_v16 = vld [vmem:[#allocation8 + $0x228] sm:$0xff] }
 0x15e   : > { %v8765_v23 = vpop.permute.xlu0 %1046 }
 0x15f   : > { %10980 = vst [vmem:[#allocation26_spill] sm:$0xff] %v8765_v23  ;;  %v8767_v24 = vpop.permute.xlu1 %1121  ;;  %2478 = vperm.xlu0 %8101, %v2240_v19  }
 0x160   : > { %10981 = vst [vmem:[#allocation27_spill] sm:$0xff] %v8767_v24  ;;  %2473 = vperm.xlu1 %8102, %v2239_v20   ;;  %v3495_v24 = vld [vmem:[#allocation8 + $0x230] sm:$0xff] }
 0x162   : > { %v8769_v31 = vpop.permute.xlu0 %1041 }
 0x163   : > { %10982 = vst [vmem:[#allocation28_spill] sm:$0xff] %v8769_v31  ;;  %v8771_v32 = vpop.permute.xlu1 %1116  ;;  %2468 = vperm.xlu0 %8101, %v2238_v27   ;;  %v3480_v31 = vld [vmem:[#allocation8 + $0x1b8] sm:$0xff] }
 0x164   : > { %10983 = vst [vmem:[#allocation29_spill] sm:$0xff] %v8771_v32  ;;  %2463 = vperm.xlu1 %8102, %v2237_v28   ;;  %v2228_v28 = vld [vmem:[#allocation11 + $0x118] sm:$0xff] }
 0x166   : > { %v8773_v39 = vpop.permute.xlu0 %1036 }
 0x167   : > { %10984 = vst [vmem:[#allocation30_spill] sm:$0xff] %v8773_v39  ;;  %v8775_v40 = vpop.permute.xlu1 %1111  ;;  %2458 = vperm.xlu0 %8101, %v2236_v35  }
 0x168   : > { %10985 = vst [vmem:[#allocation31_spill] sm:$0xff] %v8775_v40  ;;  %2453 = vperm.xlu1 %8102, %v2235_v36   ;;  %v2227_v36 = vld [vmem:[#allocation11 + $0x110] sm:$0xff] }
 0x16a   : > { %v8777_v46 = vpop.permute.xlu0 %1031 }
 0x16b   : > { %10986 = vst [vmem:[#allocation32_spill] sm:$0xff] %v8777_v46  ;;  %v8779_v50 = vpop.permute.xlu1 %1226  ;;  %2448 = vperm.xlu0 %8101, %v2234_v43  }
 0x16c   : > { %10987 = vst [vmem:[#allocation33_spill] sm:$0xff] %v8779_v50  ;;  %2443 = vperm.xlu1 %8102, %v2233_v44  }
 0x16e   : > { %v8781_v59 = vpop.permute.xlu0 %1221 }
 0x16f   : > { %10988 = vst [vmem:[#allocation34_spill] sm:$0xff] %v8781_v59  ;;  %v8783_v2 = vpop.permute.xlu1 %1216  ;;  %2438 = vperm.xlu0 %8101, %v2232_v51  }
 0x170   : > { %10989 = vst [vmem:[#allocation35_spill] sm:$0xff] %v8783_v2  ;;  %2433 = vperm.xlu1 %8102, %v2231_v58   ;;  %v2226_v58 = vld [vmem:[#allocation11 + $0x108] sm:$0xff] }
 0x171   : > { %v8785_v10 = vpop.f32.mrf.mxu0 }
 0x172   : > { %v8787_v19 = vpop.permute.xlu0 %1211 }
 0x173   : > { %10990 = vst [vmem:[#allocation36_spill] sm:$0xff] %v8787_v19  ;;  %v8789_v20 = vpop.permute.xlu1 %1206  ;;  %v7229_v27 = vpop.f32.mrf.mxu0  ;;  %2428 = vperm.xlu0 %8101, %v2230_v3   ;;  %v2225_v19 = vld [vmem:[#allocation11 + $0x100] sm:$0xff] }
 0x174   : > { %10991 = vst [vmem:[#allocation37_spill] sm:$0xff] %v8789_v20  ;;  %2423 = vperm.xlu1 %8102, %v2229_v11   ;;  %v3332_v11 = vld [vmem:[%s10903_s10 + $0x70] sm:$0xff] }
 0x175   : > { %v8791_v35 = vpop.f32.mrf.mxu0 }
 0x176   : > { %v8793_v43 = vpop.permute.xlu0 %1201 }
 0x177   : > { %10992 = vst [vmem:[#allocation38_spill] sm:$0xff] %v8793_v43  ;;  %v8795_v44 = vpop.permute.xlu1 %1196  ;;  %v7232_v51 = vpop.f32.mrf.mxu0  ;;  %2418 = vperm.xlu0 %8101, %v2228_v28   ;;  %v3331_v28 = vld [vmem:[%s10903_s10 + $0x68] sm:$0xff] }
 0x178   : > { %10993 = vst [vmem:[#allocation39_spill] sm:$0xff] %v8795_v44  ;;  %2413 = vperm.xlu1 %8102, %v2227_v36  }
 0x179   : > { %v8797_v15 = vpop.f32.mrf.mxu0 }
 0x17a   : > { %v8799_v2 = vpop.permute.xlu0 %1191 }
 0x17b   : > { %10994 = vst [vmem:[#allocation40_spill] sm:$0xff] %v8799_v2  ;;  %v8801_v27 = vpop.permute.xlu1 %2127  ;;  %v7235_v3 = vpop.f32.mrf.mxu0  ;;  %2408 = vperm.xlu0 %8101, %v2226_v58  }
 0x17c   : > { %10995 = vst [vmem:[#allocation41_spill] sm:$0xff] %v8801_v27  ;;  %2403 = vperm.xlu1 %8102, %v2225_v19   ;;  %v3330_v19 = vld [vmem:[%s10903_s10 + $0x60] sm:$0xff]  ;;  %v3329_v3 = vld [vmem:[%s10903_s10 + $0x58] sm:$0xff] }
 0x17d   : > { %v8806_v43 = vpop.f32.mrf.mxu0 }
 0x17e   : > { %v8811_v36 = vpop.permute.xlu0 %2122 }
 0x17f   : > { %10996 = vst [vmem:[#allocation42_spill] sm:$0xff] %v8811_v36  ;;  %v8813_v51 = vpop.permute.xlu1 %2117  ;;  %v7238_v2 = vpop.f32.mrf.mxu0  ;;  %3405 = vperm.xlu0 %8101, %v3332_v11  }
 0x180   : > { %10997 = vst [vmem:[#allocation43_spill] sm:$0xff] %v8813_v51  ;;  %3400 = vperm.xlu1 %8102, %v3331_v28   ;;  %v3328_v2 = vld [vmem:[%s10903_s10 + $0x50] sm:$0xff]  ;;  %v3327_v28 = vld [vmem:[%s10903_s10 + $0x48] sm:$0xff] }
 0x181   : > { %v8818_v58 = vpop.f32.mrf.mxu0 }
 0x182   : > { %v8823_v27 = vpop.permute.xlu0 %2112 }
 0x183   : > { %10998 = vst [vmem:[#allocation44_spill] sm:$0xff] %v8823_v27  ;;  %v8825_v44 = vpop.permute.xlu1 %2107  ;;  %v7241_v36 = vpop.f32.mrf.mxu0  ;;  %3395 = vperm.xlu0 %8101, %v3330_v19  }
 0x184   : > { %10999 = vst [vmem:[#allocation45_spill] sm:$0xff] %v8825_v44  ;;  %3390 = vperm.xlu1 %8102, %v3329_v3   ;;  %v3326_v36 = vld [vmem:[%s10903_s10 + $0x40] sm:$0xff]  ;;  %v3325_v3 = vld [vmem:[%s10903_s10 + $0x38] sm:$0xff] }
 0x185   : > { %v8830_v11 = vpop.f32.mrf.mxu0 }
 0x186   : > { %v8835_v51 = vpop.permute.xlu0 %2102 }
 0x187   : > { %11000 = vst [vmem:[#allocation46_spill] sm:$0xff] %v8835_v51  ;;  %v8837_v20 = vpop.permute.xlu1 %2097  ;;  %v7244_v27 = vpop.f32.mrf.mxu0  ;;  %3385 = vperm.xlu0 %8101, %v3328_v2  }
 0x188   : > { %11001 = vst [vmem:[#allocation47_spill] sm:$0xff] %v8837_v20  ;;  %3380 = vperm.xlu1 %8102, %v3327_v28   ;;  %v3324_v27 = vld [vmem:[%s10903_s10 + $0x30] sm:$0xff]  ;;  %v3323_v28 = vld [vmem:[%s10903_s10 + $0x28] sm:$0xff] }
 0x189   : > { %v8842_v19 = vpop.f32.mrf.mxu0 }
 0x18a   : > { %v8847_v44 = vpop.permute.xlu0 %2092 }
 0x18b   : > { %11002 = vst [vmem:[#allocation48_spill] sm:$0xff] %v8847_v44  ;;  %v8849_v59 = vpop.permute.xlu1 %2087  ;;  %v7247_v51 = vpop.f32.mrf.mxu0  ;;  %3375 = vperm.xlu0 %8101, %v3326_v36  }
 0x18c   : > { %11003 = vst [vmem:[#allocation49_spill] sm:$0xff] %v8849_v59  ;;  %3370 = vperm.xlu1 %8102, %v3325_v3   ;;  %v3322_v51 = vld [vmem:[%s10903_s10 + $0x20] sm:$0xff]  ;;  %v3321_v3 = vld [vmem:[%s10903_s10 + $0x18] sm:$0xff] }
 0x18d   : > { %v8854_v2 = vpop.f32.mrf.mxu0 }
 0x18e   : > { %v8859_v20 = vpop.permute.xlu0 %2082 }
 0x18f   : > { %11004 = vst [vmem:[#allocation50_spill] sm:$0xff] %v8859_v20  ;;  %v8861_v50 = vpop.permute.xlu1 %2077  ;;  %v7250_v44 = vpop.f32.mrf.mxu0  ;;  %3365 = vperm.xlu0 %8101, %v3324_v27  }
 0x190   : > { %11005 = vst [vmem:[#allocation51_spill] sm:$0xff] %v8861_v50  ;;  %3360 = vperm.xlu1 %8102, %v3323_v28   ;;  %v3320_v44 = vld [vmem:[%s10903_s10 + $0x10] sm:$0xff]  ;;  %v3319_v28 = vld [vmem:[%s10903_s10 + $0x8] sm:$0xff] }
 0x191   : > { %v8866_v36 = vpop.f32.mrf.mxu0 }
 0x192   : > { %v8871_v59 = vpop.permute.xlu0 %2072 }
 0x193   : > { %11006 = vst [vmem:[#allocation52_spill] sm:$0xff] %v8871_v59  ;;  %v8873_v46 = vpop.permute.xlu1 %2067  ;;  %v7253_v20 = vpop.f32.mrf.mxu0  ;;  %3355 = vperm.xlu0 %8101, %v3322_v51  }
 0x194   : > { %11007 = vst [vmem:[#allocation53_spill] sm:$0xff] %v8873_v46  ;;  %3350 = vperm.xlu1 %8102, %v3321_v3   ;;  %v3318_v20 = vld [vmem:[%s10903_s10] sm:$0xff]  ;;  %v3496_v3 = vld [vmem:[#allocation8 + $0x238] sm:$0xff] }
 0x195   : > { %v8878_v27 = vpop.f32.mrf.mxu0 }
 0x196   : > { %v8883_v50 = vpop.permute.xlu0 %2062 }
 0x197   : > { %11008 = vst [vmem:[#allocation54_spill] sm:$0xff] %v8883_v50  ;;  %v8885_v40 = vpop.permute.xlu1 %2057  ;;  %v7256_v59 = vpop.f32.mrf.mxu0  ;;  %3345 = vperm.xlu0 %8101, %v3320_v44  }
 0x198   : > { %11009 = vst [vmem:[#allocation55_spill] sm:$0xff] %v8885_v40  ;;  %3340 = vperm.xlu1 %8102, %v3319_v28   ;;  %v3479_v28 = vld [vmem:[#allocation8 + $0x1b0] sm:$0xff] }
 0x199   : > { %v910_v51 = vpop.f32.mrf.mxu0 }
 0x19a   : > { %v8890_v46 = vpop.permute.xlu0 %2398 }
 0x19b   : > { %11010 = vst [vmem:[#allocation56_spill] sm:$0xff] %v8890_v46  ;;  %v8892_v39 = vpop.permute.xlu1 %2318  ;;  %v7259_v32 = vpop.f32.mrf.mxu0  ;;  %3335 = vperm.xlu0 %8101, %v3318_v20   ;;  %v3478_v20 = vld [vmem:[#allocation8 + $0x1a8] sm:$0xff] }
 0x19c   : > { %11011 = vst [vmem:[#allocation57_spill] sm:$0xff] %v8892_v39  ;;  %3662 = vperm.xlu1 %8102, %v3496_v3   ;;  %v3493_v39 = vld [vmem:[#allocation8 + $0x220] sm:$0xff] }
 0x19d   : > { %v915_v50 = vpop.f32.mrf.mxu0 }
 0x19e   : > { %v8894_v40 = vpop.permute.xlu0 %2393 }
 0x19f   : > { %11012 = vst [vmem:[#allocation58_spill] sm:$0xff] %v8894_v40  ;;  %v8896_v59 = vpop.permute.xlu1 %2313  ;;  %v7262_v44 = vpop.f32.mrf.mxu0  ;;  %3582 = vperm.xlu0 %8101, %v3480_v31  }
 0x1a0   : > { %11013 = vst [vmem:[#allocation59_spill] sm:$0xff] %v8896_v59  ;;  %3657 = vperm.xlu1 %8102, %v3495_v24   ;;  %v3477_v24 = vld [vmem:[#allocation8 + $0x1a0] sm:$0xff]  ;;  %v3492_v59 = vld [vmem:[#allocation8 + $0x218] sm:$0xff] }
 0x1a1   : > { %v920_v23 = vpop.f32.mrf.mxu0 }
 0x1a2   : > { %v8898_v14 = vpop.permute.xlu0 %2388 }
 0x1a3   : > { %11014 = vst [vmem:[#allocation60_spill] sm:$0xff] %v8898_v14  ;;  %v8900_v46 = vpop.permute.xlu1 %2308  ;;  %v7265_v32 = vpop.f32.mrf.mxu0  ;;  %3577 = vperm.xlu0 %8101, %v3479_v28  }
 0x1a4   : > { %11015 = vst [vmem:[#allocation61_spill] sm:$0xff] %v8900_v46  ;;  %3652 = vperm.xlu1 %8102, %v3494_v16  }
 0x1a5   : > { %v925_v3 = vpop.f32.mrf.mxu0 }
 0x1a6   : > { %v8902_v7 = vpop.permute.xlu0 %2383  ;;  %v926_v14 = vadd.f32 %v925_v3, %v8676_v52  ;;  %v911_v52 = vadd.f32 %v910_v51, %v8686_v56  ;;  %v901_v56 = vadd.f32 %v8866_v36, %v8696_v60  ;;  %v3474_v51 = vld [vmem:[#allocation8 + $0x188] sm:$0xff]  ;;  %v891_v60 = vadd.f32 %v8842_v19, %v8700_v0 }
 0x1a7   : > { %11016 = vst [vmem:[#allocation62_spill] sm:$0xff] %v8902_v7  ;;  %v8904_v40 = vpop.permute.xlu1 %2303  ;;  %v7268_v44 = vpop.f32.mrf.mxu0  ;;  %3572 = vperm.xlu0 %8101, %v3478_v20   ;;  %v921_v7 = vadd.f32 %v920_v23, %v8668_v49  ;;  %v3476_v20 = vld [vmem:[#allocation8 + $0x198] sm:$0xff]  ;;  %v3475_v23 = vld [vmem:[#allocation8 + $0x190] sm:$0xff]  ;;  %v881_v0 = vadd.f32 %v8818_v58, %v8704_v4  ;;  %v871_v4 = vadd.f32 %v8797_v15, %v8708_v8 }
 0x1a8   : > { %11017 = vst [vmem:[#allocation63_spill] sm:$0xff] %v8904_v40  ;;  %3647 = vperm.xlu1 %8102, %v3493_v39   ;;  %v3491_v39 = vld [vmem:[#allocation8 + $0x210] sm:$0xff]  ;;  %v916_v44 = vadd.f32 %v915_v50, %v8678_v53  ;;  %v8916_v40 = vmax.f32 %v926_v14, 0.0  ;;  %v3490_v53 = vld [vmem:[#allocation8 + $0x208] sm:$0xff]  ;;  %v906_v14 = vadd.f32 %v8878_v27, %v8688_v57  ;;  %v3489_v57 = vld [vmem:[#allocation8 + $0x200] sm:$0xff]  ;;  %v896_v27 = vadd.f32 %v8854_v2, %v8698_v61 }
 0x1a9   : > { %v930_v31 = vpop.f32.mrf.mxu0  ;;  %v8923_v3 = vmax.f32 %v921_v7, 0.0  ;;  %v8939_v7 = vmax.f32 %v911_v52, 0.0  ;;  %v8953_v36 = vmax.f32 %v901_v56, 0.0  ;;  %v3488_v61 = vld [vmem:[#allocation8 + $0x1f8] sm:$0xff]  ;;  %v886_v2 = vadd.f32 %v8830_v11, %v8702_v1  ;;  %v3487_v1 = vld [vmem:[#allocation8 + $0x1f0] sm:$0xff] }
 0x1aa   : > { %v931_v46 = vadd.f32 %v930_v31, %v8666_v48  ;;  %v8908_v32 = vpop.permute.xlu0 %2378  ;;  %11021 = vst [vmem:[#allocation67_spill] sm:$0xff] %v8916_v40  ;;  %v3473_v31 = vld [vmem:[#allocation8 + $0x180] sm:$0xff]  ;;  %v8967_v19 = vmax.f32 %v891_v60, 0.0  ;;  %v876_v11 = vadd.f32 %v8806_v43, %v8706_v5  ;;  %v8983_v58 = vmax.f32 %v881_v0, 0.0  ;;  %v3486_v5 = vld [vmem:[#allocation8 + $0x1e8] sm:$0xff]  ;;  %v3503_v0 = vld [vmem:[#allocation8 + $0x270] sm:$0xff] }
 0x1ab   : > { %11018 = vst [vmem:[#allocation64_spill] sm:$0xff] %v8908_v32  ;;  %v8910_v16 = vpop.permute.xlu1 %2298  ;;  %v7271_v28 = vpop.f32.mrf.mxu0  ;;  %3567 = vperm.xlu0 %8101, %v3477_v24   ;;  %11023 = vst [vmem:[#allocation69_spill] sm:$0xff] %v8923_v3  ;;  %v8975_v52 = vmax.f32 %v886_v2, 0.0  ;;  %v866_v43 = vadd.f32 %v8791_v35, %v8710_v9  ;;  %v861_v15 = vadd.f32 %v8785_v10, %v8712_v12  ;;  %v8997_v8 = vmax.f32 %v871_v4, 0.0  ;;  %v3504_v9 = vld [vmem:[#allocation8 + $0x278] sm:$0xff]  ;;  %v3485_v10 = vld [vmem:[#allocation8 + $0x1e0] sm:$0xff] }
 0x1ac   : > { %11019 = vst [vmem:[#allocation65_spill] sm:$0xff] %v8910_v16  ;;  %v8913_v6 = vmax.f32 %v931_v46, 0.0  ;;  %3642 = vperm.xlu1 %8102, %v3492_v59   ;;  %v8931_v46 = vmax.f32 %v916_v44, 0.0  ;;  %11027 = vst [vmem:[#allocation73_spill] sm:$0xff] %v8939_v7  ;;  %v8945_v59 = vmax.f32 %v906_v14, 0.0  ;;  %v3472_v44 = vld [vmem:[#allocation8 + $0x178] sm:$0xff] }
 0x1ad   : > { %11030 = vst [vmem:[#allocation76_spill] sm:$0xff] %v8953_v36  ;;  %11033 = vst [vmem:[#allocation79_spill] sm:$0xff] %v8967_v19  ;;  %v8989_v14 = vmax.f32 %v876_v11, 0.0  ;;  %v9003_v35 = vmax.f32 %v866_v43, 0.0  ;;  %v3469_v60 = vld [vmem:[#allocation8 + $0x160] sm:$0xff]  ;;  %v3502_v43 = vld [vmem:[#allocation8 + $0x268] sm:$0xff] }
 0x1ae   : > { %11020 = vst [vmem:[#allocation66_spill] sm:$0xff] %v8913_v6  ;;  %7272 = vmatprep.subr.mxu1 %v8913_v6  ;;  %v8919_v48 = vpop.permute.xlu0 %2373  ;;  %11025 = vst [vmem:[#allocation71_spill] sm:$0xff] %v8931_v46  ;;  %v953_v4 = vld [vmem:[#allocation7 + $0x20] sm:$0xff] }
 0x1af   : > { %11022 = vst [vmem:[#allocation68_spill] sm:$0xff] %v8919_v48  ;;  %7273 = vmatpush3.msra.mxu1 %v8913_v6  ;;  %3562 = vperm.xlu0 %8101, %v3476_v20   ;;  %v8925_v49 = vpop.permute.xlu1 %2293  ;;  %11028 = vst [vmem:[#allocation74_spill] sm:$0xff] %v8945_v59  ;;  %v8961_v20 = vmax.f32 %v896_v27, 0.0  ;;  %v9007_v27 = vmax.f32 %v861_v15, 0.0  ;;  %v954_v15 = vld [vmem:[#allocation7 + $0x28] sm:$0xff] }
 0x1b0   : > { %11024 = vst [vmem:[#allocation70_spill] sm:$0xff] %v8925_v49  ;;  %3637 = vperm.xlu1 %8102, %v3491_v39   ;;  %7274 = vmatprep.subr.mxu1 %v8916_v40  ;;  %11035 = vst [vmem:[#allocation81_spill] sm:$0xff] %v8975_v52 }
 0x1b1   : > { %7275 = vmatpush3.msra.mxu1 %v8916_v40  ;;  %11032 = vst [vmem:[#allocation78_spill] sm:$0xff] %v8961_v20  ;;  %11037 = vst [vmem:[#allocation83_spill] sm:$0xff] %v8983_v58 }
 0x1b2   : > { %7276 = vmatprep.subr.mxu1 %v8923_v3  ;;  %v8934_v50 = vpop.permute.xlu0 %2368  ;;  %11038 = vst [vmem:[#allocation84_spill] sm:$0xff] %v8989_v14  ;;  %11040 = vst [vmem:[#allocation86_spill] sm:$0xff] %v8997_v8 }
 0x1b3   : > { %11026 = vst [vmem:[#allocation72_spill] sm:$0xff] %v8934_v50  ;;  %7277 = vmatpush3.msra.mxu1 %v8923_v3  ;;  %3557 = vperm.xlu0 %8101, %v3475_v23   ;;  %v8947_v24 = vpop.permute.xlu1 %2288  ;;  %11042 = vst [vmem:[#allocation88_spill] sm:$0xff] %v9003_v35 }
 0x1b4   : > { %3632 = vperm.xlu1 %8102, %v3490_v53   ;;  %7278 = vmatprep.subr.mxu1 %v8931_v46  ;;  %11029 = vst [vmem:[#allocation75_spill] sm:$0xff] %v8947_v24  ;;  %v3471_v53 = vld [vmem:[#allocation8 + $0x170] sm:$0xff]  ;;  %11043 = vst [vmem:[#allocation89_spill] sm:$0xff] %v9007_v27 }
 0x1b5   : > { %7279 = vmatpush3.msra.mxu1 %v8931_v46 }
 0x1b6   : > { %7280 = vmatprep.subr.mxu1 %v8939_v7  ;;  %v8956_v28 = vpop.permute.xlu0 %2363 }
 0x1b7   : > { %7281 = vmatpush3.msra.mxu1 %v8939_v7  ;;  %3552 = vperm.xlu0 %8101, %v3474_v51   ;;  %11031 = vst [vmem:[#allocation77_spill] sm:$0xff] %v8956_v28  ;;  %v8969_v39 = vpop.permute.xlu1 %2283  ;;  %v3470_v51 = vld [vmem:[#allocation8 + $0x168] sm:$0xff] }
 0x1b8   : > { %3627 = vperm.xlu1 %8102, %v3489_v57   ;;  %7282 = vmatprep.subr.mxu1 %v8945_v59  ;;  %11034 = vst [vmem:[#allocation80_spill] sm:$0xff] %v8969_v39 }
 0x1b9   : > { %7283 = vmatpush3.msra.mxu1 %v8945_v59 }
 0x1ba   : > { %7284 = vmatprep.subr.mxu1 %v8953_v36  ;;  %v8978_v23 = vpop.permute.xlu0 %2358 }
 0x1bb   : > { %7285 = vmatpush3.msra.mxu1 %v8953_v36  ;;  %3547 = vperm.xlu0 %8101, %v3473_v31   ;;  %11036 = vst [vmem:[#allocation82_spill] sm:$0xff] %v8978_v23  ;;  %v8991_v56 = vpop.permute.xlu1 %2278  ;;  %v950_v31 = vld [vmem:[#allocation7 + $0x8] sm:$0xff] }
 0x1bc   : > { %3622 = vperm.xlu1 %8102, %v3488_v61   ;;  %7286 = vmatprep.subr.mxu1 %v8961_v20  ;;  %11039 = vst [vmem:[#allocation85_spill] sm:$0xff] %v8991_v56  ;;  %v951_v61 = vld [vmem:[#allocation7 + $0x10] sm:$0xff] }
 0x1bd   : > { %7287 = vmatpush3.msra.mxu1 %v8961_v20 }
 0x1be   : > { %7288 = vmatprep.subr.mxu1 %v8967_v19  ;;  %v9000_v57 = vpop.permute.xlu0 %2353 }
 0x1bf   : > { %7289 = vmatpush3.msra.mxu1 %v8967_v19  ;;  %3542 = vperm.xlu0 %8101, %v3472_v44   ;;  %11041 = vst [vmem:[#allocation87_spill] sm:$0xff] %v9000_v57  ;;  %v9009_v12 = vpop.permute.xlu1 %2273  ;;  %v3484_v44 = vld [vmem:[#allocation8 + $0x1d8] sm:$0xff] }
 0x1c0   : > { %3617 = vperm.xlu1 %8102, %v3487_v1   ;;  %7290 = vmatprep.subr.mxu1 %v8975_v52  ;;  %11044 = vst [vmem:[#allocation90_spill] sm:$0xff] %v9009_v12  ;;  %v952_v1 = vld [vmem:[#allocation7 + $0x18] sm:$0xff] }
 0x1c1   : > { %7291 = vmatpush3.msra.mxu1 %v8975_v52 }
 0x1c2   : > { %7292 = vmatprep.subr.mxu1 %v8983_v58  ;;  %v9014_v2 = vpop.permute.xlu0 %2348 }
 0x1c3   : > { %7293 = vmatpush3.msra.mxu1 %v8983_v58  ;;  %3537 = vperm.xlu0 %8101, %v3471_v53   ;;  %11045 = vst [vmem:[#allocation91_spill] sm:$0xff] %v9014_v2  ;;  %v9019_v11 = vpop.permute.xlu1 %2268  ;;  %v3468_v53 = vld [vmem:[#allocation8 + $0x158] sm:$0xff] }
 0x1c4   : > { %3612 = vperm.xlu1 %8102, %v3486_v5   ;;  %7294 = vmatprep.subr.mxu1 %v8989_v14  ;;  %11046 = vst [vmem:[#allocation92_spill] sm:$0xff] %v9019_v11 }
 0x1c5   : > { %7295 = vmatpush3.msra.mxu1 %v8989_v14 }
 0x1c6   : > { %7296 = vmatprep.subr.mxu1 %v8997_v8  ;;  %v9022_v5 = vpop.permute.xlu0 %2343 }
 0x1c7   : > { %7297 = vmatpush3.msra.mxu1 %v8997_v8  ;;  %3532 = vperm.xlu0 %8101, %v3470_v51   ;;  %11047 = vst [vmem:[#allocation93_spill] sm:$0xff] %v9022_v5  ;;  %v955_v51 = vld [vmem:[#allocation7 + $0x30] sm:$0xff] }
 0x1c8   : > { %3702 = vperm.xlu1 %8102, %v3504_v9   ;;  %7298 = vmatprep.subr.mxu1 %v9003_v35  ;;  %v9025_v9 = vpop.permute.xlu1 %2263 }
 0x1c9   : > { %7299 = vmatpush3.msra.mxu1 %v9003_v35  ;;  %11048 = vst [vmem:[#allocation94_spill] sm:$0xff] %v9025_v9 }
 0x1ca   : > { %7300 = vmatprep.subr.mxu1 %v9007_v27 }
 0x1cb   : > { %7301 = vmatpush3.msra.mxu1 %v9007_v27  ;;  %3607 = vperm.xlu0 %8101, %v3485_v10   ;;  %v3483_v10 = vld [vmem:[#allocation8 + $0x1d0] sm:$0xff] }
 0x1cc   : > { %3527 = vperm.xlu1 %8102, %v3469_v60   ;;  %7303 = vmatmul.mubr.msk.f32.vlgmr.msra.gmra.mxu1 %vm748_vm1, %v950_v31  ;;  %v3467_v60 = vld [vmem:[#allocation8 + $0x150] sm:$0xff]  ;;  %v956_v31 = vld [vmem:[#allocation7 + $0x38] sm:$0xff] }
 0x1cd   : > { %7305 = vmatprep.mubr.msk.f32.mxu1 %vm748_vm1, %v951_v61  ;;  %v957_v61 = vld [vmem:[#allocation7 + $0x40] sm:$0xff] }
 0x1cf   : > { %3697 = vperm.xlu0 %8101, %v3503_v0   ;;  %v9029_v0 = vpop.permute.xlu0 %2338 }
 0x1d0   : > { %3602 = vperm.xlu1 %8102, %v3484_v44   ;;  %7306 = vmatmul.mubr.msk.f32.gmra.mxu1 %vm748_vm1, %v952_v1  ;;  %11049 = vst [vmem:[#allocation95_spill] sm:$0xff] %v9029_v0  ;;  %v3501_v44 = vld [vmem:[#allocation8 + $0x260] sm:$0xff]  ;;  %v3482_v1 = vld [vmem:[#allocation8 + $0x1c8] sm:$0xff] }
 0x1d1   : > { %7308 = vmatprep.mubr.msk.f32.mxu1 %vm748_vm1, %v953_v4  ;;  %v958_v4 = vld [vmem:[#allocation7 + $0x48] sm:$0xff] }
 0x1d3   : > { %3522 = vperm.xlu0 %8101, %v3468_v53   ;;  %v9033_v53 = vpop.permute.xlu1 %2258 }
 0x1d4   : > { %3692 = vperm.xlu1 %8102, %v3502_v43   ;;  %7309 = vmatmul.mubr.msk.f32.gmra.mxu1 %vm748_vm1, %v954_v15  ;;  %11050 = vst [vmem:[#allocation96_spill] sm:$0xff] %v9033_v53  ;;  %v959_v43 = vld [vmem:[#allocation7 + $0x50] sm:$0xff]  ;;  %v3466_v15 = vld [vmem:[#allocation8 + $0x148] sm:$0xff] }
 0x1d5   : > { %7311 = vmatprep.mubr.msk.f32.mxu1 %vm748_vm1, %v955_v51  ;;  %v9036_v51 = vpop.permute.xlu0 %2333 }
 0x1d6   : > { %11051 = vst [vmem:[#allocation97_spill] sm:$0xff] %v9036_v51 }
 0x1d7   : > { %3597 = vperm.xlu0 %8101, %v3483_v10   ;;  %v3500_v10 = vld [vmem:[#allocation8 + $0x258] sm:$0xff]  ;;  %v9039_v0 = vpop.permute.xlu1 %2253 }
 0x1d8   : > { %3517 = vperm.xlu1 %8102, %v3467_v60   ;;  %7312 = vmatmul.mubr.msk.f32.gmra.mxu1 %vm748_vm1, %v956_v31  ;;  %v960_v60 = vld [vmem:[#allocation7 + $0x58] sm:$0xff]  ;;  %v961_v31 = vld [vmem:[#allocation7 + $0x60] sm:$0xff]  ;;  %11052 = vst [vmem:[#allocation98_spill] sm:$0xff] %v9039_v0 }
 0x1d9   : > { %7314 = vmatprep.mubr.msk.f32.mxu1 %vm748_vm1, %v957_v61  ;;  %v3481_v61 = vld [vmem:[#allocation8 + $0x1c0] sm:$0xff]  ;;  %v9043_v53 = vpop.permute.xlu0 %2328  ;;  %v964_v0 = vld [vmem:[#allocation7 + $0x78] sm:$0xff] }
 0x1da   : > { %11053 = vst [vmem:[#allocation99_spill] sm:$0xff] %v9043_v53 }
 0x1db   : > { %3687 = vperm.xlu0 %8101, %v3501_v44   ;;  %v3465_v44 = vld [vmem:[#allocation8 + $0x140] sm:$0xff] }
 0x1dc   : > { %3592 = vperm.xlu1 %8102, %v3482_v1   ;;  %7315 = vmatmul.mubr.msk.f32.gmra.mxu1 %vm748_vm1, %v958_v4  ;;  %v962_v1 = vld [vmem:[#allocation7 + $0x68] sm:$0xff]  ;;  %v963_v4 = vld [vmem:[#allocation7 + $0x70] sm:$0xff] }
 0x1dd   : > { %7317 = vmatprep.mubr.msk.f32.mxu1 %vm748_vm1, %v959_v43  ;;  %v3499_v43 = vld [vmem:[#allocation8 + $0x250] sm:$0xff]  ;;  %v9050_v51 = vpop.permute.xlu0 %2323 }
 0x1de   : > { %11055 = vst [vmem:[#allocation101_spill] sm:$0xff] %v9050_v51 }
 0x1df   : > { %3512 = vperm.xlu0 %8101, %v3466_v15   ;;  %v3498_v15 = vld [vmem:[#allocation8 + $0x248] sm:$0xff] }
 0x1e0   : > { %3682 = vperm.xlu1 %8102, %v3500_v10   ;;  %7318 = vmatmul.mubr.msk.f32.gmra.mxu1 %vm748_vm1, %v960_v60  ;;  %v9047_v10 = vpop.permute.xlu1 %2248  ;;  %v965_v60 = vld [vmem:[#allocation7 + $0x80] sm:$0xff] }
 0x1e1   : > { %7320 = vmatprep.mubr.msk.f32.mxu1 %vm748_vm1, %v961_v31  ;;  %11054 = vst [vmem:[#allocation100_spill] sm:$0xff] %v9047_v10  ;;  %v3497_v31 = vld [vmem:[#allocation8 + $0x240] sm:$0xff]  ;;  %v9066_v51 = vpop.permute.xlu0 %2478 }
 0x1e2   : > { %11057 = vst [vmem:[#allocation103_spill] sm:$0xff] %v9066_v51  ;;  %v973_v51 = vld [vmem:[#allocation7 + $0xc0] sm:$0xff] }
 0x1e3   : > { %3587 = vperm.xlu0 %8101, %v3481_v61   ;;  %v6380_v61 = vld [vmem:[%s10899_s6 + $0xe8] sm:$0xff]  ;;  %v4702_v10 = vld [vmem:[#allocation11 + $0x270] sm:$0xff] }
 0x1e4   : > { %3507 = vperm.xlu1 %8102, %v3465_v44   ;;  %7321 = vmatmul.mubr.msk.f32.gmra.mxu1 %vm748_vm1, %v962_v1  ;;  %v966_v44 = vld [vmem:[#allocation7 + $0x88] sm:$0xff]  ;;  %v967_v1 = vld [vmem:[#allocation7 + $0x90] sm:$0xff] }
 0x1e5   : > { %7323 = vmatprep.mubr.msk.f32.mxu1 %vm748_vm1, %v963_v4  ;;  %v9056_v4 = vpop.permute.xlu1 %2243 }
 0x1e6   : > { %11056 = vst [vmem:[#allocation102_spill] sm:$0xff] %v9056_v4  ;;  %v971_v4 = vld [vmem:[#allocation7 + $0xb0] sm:$0xff] }
 0x1e7   : > { %3677 = vperm.xlu0 %8101, %v3499_v43   ;;  %v6378_v43 = vld [vmem:[%s10899_s6 + $0xd8] sm:$0xff] }
 0x1e8   : > { %3672 = vperm.xlu1 %8102, %v3498_v15   ;;  %7324 = vmatmul.mubr.msk.f32.gmra.mxu1 %vm748_vm1, %v964_v0  ;;  %v6379_v0 = vld [vmem:[%s10899_s6 + $0xe0] sm:$0xff]  ;;  %v968_v15 = vld [vmem:[#allocation7 + $0x98] sm:$0xff] }
 0x1e9   : > { %7326 = vmatprep.mubr.msk.f32.mxu1 %vm748_vm1, %v965_v60  ;;  %v969_v60 = vld [vmem:[#allocation7 + $0xa0] sm:$0xff] }
 0x1eb   : > { %3667 = vperm.xlu0 %8101, %v3497_v31   ;;  %v6377_v31 = vld [vmem:[%s10899_s6 + $0xd0] sm:$0xff] }
 0x1ec   : > { %4604 = vperm.xlu1 %8102, %v6380_v61   ;;  %7327 = vmatmul.mubr.msk.f32.gmra.mxu1 %vm748_vm1, %v966_v44  ;;  %v6376_v61 = vld [vmem:[%s10899_s6 + $0xc8] sm:$0xff] }
 0x1ed   : > { %7329 = vmatprep.mubr.msk.f32.mxu1 %vm748_vm1, %v967_v1  ;;  %v970_v44 = vld [vmem:[#allocation7 + $0xa8] sm:$0xff]  ;;  %v9076_v1 = vpop.permute.xlu1 %2473 }
 0x1ee   : > { %11058 = vst [vmem:[#allocation104_spill] sm:$0xff] %v9076_v1 }
 0x1ef   : > { %4599 = vperm.xlu0 %8101, %v6379_v0   ;;  %v6375_v0 = vld [vmem:[%s10899_s6 + $0xc0] sm:$0xff] }
 0x1f0   : > { %4594 = vperm.xlu1 %8102, %v6378_v43   ;;  %7330 = vmatmul.mubr.msk.f32.gmra.mxu1 %vm748_vm1, %v968_v15  ;;  %v9082_v43 = vpop.permute.xlu0 %2468  ;;  %v6374_v15 = vld [vmem:[%s10899_s6 + $0xb8] sm:$0xff] }
 0x1f1   : > { %7332 = vmatprep.mubr.msk.f32.mxu1 %vm748_vm1, %v969_v60  ;;  %11059 = vst [vmem:[#allocation105_spill] sm:$0xff] %v9082_v43  ;;  %v972_v60 = vld [vmem:[#allocation7 + $0xb8] sm:$0xff]  ;;  %v9088_v1 = vpop.permute.xlu1 %2463 }
 0x1f2   : > { %11060 = vst [vmem:[#allocation106_spill] sm:$0xff] %v9088_v1  ;;  %v977_v1 = vld [vmem:[#allocation7 + $0xe0] sm:$0xff] }
 0x1f3   : > { %4589 = vperm.xlu0 %8101, %v6377_v31   ;;  %v6373_v31 = vld [vmem:[%s10899_s6 + $0xb0] sm:$0xff] }
 0x1f4   : > { %4584 = vperm.xlu1 %8102, %v6376_v61   ;;  %7333 = vmatmul.mubr.msk.f32.gmra.mxu1 %vm748_vm1, %v970_v44  ;;  %v974_v61 = vld [vmem:[#allocation7 + $0xc8] sm:$0xff]  ;;  %v975_v44 = vld [vmem:[#allocation7 + $0xd0] sm:$0xff]  ;;  %v9098_v43 = vpop.permute.xlu0 %2458 }
 0x1f5   : > { %7335 = vmatprep.mubr.msk.f32.mxu1 %vm748_vm1, %v971_v4  ;;  %v6372_v4 = vld [vmem:[%s10899_s6 + $0xa8] sm:$0xff]  ;;  %11061 = vst [vmem:[#allocation107_spill] sm:$0xff] %v9098_v43  ;;  %v979_v43 = vld [vmem:[#allocation7 + $0xf0] sm:$0xff] }
 0x1f7   : > { %4579 = vperm.xlu0 %8101, %v6375_v0   ;;  %v6371_v0 = vld [vmem:[%s10899_s6 + $0xa0] sm:$0xff] }
 0x1f8   : > { %4574 = vperm.xlu1 %8102, %v6374_v15   ;;  %7336 = vmatmul.mubr.msk.f32.gmra.mxu1 %vm748_vm1, %v972_v60  ;;  %v976_v15 = vld [vmem:[#allocation7 + $0xd8] sm:$0xff]  ;;  %v9108_v60 = vpop.permute.xlu1 %2453 }
 0x1f9   : > { %7338 = vmatprep.mubr.msk.f32.mxu1 %vm748_vm1, %v973_v51  ;;  %v6370_v51 = vld [vmem:[%s10899_s6 + $0x98] sm:$0xff]  ;;  %11062 = vst [vmem:[#allocation108_spill] sm:$0xff] %v9108_v60 }
 0x1fb   : > { %4569 = vperm.xlu0 %8101, %v6373_v31   ;;  %v6369_v31 = vld [vmem:[%s10899_s6 + $0x90] sm:$0xff] }
 0x1fc   : > { %4564 = vperm.xlu1 %8102, %v6372_v4   ;;  %7339 = vmatmul.mubr.msk.f32.gmra.mxu1 %vm748_vm1, %v974_v61  ;;  %v9114_v4 = vpop.permute.xlu0 %2448  ;;  %v6368_v61 = vld [vmem:[%s10899_s6 + $0x88] sm:$0xff]  ;;  %v9120_v60 = vpop.permute.xlu1 %2443 }
 0x1fd   : > { %7341 = vmatprep.mubr.msk.f32.mxu1 %vm748_vm1, %v975_v44  ;;  %11063 = vst [vmem:[#allocation109_spill] sm:$0xff] %v9114_v4  ;;  %v978_v44 = vld [vmem:[#allocation7 + $0xe8] sm:$0xff]  ;;  %11064 = vst [vmem:[#allocation110_spill] sm:$0xff] %v9120_v60 }
 0x1ff   : > { %4559 = vperm.xlu0 %8101, %v6371_v0   ;;  %v6367_v0 = vld [vmem:[%s10899_s6 + $0x80] sm:$0xff] }
 0x200   : > { %4554 = vperm.xlu1 %8102, %v6370_v51   ;;  %7342 = vmatmul.mubr.msk.f32.gmra.mxu1 %vm748_vm1, %v976_v15  ;;  %v980_v51 = vld [vmem:[#allocation7 + $0xf8] sm:$0xff]  ;;  %v981_v15 = vld [vmem:[#allocation7 + $0x100] sm:$0xff]  ;;  %v9130_v4 = vpop.permute.xlu0 %2438  ;;  %v9134_v60 = vpop.permute.xlu1 %2433 }
 0x201   : > { %7344 = vmatprep.mubr.msk.f32.mxu1 %vm748_vm1, %v977_v1  ;;  %v6366_v1 = vld [vmem:[%s10899_s6 + $0x78] sm:$0xff]  ;;  %11065 = vst [vmem:[#allocation111_spill] sm:$0xff] %v9130_v4  ;;  %11066 = vst [vmem:[#allocation112_spill] sm:$0xff] %v9134_v60 }
 0x203   : > { %4549 = vperm.xlu0 %8101, %v6369_v31   ;;  %v4703_v31 = vld [vmem:[#allocation11 + $0x278] sm:$0xff] }
 0x204   : > { %4544 = vperm.xlu1 %8102, %v6368_v61   ;;  %7345 = vmatmul.mubr.msk.f32.gmra.mxu1 %vm748_vm1, %v978_v44  ;;  %v4687_v61 = vld [vmem:[#allocation11 + $0x1f8] sm:$0xff]  ;;  %v9137_v53 = vpop.permute.xlu0 %2428  ;;  %v9140_v4 = vpop.permute.xlu1 %2423 }
 0x205   : > { %7347 = vmatprep.mubr.msk.f32.mxu1 %vm748_vm1, %v979_v43  ;;  %v982_v44 = vld [vmem:[#allocation7 + $0x108] sm:$0xff]  ;;  %v983_v43 = vld [vmem:[#allocation7 + $0x110] sm:$0xff]  ;;  %11067 = vst [vmem:[#allocation113_spill] sm:$0xff] %v9137_v53  ;;  %11068 = vst [vmem:[#allocation114_spill] sm:$0xff] %v9140_v4 }
 0x206   : > { %v988_v4 = vld [vmem:[#allocation7 + $0x138] sm:$0xff]  ;;  %v4683_v53 = vld [vmem:[#allocation11 + $0x1d8] sm:$0xff] }
 0x207   : > { %4539 = vperm.xlu0 %8101, %v6367_v0   ;;  %v4686_v0 = vld [vmem:[#allocation11 + $0x1f0] sm:$0xff] }
 0x208   : > { %4534 = vperm.xlu1 %8102, %v6366_v1   ;;  %7348 = vmatmul.mubr.msk.f32.gmra.mxu1 %vm748_vm1, %v980_v51  ;;  %v984_v1 = vld [vmem:[#allocation7 + $0x118] sm:$0xff]  ;;  %v985_v51 = vld [vmem:[#allocation7 + $0x120] sm:$0xff]  ;;  %v9144_v60 = vpop.permute.xlu0 %2418 }
 0x209   : > { %7350 = vmatprep.mubr.msk.f32.mxu1 %vm748_vm1, %v981_v15  ;;  %v4701_v15 = vld [vmem:[#allocation11 + $0x268] sm:$0xff]  ;;  %11069 = vst [vmem:[#allocation115_spill] sm:$0xff] %v9144_v60 }
 0x20b   : > { %4877 = vperm.xlu0 %8101, %v4703_v31   ;;  %v4685_v31 = vld [vmem:[#allocation11 + $0x1e8] sm:$0xff] }
 0x20c   : > { %4797 = vperm.xlu1 %8102, %v4687_v61   ;;  %7351 = vmatmul.mubr.msk.f32.gmra.mxu1 %vm748_vm1, %v982_v44  ;;  %v986_v61 = vld [vmem:[#allocation7 + $0x128] sm:$0xff]  ;;  %v987_v44 = vld [vmem:[#allocation7 + $0x130] sm:$0xff] }
 0x20d   : > { %7353 = vmatprep.mubr.msk.f32.mxu1 %vm748_vm1, %v983_v43  ;;  %v4700_v43 = vld [vmem:[#allocation11 + $0x260] sm:$0xff] }
 0x20f   : > { %4872 = vperm.xlu0 %8101, %v4702_v10   ;;  %v4684_v10 = vld [vmem:[#allocation11 + $0x1e0] sm:$0xff] }
 0x210   : > { %4792 = vperm.xlu1 %8102, %v4686_v0   ;;  %7354 = vmatmul.mubr.msk.f32.gmra.mxu1 %vm748_vm1, %v984_v1  ;;  %v9148_v0 = vpop.permute.xlu1 %2413  ;;  %v4699_v1 = vld [vmem:[#allocation11 + $0x258] sm:$0xff] }
 0x211   : > { %7356 = vmatprep.mubr.msk.f32.mxu1 %vm748_vm1, %v985_v51  ;;  %11070 = vst [vmem:[#allocation116_spill] sm:$0xff] %v9148_v0  ;;  %v9151_v51 = vpop.permute.xlu0 %2408  ;;  %v4681_v0 = vld [vmem:[#allocation11 + $0x1c8] sm:$0xff] }
 0x212   : > { %11071 = vst [vmem:[#allocation117_spill] sm:$0xff] %v9151_v51  ;;  %v4680_v51 = vld [vmem:[#allocation11 + $0x1c0] sm:$0xff] }
 0x213   : > { %4867 = vperm.xlu0 %8101, %v4701_v15  }
 0x214   : > { %4787 = vperm.xlu1 %8102, %v4685_v31   ;;  %7357 = vmatmul.mubr.msk.f32.gmra.mxu1 %vm748_vm1, %v986_v61  ;;  %v9153_v15 = vpop.permute.xlu1 %2403  ;;  %v4698_v31 = vld [vmem:[#allocation11 + $0x250] sm:$0xff] }
 0x215   : > { %7359 = vmatprep.mubr.msk.f32.mxu1 %vm748_vm1, %v987_v44  ;;  %11072 = vst [vmem:[#allocation118_spill] sm:$0xff] %v9153_v15  ;;  %v4682_v61 = vld [vmem:[#allocation11 + $0x1d0] sm:$0xff]  ;;  %v9155_v60 = vpop.permute.xlu0 %3405  ;;  %v4697_v44 = vld [vmem:[#allocation11 + $0x248] sm:$0xff]  ;;  %v4679_v15 = vld [vmem:[#allocation11 + $0x1b8] sm:$0xff] }
 0x216   : > { %11073 = vst [vmem:[#allocation119_spill] sm:$0xff] %v9155_v60 }
 0x217   : > { %4862 = vperm.xlu0 %8101, %v4700_v43  }
 0x218   : > { %4782 = vperm.xlu1 %8102, %v4684_v10   ;;  %7360 = vmatmul.mubr.msk.f32.gmra.mxu1 %vm748_vm1, %v988_v4  ;;  %v9157_v43 = vpop.permute.xlu1 %3400  ;;  %v4696_v4 = vld [vmem:[#allocation11 + $0x240] sm:$0xff] }
 0x219   : > { %11074 = vst [vmem:[#allocation120_spill] sm:$0xff] %v9157_v43  ;;  %v9159_v10 = vpop.permute.xlu0 %3395 }
 0x21a   : > { %11075 = vst [vmem:[#allocation121_spill] sm:$0xff] %v9159_v10  ;;  %v4677_v10 = vld [vmem:[#allocation11 + $0x1a8] sm:$0xff] }
 0x21b   : > { %4857 = vperm.xlu0 %8101, %v4699_v1  }
 0x21c   : > { %4777 = vperm.xlu1 %8102, %v4683_v53   ;;  %v9161_v1 = vpop.permute.xlu1 %3390  ;;  %v4695_v53 = vld [vmem:[#allocation11 + $0x238] sm:$0xff] }
 0x21d   : > { %11076 = vst [vmem:[#allocation122_spill] sm:$0xff] %v9161_v1  ;;  %v9163_v9 = vpop.permute.xlu0 %3385  ;;  %v4676_v1 = vld [vmem:[#allocation11 + $0x1a0] sm:$0xff] }
 0x21e   : > { %11077 = vst [vmem:[#allocation123_spill] sm:$0xff] %v9163_v9 }
 0x21f   : > { %4852 = vperm.xlu0 %8101, %v4698_v31   ;;  %v4694_v31 = vld [vmem:[#allocation11 + $0x230] sm:$0xff] }
 0x220   : > { %4772 = vperm.xlu1 %8102, %v4682_v61   ;;  %v4678_v61 = vld [vmem:[#allocation11 + $0x1b0] sm:$0xff]  ;;  %v9165_v60 = vpop.permute.xlu1 %3380 }
 0x221   : > { %11078 = vst [vmem:[#allocation124_spill] sm:$0xff] %v9165_v60 }
 0x223   : > { %4847 = vperm.xlu0 %8101, %v4697_v44   ;;  %v9167_v44 = vpop.permute.xlu0 %3375 }
 0x224   : > { %4767 = vperm.xlu1 %8102, %v4681_v0   ;;  %v4693_v0 = vld [vmem:[#allocation11 + $0x228] sm:$0xff]  ;;  %11079 = vst [vmem:[#allocation125_spill] sm:$0xff] %v9167_v44  ;;  %v4674_v44 = vld [vmem:[#allocation11 + $0x190] sm:$0xff] }
 0x227   : > { %4842 = vperm.xlu0 %8101, %v4696_v4   ;;  %v9169_v4 = vpop.permute.xlu1 %3370  ;;  %v9171_v43 = vpop.permute.xlu0 %3365 }
 0x228   : > { %4762 = vperm.xlu1 %8102, %v4680_v51   ;;  %11080 = vst [vmem:[#allocation126_spill] sm:$0xff] %v9169_v4  ;;  %v4692_v51 = vld [vmem:[#allocation11 + $0x220] sm:$0xff]  ;;  %11081 = vst [vmem:[#allocation127_spill] sm:$0xff] %v9171_v43  ;;  %v4673_v4 = vld [vmem:[#allocation11 + $0x188] sm:$0xff] }
 0x22b   : > { %4837 = vperm.xlu0 %8101, %v4695_v53   ;;  %v4675_v53 = vld [vmem:[#allocation11 + $0x198] sm:$0xff]  ;;  %v9173_v9 = vpop.permute.xlu1 %3360 }
 0x22c   : > { %4757 = vperm.xlu1 %8102, %v4679_v15   ;;  %v4691_v15 = vld [vmem:[#allocation11 + $0x218] sm:$0xff]  ;;  %11082 = vst [vmem:[#allocation128_spill] sm:$0xff] %v9173_v9 }
 0x22f   : > { %4832 = vperm.xlu0 %8101, %v4694_v31   ;;  %v4690_v31 = vld [vmem:[#allocation11 + $0x210] sm:$0xff] }
 0x230   : > { %4752 = vperm.xlu1 %8102, %v4678_v61   ;;  %v9175_v61 = vpop.permute.xlu0 %3355 }
 0x231   : > { %11083 = vst [vmem:[#allocation129_spill] sm:$0xff] %v9175_v61  ;;  %v4718_v61 = vld [vmem:[#allocation11 + $0x2f0] sm:$0xff] }
 0x233   : > { %4827 = vperm.xlu0 %8101, %v4693_v0   ;;  %v9177_v0 = vpop.permute.xlu1 %3350 }
 0x234   : > { %4747 = vperm.xlu1 %8102, %v4677_v10   ;;  %11084 = vst [vmem:[#allocation130_spill] sm:$0xff] %v9177_v0  ;;  %v4689_v10 = vld [vmem:[#allocation11 + $0x208] sm:$0xff]  ;;  %v9179_v60 = vpop.permute.xlu0 %3345  ;;  %v4716_v0 = vld [vmem:[#allocation11 + $0x2e0] sm:$0xff] }
 0x235   : > { %11085 = vst [vmem:[#allocation131_spill] sm:$0xff] %v9179_v60 }
 0x237   : > { %4822 = vperm.xlu0 %8101, %v4692_v51   ;;  %v4672_v51 = vld [vmem:[#allocation11 + $0x180] sm:$0xff]  ;;  %v9181_v43 = vpop.permute.xlu1 %3340 }
 0x238   : > { %4742 = vperm.xlu1 %8102, %v4676_v1   ;;  %v4688_v1 = vld [vmem:[#allocation11 + $0x200] sm:$0xff]  ;;  %11086 = vst [vmem:[#allocation132_spill] sm:$0xff] %v9181_v43 }
 0x23b   : > { %4817 = vperm.xlu0 %8101, %v4691_v15   ;;  %v4719_v15 = vld [vmem:[#allocation11 + $0x2f8] sm:$0xff] }
 0x23c   : > { %4737 = vperm.xlu1 %8102, %v4675_v53   ;;  %v9183_v53 = vpop.permute.xlu0 %3335 }
 0x23d   : > { %11087 = vst [vmem:[#allocation133_spill] sm:$0xff] %v9183_v53  ;;  %v4712_v53 = vld [vmem:[#allocation11 + $0x2c0] sm:$0xff] }
 0x23f   : > { %4812 = vperm.xlu0 %8101, %v4690_v31   ;;  %v9185_v31 = vpop.permute.xlu1 %3662 }
 0x240   : > { %4732 = vperm.xlu1 %8102, %v4674_v44   ;;  %11088 = vst [vmem:[#allocation134_spill] sm:$0xff] %v9185_v31  ;;  %v4717_v44 = vld [vmem:[#allocation11 + $0x2e8] sm:$0xff]  ;;  %v9187_v9 = vpop.permute.xlu0 %3582  ;;  %v4710_v31 = vld [vmem:[#allocation11 + $0x2b0] sm:$0xff] }
 0x241   : > { %11089 = vst [vmem:[#allocation135_spill] sm:$0xff] %v9187_v9 }
 0x243   : > { %4807 = vperm.xlu0 %8101, %v4689_v10   ;;  %v4714_v10 = vld [vmem:[#allocation11 + $0x2d0] sm:$0xff]  ;;  %v9189_v60 = vpop.permute.xlu1 %3657 }
 0x244   : > { %4727 = vperm.xlu1 %8102, %v4673_v4   ;;  %v4715_v4 = vld [vmem:[#allocation11 + $0x2d8] sm:$0xff]  ;;  %11090 = vst [vmem:[#allocation136_spill] sm:$0xff] %v9189_v60  ;;  %v4706_v60 = vld [vmem:[#allocation11 + $0x290] sm:$0xff] }
 0x247   : > { %4802 = vperm.xlu0 %8101, %v4688_v1   ;;  %v4713_v1 = vld [vmem:[#allocation11 + $0x2c8] sm:$0xff] }
 0x248   : > { %4722 = vperm.xlu1 %8102, %v4672_v51   ;;  %v9191_v51 = vpop.permute.xlu0 %3577 }
 0x249   : > { %11091 = vst [vmem:[#allocation137_spill] sm:$0xff] %v9191_v51 }
 0x24b   : > { %4957 = vperm.xlu0 %8101, %v4719_v15   ;;  %v9193_v15 = vpop.permute.xlu1 %3652 }
 0x24c   : > { %4952 = vperm.xlu1 %8102, %v4718_v61   ;;  %11092 = vst [vmem:[#allocation138_spill] sm:$0xff] %v9193_v15  ;;  %v4711_v61 = vld [vmem:[#allocation11 + $0x2b8] sm:$0xff]  ;;  %v9195_v43 = vpop.permute.xlu0 %3572  ;;  %v4704_v15 = vld [vmem:[#allocation11 + $0x280] sm:$0xff] }
 0x24d   : > { %11093 = vst [vmem:[#allocation139_spill] sm:$0xff] %v9195_v43 }
 0x24f   : > { %4947 = vperm.xlu0 %8101, %v4717_v44   ;;  %v4708_v44 = vld [vmem:[#allocation11 + $0x2a0] sm:$0xff]  ;;  %v9197_v9 = vpop.permute.xlu1 %3647 }
 0x250   : > { %4942 = vperm.xlu1 %8102, %v4716_v0   ;;  %v4709_v0 = vld [vmem:[#allocation11 + $0x2a8] sm:$0xff]  ;;  %11094 = vst [vmem:[#allocation140_spill] sm:$0xff] %v9197_v9 }
 0x253   : > { %4937 = vperm.xlu0 %8101, %v4715_v4   ;;  %v4707_v4 = vld [vmem:[#allocation11 + $0x298] sm:$0xff] }
 0x254   : > { %4932 = vperm.xlu1 %8102, %v4714_v10   ;;  %v9199_v10 = vpop.permute.xlu0 %3567 }
 0x255   : > { %11095 = vst [vmem:[#allocation141_spill] sm:$0xff] %v9199_v10 }
 0x257   : > { %4927 = vperm.xlu0 %8101, %v4713_v1   ;;  %v9201_v1 = vpop.permute.xlu1 %3642 }
 0x258   : > { %4922 = vperm.xlu1 %8102, %v4712_v53   ;;  %11096 = vst [vmem:[#allocation142_spill] sm:$0xff] %v9201_v1  ;;  %v4705_v53 = vld [vmem:[#allocation11 + $0x288] sm:$0xff]  ;;  %v9203_v51 = vpop.permute.xlu0 %3562 }
 0x259   : > { %11097 = vst [vmem:[#allocation143_spill] sm:$0xff] %v9203_v51 }
 0x25b   : > { %4917 = vperm.xlu0 %8101, %v4711_v61   ;;  %v6490_v61 = vld [vmem:[%s10903_s10 + $0xe0] sm:$0xff] }
 0x25c   : > { %4912 = vperm.xlu1 %8102, %v4710_v31   ;;  %v6491_v31 = vld [vmem:[%s10903_s10 + $0xe8] sm:$0xff] }
 0x25f   : > { %4907 = vperm.xlu0 %8101, %v4709_v0   ;;  %v9211_v0 = vpop.permute.xlu1 %3637 }
 0x260   : > { %4902 = vperm.xlu1 %8102, %v4708_v44   ;;  %11098 = vst [vmem:[#allocation144_spill] sm:$0xff] %v9211_v0  ;;  %v1679_v44 = vld [vmem:[#allocation10 + $0xc8] sm:$0xff] }
 0x261   : > { %1849 = vmatprep.mubr.f32.mxu1 %v1679_v44  ;;  %v6485_v44 = vld [vmem:[%s10903_s10 + $0xb8] sm:$0xff] }
 0x263   : > { %4897 = vperm.xlu0 %8101, %v4707_v4   ;;  %v9216_v4 = vpop.permute.xlu0 %3557 }
 0x264   : > { %4892 = vperm.xlu1 %8102, %v4706_v60   ;;  %v6489_v60 = vld [vmem:[%s10903_s10 + $0xd8] sm:$0xff]  ;;  %11099 = vst [vmem:[#allocation145_spill] sm:$0xff] %v9216_v4 }
 0x267   : > { %4887 = vperm.xlu0 %8101, %v4705_v53   ;;  %v9221_v53 = vpop.permute.xlu1 %3632  ;;  %v9229_v0 = vpop.permute.xlu0 %3552 }
 0x268   : > { %4882 = vperm.xlu1 %8102, %v4704_v15   ;;  %v6488_v15 = vld [vmem:[%s10903_s10 + $0xd0] sm:$0xff]  ;;  %11100 = vst [vmem:[#allocation146_spill] sm:$0xff] %v9221_v53  ;;  %11101 = vst [vmem:[#allocation147_spill] sm:$0xff] %v9229_v0  ;;  %v6483_v53 = vld [vmem:[%s10903_s10 + $0xa8] sm:$0xff] }
 0x269   : > { %v6477_v0 = vld [vmem:[%s10903_s10 + $0x78] sm:$0xff] }
 0x26b   : > { %5886 = vperm.xlu0 %8101, %v6491_v31   ;;  %v6487_v31 = vld [vmem:[%s10903_s10 + $0xc8] sm:$0xff]  ;;  %v9242_v4 = vpop.permute.xlu0 %3547 }
 0x26c   : > { %5881 = vperm.xlu1 %8102, %v6490_v61   ;;  %v6486_v61 = vld [vmem:[%s10903_s10 + $0xc0] sm:$0xff]  ;;  %11103 = vst [vmem:[#allocation149_spill] sm:$0xff] %v9242_v4  ;;  %v6479_v4 = vld [vmem:[%s10903_s10 + $0x88] sm:$0xff] }
 0x26f   : > { %5876 = vperm.xlu0 %8101, %v6489_v60   ;;  %v6484_v60 = vld [vmem:[%s10903_s10 + $0xb0] sm:$0xff] }
 0x270   : > { %5871 = vperm.xlu1 %8102, %v6488_v15   ;;  %v9237_v15 = vpop.permute.xlu1 %3627 }
 0x271   : > { %11102 = vst [vmem:[#allocation148_spill] sm:$0xff] %v9237_v15  ;;  %v6481_v15 = vld [vmem:[%s10903_s10 + $0x98] sm:$0xff] }
 0x273   : > { %5866 = vperm.xlu0 %8101, %v6487_v31   ;;  %v6482_v31 = vld [vmem:[%s10903_s10 + $0xa0] sm:$0xff] }
 0x274   : > { %5861 = vperm.xlu1 %8102, %v6486_v61   ;;  %v9247_v61 = vpop.permute.xlu1 %3622 }
 0x275   : > { %11104 = vst [vmem:[#allocation150_spill] sm:$0xff] %v9247_v61  ;;  %v1655_v61 = vld [vmem:[#allocation10 + $0x8] sm:$0xff] }
 0x276   : > { %1809 = vmatprep.mubr.f32.mxu0 %v1655_v61 }
 0x277   : > { %5856 = vperm.xlu0 %8101, %v6485_v44   ;;  %v6480_v44 = vld [vmem:[%s10903_s10 + $0x90] sm:$0xff] }
 0x278   : > { %5851 = vperm.xlu1 %8102, %v6484_v60   ;;  %v9255_v60 = vpop.permute.xlu0 %3542 }
 0x279   : > { %11105 = vst [vmem:[#allocation151_spill] sm:$0xff] %v9255_v60 }
 0x27b   : > { %5846 = vperm.xlu0 %8101, %v6483_v53   ;;  %v6478_v53 = vld [vmem:[%s10903_s10 + $0x80] sm:$0xff] }
 0x27c   : > { %5841 = vperm.xlu1 %8102, %v6482_v31   ;;  %v9263_v31 = vpop.permute.xlu1 %3617 }
 0x27d   : > { %11106 = vst [vmem:[#allocation152_spill] sm:$0xff] %v9263_v31 }
 0x27f   : > { %5836 = vperm.xlu0 %8101, %v6481_v15   ;;  %v9268_v15 = vpop.permute.xlu0 %3537 }
 0x280   : > { %5831 = vperm.xlu1 %8102, %v6480_v44   ;;  %11107 = vst [vmem:[#allocation153_spill] sm:$0xff] %v9268_v15  ;;  %v5906_v44 = vld [vmem:[%s10905_s12] sm:$0xff]  ;;  %v9273_v60 = vpop.permute.xlu1 %3612 }
 0x281   : > { %11108 = vst [vmem:[#allocation154_spill] sm:$0xff] %v9273_v60 }
 0x283   : > { %5826 = vperm.xlu0 %8101, %v6479_v4   ;;  %v5907_v4 = vld [vmem:[%s10905_s12 + $0x8] sm:$0x3] }
 0x284   : > { %5821 = vperm.xlu1 %8102, %v6478_v53   ;;  %v9278_v53 = vpop.permute.xlu0 %3532 }
 0x285   : > { %11109 = vst [vmem:[#allocation155_spill] sm:$0xff] %v9278_v53 }
 0x287   : > { %5816 = vperm.xlu0 %8101, %v6477_v0  }
 0x288   : > { %5910 = vperm.xlu1 %8102, %v5906_v44  }
 0x28b   : > { %5915 = vperm.xlu0 %8101, %v5907_v4  }
 0x28c   : > { %v9280_v31 = vpop.f32.mrf.mxu1 }
 0x28e   : > { %v9282_v61 = vpop.f32.mrf.mxu1 }
 0x290   : > { %v9284_v15 = vpop.f32.mrf.mxu1 }
 0x292   : > { %v9286_v51 = vpop.f32.mrf.mxu1 }
 0x294   : > { %v9288_v1 = vpop.f32.mrf.mxu1 }
 0x296   : > { %v9290_v0 = vpop.f32.mrf.mxu1 }
 0x298   : > { %v9292_v44 = vpop.f32.mrf.mxu1 }
 0x29a   : > { %v9294_v60 = vpop.f32.mrf.mxu1 }
 0x29c   : > { %v9296_v10 = vpop.f32.mrf.mxu1 }
 0x29e   : > { %v9298_v53 = vpop.f32.mrf.mxu1 }
 0x2a0   : > { %v7319_v4 = vpop.f32.mrf.mxu1 }
 0x2a2   : > { %v1465_v9 = vpop.f32.mrf.mxu1 }
 0x2a4   : > { %v7322_v43 = vpop.f32.mrf.mxu1 }
 0x2a5   : > { %v1481_v7 = vadd.f32 %v7322_v43, %v8724_v25 }
 0x2a6   : > { %v1475_v5 = vpop.f32.mrf.mxu1 }
 0x2a7   : > { %v1627_v25 = vmax.f32 %v1481_v7, 0.0 }
 0x2a8   : > { %v7325_v11 = vpop.f32.mrf.mxu1 }
 0x2a9   : > { %v1491_v8 = vadd.f32 %v7325_v11, %v8716_v17 }
 0x2aa   : > { %v1485_v2 = vpop.f32.mrf.mxu1 }
 0x2ab   : > { %v1486_v52 = vadd.f32 %v1485_v2, %v8720_v21  ;;  %v1629_v46 = vmax.f32 %v1491_v8, 0.0 }
 0x2ac   : > { %v9300_v12 = vpop.f32.mrf.mxu1 }
 0x2ad   : > { %v1628_v17 = vmax.f32 %v1486_v52, 0.0  ;;  %v11110_v52 = vld [vmem:[#allocation22_spill] sm:$0xff] }
 0x2ae   : > { %v9302_v57 = vpop.f32.mrf.mxu1 }
 0x2b0   : > { %v9304_v56 = vpop.f32.mrf.mxu1 }
 0x2b2   : > { %v9306_v23 = vpop.f32.mrf.mxu1 }
 0x2b4   : > { %v9308_v39 = vpop.f32.mrf.mxu1 }
 0x2b6   : > { %v9310_v28 = vpop.f32.mrf.mxu1 }
 0x2b8   : > { %v7337_v24 = vpop.f32.mrf.mxu1 }
 0x2ba   : > { %v9312_v50 = vpop.f32.mrf.mxu1 }
 0x2bc   : > { %v7340_v49 = vpop.f32.mrf.mxu1 }
 0x2be   : > { %v1535_v48 = vpop.f32.mrf.mxu1 }
 0x2c0   : > { %v7343_v16 = vpop.f32.mrf.mxu1 }
 0x2c1   : > { %v1551_v21 = vadd.f32 %v7343_v16, %v8730_v30  ;;  %v1541_v30 = vadd.f32 %v7340_v49, %v8738_v38 }
 0x2c2   : > { %v1545_v32 = vpop.f32.mrf.mxu1 }
 0x2c3   : > { %v1641_v16 = vmax.f32 %v1551_v21, 0.0  ;;  %v1639_v49 = vmax.f32 %v1541_v30, 0.0 }
 0x2c4   : > { %v7346_v27 = vpop.f32.mrf.mxu1 }
 0x2c5   : > { %v1561_v20 = vadd.f32 %v7346_v27, %v8722_v22  ;;  %v11113_v27 = vld [vmem:[#allocation25_spill] sm:$0xff] }
 0x2c6   : > { %v1555_v35 = vpop.f32.mrf.mxu1  ;;  %v1511_v2 = vadd.f32 %v9304_v56, %v11113_v27  ;;  %v1660_v27 = vld [vmem:[#allocation10 + $0x30] sm:$0xff] }
 0x2c7   : > { %v1556_v6 = vadd.f32 %v1555_v35, %v8726_v26  ;;  %v1643_v22 = vmax.f32 %v1561_v20, 0.0  ;;  %v1546_v26 = vadd.f32 %v1545_v32, %v8734_v34  ;;  %v1536_v34 = vadd.f32 %v1535_v48, %v8742_v42  ;;  %v11112_v35 = vld [vmem:[#allocation24_spill] sm:$0xff] }
 0x2c8   : > { %v7349_v14 = vpop.f32.mrf.mxu1  ;;  %v1531_v32 = vadd.f32 %v7337_v24, %v8746_v47  ;;  %v1526_v48 = vadd.f32 %v9312_v50, %v8751_v55  ;;  %v1446_v47 = vadd.f32 %v9294_v60, %v8753_v62  ;;  %v1521_v20 = vadd.f32 %v9308_v39, %v8755_v63 }
 0x2c9   : > { %v1571_v58 = vadd.f32 %v7349_v14, %v8714_v13  ;;  %v1476_v13 = vadd.f32 %v1475_v5, %v8728_v29  ;;  %v1466_v29 = vadd.f32 %v1465_v9, %v8736_v37  ;;  %v1456_v37 = vadd.f32 %v9298_v53, %v8744_v45  ;;  %v11111_v14 = vld [vmem:[#allocation23_spill] sm:$0xff]  ;;  %v11114_v9 = vld [vmem:[#allocation26_spill] sm:$0xff]  ;;  %v11116_v53 = vld [vmem:[#allocation28_spill] sm:$0xff] }
 0x2ca   : > { %v1565_v19 = vpop.f32.mrf.mxu1  ;;  %v1638_v45 = vmax.f32 %v1536_v34, 0.0  ;;  %v1441_v55 = vadd.f32 %v9288_v1, %v11110_v52  ;;  %v1516_v62 = vadd.f32 %v9310_v28, %v11111_v14  ;;  %v1636_v8 = vmax.f32 %v1526_v48, 0.0  ;;  %v1682_v34 = vld [vmem:[#allocation10 + $0xe0] sm:$0xff]  ;;  %v1657_v52 = vld [vmem:[#allocation10 + $0x18] sm:$0xff] }
 0x2cb   : > { %v1645_v36 = vmax.f32 %v1571_v58, 0.0  ;;  %v1566_v59 = vadd.f32 %v1565_v19, %v8718_v18  ;;  %v1471_v18 = vadd.f32 %v7319_v4, %v8732_v33  ;;  %v1461_v33 = vadd.f32 %v9296_v10, %v8740_v41  ;;  %v11115_v10 = vld [vmem:[#allocation27_spill] sm:$0xff] }
 0x2cc   : > { %v9320_v3 = vpop.f32.mrf.mxu1  ;;  %v1624_v38 = vmax.f32 %v1466_v29, 0.0  ;;  %v1451_v41 = vadd.f32 %v9292_v44, %v8749_v54  ;;  %v1622_v24 = vmax.f32 %v1456_v37, 0.0  ;;  %v1637_v19 = vmax.f32 %v1531_v32, 0.0  ;;  %v11117_v44 = vld [vmem:[#allocation29_spill] sm:$0xff]  ;;  %v1654_v32 = vld [vmem:[#allocation10] sm:$0xff] }
 0x2cd   : > { %v1644_v40 = vmax.f32 %v1566_v59, 0.0  ;;  %6583 = vmatprep.subr.mxu0 %v1645_v36  ;;  %7965 = vmatprep.subr.mxu1 %v1645_v36  ;;  %v1642_v59 = vmax.f32 %v1556_v6, 0.0  ;;  %v1640_v6 = vmax.f32 %v1546_v26, 0.0  ;;  %v1623_v42 = vmax.f32 %v1461_v33, 0.0  ;;  %v11122_v33 = vld [vmem:[#allocation34_spill] sm:$0xff] }
 0x2ce   : > { %6584 = vmatpush3.msra.mxu0 %v1629_v46  ;;  %7981 = vmatpush3.msra.mxu1 %v1629_v46  ;;  %v9325_v58 = vpop.f32.mrf.mxu1  ;;  %v1626_v46 = vmax.f32 %v1476_v13, 0.0  ;;  %v1621_v50 = vmax.f32 %v1451_v41, 0.0  ;;  %v1436_v63 = vadd.f32 %v9290_v0, %v11112_v35  ;;  %v1620_v39 = vmax.f32 %v1446_v47, 0.0  ;;  %v1658_v41 = vld [vmem:[#allocation10 + $0x20] sm:$0xff]  ;;  %v1681_v47 = vld [vmem:[#allocation10 + $0xd8] sm:$0xff]  ;;  %v1688_v35 = vld [vmem:[#allocation10 + $0x110] sm:$0xff] }
 0x2cf   : > { %6585 = vmatprep.subr.mxu0 %v1644_v40  ;;  %7966 = vmatprep.subr.mxu1 %v1644_v40  ;;  %v1625_v40 = vmax.f32 %v1471_v18, 0.0  ;;  %v1635_v11 = vmax.f32 %v1521_v20, 0.0  ;;  %v1431_v43 = vadd.f32 %v9284_v15, %v11114_v9  ;;  %v1619_v28 = vmax.f32 %v1441_v55, 0.0  ;;  %v11126_v20 = vld [vmem:[#allocation37_spill] sm:$0xff]  ;;  %v1687_v9 = vld [vmem:[#allocation10 + $0x108] sm:$0xff] }
 0x2d0   : > { %6586 = vmatpush3.msra.mxu0 %v1628_v17  ;;  %7982 = vmatpush3.msra.mxu1 %v1628_v17  ;;  %v9331_v36 = vpop.f32.mrf.mxu1  ;;  %v1506_v1 = vadd.f32 %v9306_v23, %v11115_v10  ;;  %v1634_v60 = vmax.f32 %v1516_v62, 0.0  ;;  %v1426_v0 = vadd.f32 %v9286_v51, %v11116_v53  ;;  %v1618_v56 = vmax.f32 %v1436_v63, 0.0  ;;  %v11118_v17 = vld [vmem:[#allocation30_spill] sm:$0xff]  ;;  %v1661_v55 = vld [vmem:[#allocation10 + $0x38] sm:$0xff]  ;;  %v1667_v10 = vld [vmem:[#allocation10 + $0x68] sm:$0xff] }
 0x2d1   : > { %6587 = vmatprep.subr.mxu0 %v1643_v22  ;;  %7967 = vmatprep.subr.mxu1 %v1643_v22  ;;  %v1501_v4 = vadd.f32 %v9300_v12, %v11117_v44  ;;  %v1633_v13 = vmax.f32 %v1511_v2, 0.0  ;;  %v1421_v21 = vadd.f32 %v9280_v31, %v11118_v17  ;;  %v1617_v23 = vmax.f32 %v1431_v43, 0.0  ;;  %v11119_v22 = vld [vmem:[#allocation31_spill] sm:$0xff]  ;;  %v1664_v2 = vld [vmem:[#allocation10 + $0x50] sm:$0xff]  ;;  %v1666_v53 = vld [vmem:[#allocation10 + $0x60] sm:$0xff] }
 0x2d2   : > { %6588 = vmatpush3.msra.mxu0 %v1627_v25  ;;  %7983 = vmatpush3.msra.mxu1 %v1627_v25  ;;  %v9339_v7 = vpop.f32.mrf.mxu1  ;;  %v1496_v18 = vadd.f32 %v9302_v57, %v11119_v22  ;;  %v1632_v51 = vmax.f32 %v1506_v1, 0.0  ;;  %v11120_v25 = vld [vmem:[#allocation32_spill] sm:$0xff]  ;;  %v1616_v12 = vmax.f32 %v1426_v0, 0.0  ;;  %v1691_v43 = vld [vmem:[#allocation10 + $0x128] sm:$0xff]  ;;  %v1670_v0 = vld [vmem:[#allocation10 + $0x80] sm:$0xff] }
 0x2d3   : > { %6589 = vmatprep.subr.mxu0 %v1642_v59  ;;  %7968 = vmatprep.subr.mxu1 %v1642_v59  ;;  %v1416_v26 = vadd.f32 %v9282_v61, %v11120_v25  ;;  %v1631_v59 = vmax.f32 %v1501_v4, 0.0  ;;  %v1615_v31 = vmax.f32 %v1421_v21, 0.0  ;;  %v1678_v61 = vld [vmem:[#allocation10 + $0xc0] sm:$0xff]  ;;  %v1697_v44 = vld [vmem:[#allocation10 + $0x158] sm:$0xff]  ;;  %v1672_v17 = vld [vmem:[#allocation10 + $0x90] sm:$0xff] }
 0x2d4   : > { %6590 = vmatpush3.msra.mxu0 %v1626_v46  ;;  %7984 = vmatpush3.msra.mxu1 %v1626_v46  ;;  %v9349_v54 = vpop.f32.mrf.mxu1  ;;  %v11121_v46 = vld [vmem:[#allocation33_spill] sm:$0xff]  ;;  %v1676_v21 = vld [vmem:[#allocation10 + $0xb0] sm:$0xff]  ;;  %v1675_v22 = vld [vmem:[#allocation10 + $0xa8] sm:$0xff] }
 0x2d5   : > { %6591 = vmatprep.subr.mxu0 %v1641_v16  ;;  %7969 = vmatprep.subr.mxu1 %v1641_v16  ;;  %v1630_v16 = vmax.f32 %v1496_v18, 0.0  ;;  %v1614_v57 = vmax.f32 %v1416_v26, 0.0  ;;  %v1669_v4 = vld [vmem:[#allocation10 + $0x78] sm:$0xff]  ;;  %v1659_v18 = vld [vmem:[#allocation10 + $0x28] sm:$0xff]  ;;  %v1668_v26 = vld [vmem:[#allocation10 + $0x70] sm:$0xff] }
 0x2d6   : > { %6592 = vmatpush3.msra.mxu0 %v1625_v40  ;;  %7985 = vmatpush3.msra.mxu1 %v1625_v40  ;;  %v1595_v5 = vpop.f32.mrf.mxu1  ;;  %v1665_v25 = vld [vmem:[#allocation10 + $0x58] sm:$0xff] }
 0x2d7   : > { %6593 = vmatprep.subr.mxu0 %v1640_v6  ;;  %7970 = vmatprep.subr.mxu1 %v1640_v6  ;;  %v11123_v6 = vld [vmem:[#allocation35_spill] sm:$0xff] }
 0x2d8   : > { %6594 = vmatpush3.msra.mxu0 %v1624_v38  ;;  %7986 = vmatpush3.msra.mxu1 %v1624_v38  ;;  %v7361_v15 = vpop.f32.mrf.mxu1  ;;  %v1601_v37 = vadd.f32 %v9349_v54, %v11123_v6 }
 0x2d9   : > { %6595 = vmatprep.subr.mxu0 %v1639_v49  ;;  %7971 = vmatprep.subr.mxu1 %v1639_v49  ;;  %v1611_v30 = vadd.f32 %v7361_v15, %v11121_v46  ;;  %v11124_v49 = vmov 0.0   ;;  %v1696_v15 = vld [vmem:[#allocation10 + $0x150] sm:$0xff]  ;;  %v1683_v46 = vld [vmem:[#allocation10 + $0xe8] sm:$0xff] }
 0x2da   : > { %6596 = vmatpush3.msra.mxu0 %v1623_v42  ;;  %7987 = vmatpush3.msra.mxu1 %v1623_v42  ;;  %v1605_v29 = vpop.f32.mrf.mxu1  ;;  %v11125_v42 = vld [vmem:[#allocation36_spill] sm:$0xff]  ;;  %v1651_v54 = vmax.f32 %v1601_v37, 0.0 }
 0x2db   : > { %6597 = vmatprep.subr.mxu0 %v1638_v45  ;;  %7972 = vmatprep.subr.mxu1 %v1638_v45  ;;  %v1606_v40 = vadd.f32 %v1605_v29, %v11122_v33  ;;  %v1653_v38 = vmax.f32 %v1611_v30, 0.0  ;;  %v1596_v48 = vadd.f32 %v1595_v5, %v11125_v42  ;;  %v1677_v29 = vld [vmem:[#allocation10 + $0xb8] sm:$0xff]  ;;  %v1686_v30 = vld [vmem:[#allocation10 + $0x100] sm:$0xff]  ;;  %v1695_v33 = vld [vmem:[#allocation10 + $0x148] sm:$0xff] }
 0x2dc   : > { %6598 = vmatpush3.msra.mxu0 %v1622_v24  ;;  %7988 = vmatpush3.msra.mxu1 %v1622_v24  ;;  %v1685_v24 = vld [vmem:[#allocation10 + $0xf8] sm:$0xff] }
 0x2dd   : > { %6599 = vmatprep.subr.mxu0 %v1637_v19  ;;  %7973 = vmatprep.subr.mxu1 %v1637_v19  ;;  %v1652_v45 = vmax.f32 %v1606_v40, 0.0  ;;  %v1591_v19 = vadd.f32 %v9331_v36, %v11126_v20  ;;  %v1650_v62 = vmax.f32 %v1596_v48, 0.0  ;;  %v11128_v36 = vld [vmem:[#allocation39_spill] sm:$0xff]  ;;  %v1698_v40 = vld [vmem:[#allocation10 + $0x160] sm:$0xff] }
 0x2de   : > { %6600 = vmatpush3.msra.mxu0 %v1621_v50  ;;  %7989 = vmatpush3.msra.mxu1 %v1621_v50  ;;  %v11127_v50 = vld [vmem:[#allocation38_spill] sm:$0xff]  ;;  %v1581_v63 = vadd.f32 %v9320_v3, %v11128_v36 }
 0x2df   : > { %6601 = vmatprep.subr.mxu0 %v1636_v8  ;;  %7974 = vmatprep.subr.mxu1 %v1636_v8  ;;  %v1586_v14 = vadd.f32 %v9339_v7, %v11127_v50  ;;  %v1684_v8 = vld [vmem:[#allocation10 + $0xf0] sm:$0xff] }
 0x2e0   : > { %6602 = vmatpush3.msra.mxu0 %v1620_v39  ;;  %7990 = vmatpush3.msra.mxu1 %v1620_v39  ;;  %v1649_v39 = vmax.f32 %v1591_v19, 0.0  ;;  %v11129_v7 = vld [vmem:[#allocation40_spill] sm:$0xff]  ;;  %v1647_v3 = vmax.f32 %v1581_v63, 0.0 }
 0x2e1   : > { %6603 = vmatprep.subr.mxu0 %v1635_v11  ;;  %7975 = vmatprep.subr.mxu1 %v1635_v11  ;;  %v1576_v11 = vadd.f32 %v9325_v58, %v11129_v7  ;;  %v1648_v5 = vmax.f32 %v1586_v14, 0.0  ;;  %v1690_v58 = vld [vmem:[#allocation10 + $0x120] sm:$0xff] }
 0x2e2   : > { %6604 = vmatpush3.msra.mxu0 %v1619_v28  ;;  %7991 = vmatpush3.msra.mxu1 %v1619_v28  ;;  %v1663_v28 = vld [vmem:[#allocation10 + $0x48] sm:$0xff] }
 0x2e3   : > { %6605 = vmatprep.subr.mxu0 %v1634_v60  ;;  %7976 = vmatprep.subr.mxu1 %v1634_v60  ;;  %v1646_v1 = vmax.f32 %v1576_v11, 0.0  ;;  %v1694_v60 = vld [vmem:[#allocation10 + $0x140] sm:$0xff] }
 0x2e4   : > { %6606 = vmatpush3.msra.mxu0 %v1618_v56  ;;  %7992 = vmatpush3.msra.mxu1 %v1618_v56  ;;  %v1693_v56 = vld [vmem:[#allocation10 + $0x138] sm:$0xff] }
 0x2e5   : > { %6607 = vmatprep.subr.mxu0 %v1633_v13  ;;  %7977 = vmatprep.subr.mxu1 %v1633_v13  ;;  %v1673_v13 = vld [vmem:[#allocation10 + $0x98] sm:$0xff] }
 0x2e6   : > { %6608 = vmatpush3.msra.mxu0 %v1617_v23  ;;  %7993 = vmatpush3.msra.mxu1 %v1617_v23  ;;  %v1656_v23 = vld [vmem:[#allocation10 + $0x10] sm:$0xff] }
 0x2e7   : > { %6609 = vmatprep.subr.mxu0 %v1632_v51  ;;  %7978 = vmatprep.subr.mxu1 %v1632_v51  ;;  %v1662_v51 = vld [vmem:[#allocation10 + $0x40] sm:$0xff] }
 0x2e8   : > { %6610 = vmatpush3.msra.mxu0 %v1616_v12  ;;  %7994 = vmatpush3.msra.mxu1 %v1616_v12  ;;  %v1671_v12 = vld [vmem:[#allocation10 + $0x88] sm:$0xff] }
 0x2e9   : > { %6611 = vmatprep.subr.mxu0 %v1631_v59  ;;  %7979 = vmatprep.subr.mxu1 %v1631_v59  ;;  %v1674_v59 = vld [vmem:[#allocation10 + $0xa0] sm:$0xff] }
 0x2ea   : > { %6612 = vmatpush3.msra.mxu0 %v1615_v31  ;;  %7995 = vmatpush3.msra.mxu1 %v1615_v31  ;;  %v1680_v31 = vld [vmem:[#allocation10 + $0xd0] sm:$0xff] }
 0x2eb   : > { %6613 = vmatprep.subr.mxu0 %v1630_v16  ;;  %7980 = vmatprep.subr.mxu1 %v1630_v16  ;;  %v1689_v16 = vld [vmem:[#allocation10 + $0x118] sm:$0xff] }
 0x2ec   : > { %6614 = vmatpush3.msra.mxu0 %v1614_v57  ;;  %7996 = vmatpush3.msra.mxu1 %v1614_v57  ;;  %v1692_v57 = vld [vmem:[#allocation10 + $0x130] sm:$0xff] }
 0x2ed   : > { %1850 = vmatmul.mubr.f32.vlgmr.msra.gmra.mxu1 %v1678_v61  ;;  %7362 = vmatprep.subr.mxu1 %v11124_v49  ;;  %v2145_v61 = vld [vmem:[%s10900_s7] sm:$0xff] }
 0x2ee   : > { %7363 = vmatpush3.msra.mxu1 %v1653_v38  ;;  %1854 = vmatprep.mubr.f32.mxu1 %v1682_v34 }
 0x2ef   : > { %7364 = vmatprep.subr.mxu1 %v11124_v49  ;;  %1810 = vmatmul.mubr.f32.vlgmr.msra.gmra.mxu0 %v1654_v32 }
 0x2f0   : > { %7365 = vmatpush3.msra.mxu1 %v1652_v45  ;;  %1814 = vmatprep.mubr.f32.mxu0 %v1658_v41 }
 0x2f1   : > { %1855 = vmatmul.mubr.f32.gmra.mxu1 %v1681_v47  ;;  %7366 = vmatprep.subr.mxu1 %v11124_v49 }
 0x2f2   : > { %7367 = vmatpush3.msra.mxu1 %v1651_v54  ;;  %1859 = vmatprep.mubr.f32.mxu1 %v1685_v24 }
 0x2f3   : > { %7368 = vmatprep.subr.mxu1 %v11124_v49  ;;  %1815 = vmatmul.mubr.f32.gmra.mxu0 %v1657_v52 }
 0x2f4   : > { %7369 = vmatpush3.msra.mxu1 %v1650_v62  ;;  %1819 = vmatprep.mubr.f32.mxu0 %v1661_v55 }
 0x2f5   : > { %1860 = vmatmul.mubr.f32.gmra.mxu1 %v1684_v8  ;;  %7370 = vmatprep.subr.mxu1 %v11124_v49 }
 0x2f6   : > { %7371 = vmatpush3.msra.mxu1 %v1649_v39  ;;  %1864 = vmatprep.mubr.f32.mxu1 %v1688_v35 }
 0x2f7   : > { %7372 = vmatprep.subr.mxu1 %v11124_v49  ;;  %1820 = vmatmul.mubr.f32.gmra.mxu0 %v1660_v27 }
 0x2f8   : > { %7373 = vmatpush3.msra.mxu1 %v1648_v5  ;;  %1824 = vmatprep.mubr.f32.mxu0 %v1664_v2 }
 0x2f9   : > { %1865 = vmatmul.mubr.f32.gmra.mxu1 %v1687_v9  ;;  %7374 = vmatprep.subr.mxu1 %v11124_v49 }
 0x2fa   : > { %7375 = vmatpush3.msra.mxu1 %v1647_v3  ;;  %1869 = vmatprep.mubr.f32.mxu1 %v1691_v43 }
 0x2fb   : > { %7376 = vmatprep.subr.mxu1 %v11124_v49  ;;  %1825 = vmatmul.mubr.f32.gmra.mxu0 %v1663_v28 }
 0x2fc   : > { %7377 = vmatpush3.msra.mxu1 %v1646_v1  ;;  %1829 = vmatprep.mubr.f32.mxu0 %v1667_v10 }
 0x2fd   : > { %1870 = vmatmul.mubr.f32.gmra.mxu1 %v1690_v58 }
 0x2fe   : > { %1874 = vmatprep.mubr.f32.mxu1 %v1694_v60 }
 0x2ff   : > { %1830 = vmatmul.mubr.f32.gmra.mxu0 %v1666_v53 }
 0x300   : > { %1834 = vmatprep.mubr.f32.mxu0 %v1670_v0 }
 0x301   : > { %1875 = vmatmul.mubr.f32.gmra.mxu1 %v1693_v56 }
 0x302   : > { %1879 = vmatprep.mubr.f32.mxu1 %v1697_v44 }
 0x303   : > { %1835 = vmatmul.mubr.f32.gmra.mxu0 %v1669_v4 }
 0x304   : > { %1839 = vmatprep.mubr.f32.mxu0 %v1673_v13 }
 0x305   : > { %1880 = vmatmul.mubr.f32.gmra.mxu1 %v1696_v15 }
 0x306   : > { %7378 = vmatprep.mubr.msk.f32.mxu1 %vm8338_vm0, %v11124_v49 }
 0x307   : > { %1840 = vmatmul.mubr.f32.gmra.mxu0 %v1672_v17 }
 0x308   : > { %1844 = vmatprep.mubr.f32.mxu0 %v1676_v21 }
 0x309   : > { %7379 = vmatmul.mubr.msk.f32.vlgmr.msra.gmra.mxu1 %vm1699_vm2, %v1656_v23 }
 0x30a   : > { %7381 = vmatprep.mubr.msk.f32.mxu1 %vm8338_vm0, %v11124_v49 }
 0x30b   : > { %1845 = vmatmul.mubr.f32.gmra.mxu0 %v1675_v22 }
 0x30c   : > { %7453 = vmatprep.mubr.msk.f32.mxu0 %vm748_vm1, %v2145_v61 }
 0x30d   : > { %7382 = vmatmul.mubr.msk.f32.gmra.mxu1 %vm1699_vm2, %v1659_v18 }
 0x30e   : > { %7384 = vmatprep.mubr.msk.f32.mxu1 %vm8338_vm0, %v11124_v49 }
 0x311   : > { %7385 = vmatmul.mubr.msk.f32.gmra.mxu1 %vm1699_vm2, %v1662_v51 }
 0x312   : > { %7387 = vmatprep.mubr.msk.f32.mxu1 %vm8338_vm0, %v11124_v49 }
 0x315   : > { %7388 = vmatmul.mubr.msk.f32.gmra.mxu1 %vm1699_vm2, %v1665_v25 }
 0x316   : > { %7390 = vmatprep.mubr.msk.f32.mxu1 %vm8338_vm0, %v11124_v49 }
 0x319   : > { %7391 = vmatmul.mubr.msk.f32.gmra.mxu1 %vm1699_vm2, %v1668_v26 }
 0x31a   : > { %7393 = vmatprep.mubr.msk.f32.mxu1 %vm8338_vm0, %v11124_v49 }
 0x31d   : > { %7394 = vmatmul.mubr.msk.f32.gmra.mxu1 %vm1699_vm2, %v1671_v12 }
 0x31e   : > { %7396 = vmatprep.mubr.msk.f32.mxu1 %vm8338_vm0, %v11124_v49 }
 0x321   : > { %7397 = vmatmul.mubr.msk.f32.gmra.mxu1 %vm1699_vm2, %v1674_v59 }
 0x322   : > { %7399 = vmatprep.mubr.msk.f32.mxu1 %vm8338_vm0, %v11124_v49 }
 0x325   : > { %7400 = vmatmul.mubr.msk.f32.gmra.mxu1 %vm1699_vm2, %v1677_v29 }
 0x326   : > { %7402 = vmatprep.mubr.msk.f32.mxu1 %vm8338_vm0, %v11124_v49 }
 0x329   : > { %7403 = vmatmul.mubr.msk.f32.gmra.mxu1 %vm1699_vm2, %v1680_v31 }
 0x32a   : > { %7405 = vmatprep.mubr.msk.f32.mxu1 %vm8338_vm0, %v11124_v49 }
 0x32d   : > { %7406 = vmatmul.mubr.msk.f32.gmra.mxu1 %vm1699_vm2, %v1683_v46 }
 0x32e   : > { %7408 = vmatprep.mubr.msk.f32.mxu1 %vm8338_vm0, %v11124_v49 }
 0x331   : > { %7409 = vmatmul.mubr.msk.f32.gmra.mxu1 %vm1699_vm2, %v1686_v30 }
 0x332   : > { %7411 = vmatprep.mubr.msk.f32.mxu1 %vm8338_vm0, %v11124_v49 }
 0x335   : > { %7412 = vmatmul.mubr.msk.f32.gmra.mxu1 %vm1699_vm2, %v1689_v16 }
 0x336   : > { %7414 = vmatprep.mubr.msk.f32.mxu1 %vm8338_vm0, %v11124_v49 }
 0x339   : > { %7415 = vmatmul.mubr.msk.f32.gmra.mxu1 %vm1699_vm2, %v1692_v57 }
 0x33a   : > { %7417 = vmatprep.mubr.msk.f32.mxu1 %vm8338_vm0, %v11124_v49 }
 0x33d   : > { %7418 = vmatmul.mubr.msk.f32.gmra.mxu1 %vm1699_vm2, %v1695_v33 }
 0x33e   : > { %7420 = vmatprep.mubr.msk.f32.mxu1 %vm8338_vm0, %v11124_v49 }
 0x341   : > { %7421 = vmatmul.mubr.msk.f32.gmra.mxu1 %vm1699_vm2, %v1698_v40 }
 0x3ad   : > { %v9443_v34 = vpop.f32.mrf.mxu1 }
 0x3af   : > { %v9445_v6 = vpop.f32.mrf.mxu1  ;;  %v9451_v52 = vpop.f32.mrf.mxu0 }
 0x3b1   : > { %v9447_v37 = vpop.f32.mrf.mxu1  ;;  %v9455_v14 = vpop.f32.mrf.mxu0 }
 0x3b3   : > { %v9449_v38 = vpop.f32.mrf.mxu1  ;;  %v9459_v35 = vpop.f32.mrf.mxu0 }
 0x3b5   : > { %v6645_v32 = vpop.f32.mrf.mxu1  ;;  %v9463_v39 = vpop.f32.mrf.mxu0 }
 0x3b7   : > { %v6646_v41 = vpop.f32.mrf.mxu1  ;;  %v9467_v7 = vpop.f32.mrf.mxu0 }
 0x3b9   : > { %v6648_v42 = vpop.f32.mrf.mxu1  ;;  %v9471_v9 = vpop.f32.mrf.mxu0 }
 0x3bb   : > { %v6649_v48 = vpop.f32.mrf.mxu1  ;;  %v9475_v28 = vpop.f32.mrf.mxu0 }
 0x3bc   : > { %v6650_v61 = vadd.f32 %v6649_v48, %v6648_v42  ;;  %v6641_v42 = vadd.f32 %v9445_v6, %v9443_v34 }
 0x3bd   : > { %v6651_v45 = vpop.f32.mrf.mxu1  ;;  %v9477_v58 = vpop.f32.mrf.mxu0 }
 0x3bf   : > { %v6652_v47 = vpop.f32.mrf.mxu1  ;;  %v6627_v0 = vpop.f32.mrf.mxu0 }
 0x3c0   : > { %v6653_v30 = vadd.f32 %v6652_v47, %v6651_v45  ;;  %v11132_v45 = vld [vmem:[#allocation69_spill] sm:$0xff] }
 0x3c1   : > { %v6654_v24 = vpop.f32.mrf.mxu1  ;;  %v6628_v4 = vpop.f32.mrf.mxu0 }
 0x3c3   : > { %v6655_v20 = vpop.f32.mrf.mxu1  ;;  %v6630_v17 = vpop.f32.mrf.mxu0 }
 0x3c4   : > { %v6656_v31 = vadd.f32 %v6655_v20, %v6654_v24  ;;  %v6644_v24 = vadd.f32 %v9449_v38, %v9447_v37 }
 0x3c5   : > { %v6657_v19 = vpop.f32.mrf.mxu1  ;;  %v6631_v22 = vpop.f32.mrf.mxu0 }
 0x3c6   : > { %v6632_v34 = vadd.f32 %v6631_v22, %v6630_v17  ;;  %v11142_v22 = vld [vmem:[#allocation78_spill] sm:$0xff] }
 0x3c7   : > { %v6658_v54 = vpop.f32.mrf.mxu1  ;;  %v6633_v25 = vpop.f32.mrf.mxu0 }
 0x3c8   : > { %v6659_v16 = vadd.f32 %v6658_v54, %v6657_v19  ;;  %v11133_v19 = vld [vmem:[#allocation41_spill] sm:$0xff] }
 0x3c9   : > { %v9453_v55 = vpop.f32.mrf.mxu1  ;;  %v6634_v59 = vpop.f32.mrf.mxu0 }
 0x3ca   : > { %v6635_v37 = vadd.f32 %v6634_v59, %v6633_v25  ;;  %v11140_v59 = vld [vmem:[#allocation76_spill] sm:$0xff] }
 0x3cb   : > { %v7380_v50 = vpop.f32.mrf.mxu1  ;;  %v6636_v33 = vpop.f32.mrf.mxu0 }
 0x3cd   : > { %v9457_v62 = vpop.f32.mrf.mxu1 }
 0x3cf   : > { %v7383_v8 = vpop.f32.mrf.mxu1 }
 0x3d1   : > { %v9461_v36 = vpop.f32.mrf.mxu1 }
 0x3d3   : > { %v7386_v63 = vpop.f32.mrf.mxu1 }
 0x3d5   : > { %v9465_v27 = vpop.f32.mrf.mxu1 }
 0x3d7   : > { %v7389_v2 = vpop.f32.mrf.mxu1 }
 0x3d8   : > { %v6647_v2 = vadd.f32 %v6646_v41, %v6645_v32  ;;  %v11134_v41 = vld [vmem:[#allocation71_spill] sm:$0xff] }
 0x3d9   : > { %v9469_v11 = vpop.f32.mrf.mxu1 }
 0x3db   : > { %v7392_v5 = vpop.f32.mrf.mxu1 }
 0x3dd   : > { %v9473_v43 = vpop.f32.mrf.mxu1 }
 0x3de   : > { %v1977_v17 = vadd.f32 %v6632_v34, %v9473_v43  ;;  %v2148_v34 = vld [vmem:[%s10900_s7 + $0x18] sm:$0xff] }
 0x3df   : > { %v7395_v3 = vpop.f32.mrf.mxu1 }
 0x3e0   : > { %v11130_v3 = vld [vmem:[#allocation67_spill] sm:$0xff] }
 0x3e1   : > { %v1981_v10 = vpop.f32.mrf.mxu1 }
 0x3e2   : > { %v1982_v25 = vadd.f32 %v6635_v37, %v1981_v10 }
 0x3e3   : > { %v7398_v1 = vpop.f32.mrf.mxu1 }
 0x3e5   : > { %v1986_v60 = vpop.f32.mrf.mxu1 }
 0x3e7   : > { %v7401_v53 = vpop.f32.mrf.mxu1 }
 0x3e8   : > { %v11131_v53 = vld [vmem:[#allocation66_spill] sm:$0xff] }
 0x3e9   : > { %v1991_v56 = vpop.f32.mrf.mxu1 }
 0x3ea   : > { %v1992_v38 = vadd.f32 %v6641_v42, %v1991_v56  ;;  %v6629_v56 = vadd.f32 %v6628_v4, %v6627_v0  ;;  %v11143_v0 = vld [vmem:[#allocation46_spill] sm:$0xff]  ;;  %v6623_v4 = vadd.f32 %v9471_v9, %v9467_v7  ;;  %v11147_v7 = vld [vmem:[#allocation48_spill] sm:$0xff]  ;;  %v6617_v9 = vadd.f32 %v9455_v14, %v9451_v52 }
 0x3eb   : > { %v7404_v44 = vpop.f32.mrf.mxu1  ;;  %v11152_v14 = vld [vmem:[#allocation86_spill] sm:$0xff]  ;;  %v11155_v42 = vld [vmem:[#allocation52_spill] sm:$0xff] }
 0x3ec   : > { %v1952_v52 = vadd.f32 %v6617_v9, %v9453_v55  ;;  %v2173_v9 = vld [vmem:[%s10900_s7 + $0xe0] sm:$0xff] }
 0x3ed   : > { %v1996_v13 = vpop.f32.mrf.mxu1 }
 0x3ee   : > { %v1997_v32 = vadd.f32 %v6644_v24, %v1996_v13  ;;  %v11138_v13 = vld [vmem:[#allocation74_spill] sm:$0xff] }
 0x3ef   : > { %v7407_v15 = vpop.f32.mrf.mxu1  ;;  %v11151_v24 = vld [vmem:[#allocation50_spill] sm:$0xff] }
 0x3f0   : > { %v6637_v15 = vpop.f32.mrf.mxu0 }
 0x3f1   : > { %v2001_v21 = vpop.f32.mrf.mxu1  ;;  %v6638_v48 = vadd.f32 %v6637_v15, %v6636_v33 }
 0x3f2   : > { %v2002_v20 = vadd.f32 %v6647_v2, %v2001_v21  ;;  %v11136_v21 = vld [vmem:[#allocation73_spill] sm:$0xff] }
 0x3f3   : > { %v7410_v23 = vpop.f32.mrf.mxu1  ;;  %v1987_v6 = vadd.f32 %v6638_v48, %v1986_v60  ;;  %v6626_v60 = vadd.f32 %v9477_v58, %v9475_v28  ;;  %v11145_v28 = vld [vmem:[#allocation47_spill] sm:$0xff]  ;;  %v6620_v58 = vadd.f32 %v9463_v39, %v9459_v35  ;;  %v11146_v2 = vld [vmem:[#allocation81_spill] sm:$0xff] }
 0x3f4   : > { %v11149_v35 = vld [vmem:[#allocation49_spill] sm:$0xff] }
 0x3f5   : > { %v2006_v18 = vpop.f32.mrf.mxu1 }
 0x3f6   : > { %v2007_v5 = vadd.f32 %v6650_v61, %v2006_v18  ;;  %v11135_v18 = vld [vmem:[#allocation42_spill] sm:$0xff]  ;;  %v1972_v61 = vadd.f32 %v6629_v56, %v9469_v11 }
 0x3f7   : > { %v7413_v51 = vpop.f32.mrf.mxu1  ;;  %v2153_v56 = vld [vmem:[%s10900_s7 + $0x40] sm:$0xff] }
 0x3f8   : > { %v2036_v23 = vadd.f32 %v2007_v5, %v11134_v41  ;;  %v2030_v5 = vadd.f32 %v1977_v17, %v11146_v2  ;;  %v11157_v41 = vld [vmem:[#allocation53_spill] sm:$0xff]  ;;  %v2159_v17 = vld [vmem:[%s10900_s7 + $0x70] sm:$0xff]  ;;  %v2170_v2 = vld [vmem:[%s10900_s7 + $0xc8] sm:$0xff] }
 0x3f9   : > { %v2011_v26 = vpop.f32.mrf.mxu1 }
 0x3fa   : > { %v2012_v50 = vadd.f32 %v6653_v30, %v2011_v26  ;;  %v2035_v26 = vadd.f32 %v2002_v20, %v11136_v21  ;;  %v9553_v20 = vadd.f32 %v11151_v24, %v2030_v5  ;;  %v2171_v5 = vld [vmem:[%s10900_s7 + $0xd0] sm:$0xff]  ;;  %v2181_v24 = vld [vmem:[%s10900_s7 + $0x120] sm:$0xff] }
 0x3fb   : > { %v7416_v12 = vpop.f32.mrf.mxu1 }
 0x3fc   : > { %v2037_v47 = vadd.f32 %v2012_v50, %v11132_v45  ;;  %v11137_v12 = vld [vmem:[#allocation43_spill] sm:$0xff] }
 0x3fd   : > { %v2016_v29 = vpop.f32.mrf.mxu1  ;;  %v11144_v50 = vld [vmem:[#allocation79_spill] sm:$0xff] }
 0x3fe   : > { %v2017_v57 = vadd.f32 %v6656_v31, %v2016_v29  ;;  %v9498_v29 = vadd.f32 %v11137_v12, %v2037_v47  ;;  %v2034_v31 = vadd.f32 %v1997_v32, %v11138_v13  ;;  %v11153_v45 = vld [vmem:[#allocation51_spill] sm:$0xff]  ;;  %v11156_v32 = vld [vmem:[#allocation89_spill] sm:$0xff]  ;;  %v2147_v12 = vld [vmem:[%s10900_s7 + $0x10] sm:$0xff] }
 0x3ff   : > { %v7419_v46 = vpop.f32.mrf.mxu1  ;;  %v2025_v55 = vadd.f32 %v1952_v52, %v11156_v32  ;;  %v2150_v13 = vld [vmem:[%s10900_s7 + $0x28] sm:$0xff]  ;;  %v2189_v32 = vld [vmem:[%s10900_s7 + $0x160] sm:$0xff] }
 0x400   : > { %v2038_v1 = vadd.f32 %v2017_v57, %v11130_v3  ;;  %v11139_v46 = vld [vmem:[#allocation44_spill] sm:$0xff]  ;;  %v11141_v57 = vld [vmem:[#allocation45_spill] sm:$0xff]  ;;  %v9519_v10 = vadd.f32 %v11143_v0, %v2034_v31  ;;  %v1962_v3 = vadd.f32 %v6623_v4, %v9461_v36  ;;  %v2162_v0 = vld [vmem:[%s10900_s7 + $0x88] sm:$0xff] }
 0x401   : > { %v2021_v40 = vpop.f32.mrf.mxu1  ;;  %v9504_v30 = vadd.f32 %v11139_v46, %v2036_v23  ;;  %v9510_v33 = vadd.f32 %v11141_v57, %v2035_v26  ;;  %v2146_v26 = vld [vmem:[%s10900_s7 + $0x8] sm:$0xff]  ;;  %v2151_v31 = vld [vmem:[%s10900_s7 + $0x30] sm:$0xff]  ;;  %v2152_v46 = vld [vmem:[%s10900_s7 + $0x38] sm:$0xff] }
 0x402   : > { %v2022_v8 = vadd.f32 %v6659_v16, %v2021_v40  ;;  %v9492_v51 = vadd.f32 %v11135_v18, %v2038_v1  ;;  %v2033_v16 = vadd.f32 %v1992_v38, %v11140_v59  ;;  %v2032_v40 = vadd.f32 %v1987_v6, %v11142_v22  ;;  %v11148_v1 = vld [vmem:[#allocation83_spill] sm:$0xff]  ;;  %v11158_v18 = vld [vmem:[#allocation54_spill] sm:$0xff]  ;;  %v2155_v59 = vld [vmem:[%s10900_s7 + $0x50] sm:$0xff] }
 0x403   : > { %v7422_v63 = vpop.f32.mrf.mxu1  ;;  %v2027_v36 = vadd.f32 %v1962_v3, %v11152_v14  ;;  %v11160_v38 = vld [vmem:[#allocation55_spill] sm:$0xff]  ;;  %v2149_v6 = vld [vmem:[%s10900_s7 + $0x20] sm:$0xff]  ;;  %v2160_v22 = vld [vmem:[%s10900_s7 + $0x78] sm:$0xff] }
 0x404   : > { %v2039_v44 = vadd.f32 %v2022_v8, %v11131_v53  ;;  %v2031_v8 = vadd.f32 %v1982_v25, %v11144_v50  ;;  %v9528_v43 = vadd.f32 %v11145_v28, %v2033_v16  ;;  %v1967_v63 = vadd.f32 %v6626_v60, %v9465_v27  ;;  %v2154_v25 = vld [vmem:[%s10900_s7 + $0x48] sm:$0xff]  ;;  %v2156_v16 = vld [vmem:[%s10900_s7 + $0x58] sm:$0xff]  ;;  %v2157_v57 = vld [vmem:[%s10900_s7 + $0x60] sm:$0xff] }
 0x405   : > { %v9537_v11 = vadd.f32 %v11147_v7, %v2032_v40  ;;  %v2029_v53 = vadd.f32 %v1972_v61, %v11148_v1  ;;  %v1957_v27 = vadd.f32 %v6620_v58, %v9457_v62  ;;  %v11154_v62 = vld [vmem:[#allocation88_spill] sm:$0xff]  ;;  %v9572_v23 = vadd.f32 %v11157_v41, %v2027_v36  ;;  %v2158_v60 = vld [vmem:[%s10900_s7 + $0x68] sm:$0xff]  ;;  %v2161_v40 = vld [vmem:[%s10900_s7 + $0x80] sm:$0xff] }
 0x406   : > { %v9485_v54 = vadd.f32 %v11133_v19, %v2039_v44  ;;  %v9546_v39 = vadd.f32 %v11149_v35, %v2031_v8  ;;  %v11150_v44 = vld [vmem:[#allocation84_spill] sm:$0xff]  ;;  %v9582_v21 = vadd.f32 %v11160_v38, %v2025_v55  ;;  %v2164_v61 = vld [vmem:[%s10900_s7 + $0x98] sm:$0xff]  ;;  %v2165_v50 = vld [vmem:[%s10900_s7 + $0xa0] sm:$0xff] }
 0x407   : > { %v2028_v15 = vadd.f32 %v1967_v63, %v11150_v44  ;;  %v9560_v47 = vadd.f32 %v11153_v45, %v2029_v53  ;;  %v2026_v19 = vadd.f32 %v1957_v27, %v11154_v62  ;;  %v2163_v4 = vld [vmem:[%s10900_s7 + $0x90] sm:$0xff]  ;;  %v2166_v8 = vld [vmem:[%s10900_s7 + $0xa8] sm:$0xff]  ;;  %v2168_v58 = vld [vmem:[%s10900_s7 + $0xb8] sm:$0xff] }
 0x408   : > { %7423 = vmatprep.subr.mxu0 %v9485_v54  ;;  %11161 = vst [vmem:[#allocation23_spill] sm:$0xff] %v9582_v21  ;;  %v2167_v28 = vld [vmem:[%s10900_s7 + $0xb0] sm:$0xff]  ;;  %v2169_v63 = vld [vmem:[%s10900_s7 + $0xc0] sm:$0xff]  ;;  %v2172_v7 = vld [vmem:[%s10900_s7 + $0xd8] sm:$0xff] }
 0x409   : > { %7424 = vmatpush3.msra.mxu0 %v9485_v54  ;;  %v9566_v48 = vadd.f32 %v11155_v42, %v2028_v15  ;;  %v9577_v37 = vadd.f32 %v11158_v18, %v2026_v19  ;;  %v2174_v3 = vld [vmem:[%s10900_s7 + $0xe8] sm:$0xff]  ;;  %v2175_v1 = vld [vmem:[%s10900_s7 + $0xf0] sm:$0xff]  ;;  %v2176_v53 = vld [vmem:[%s10900_s7 + $0xf8] sm:$0xff] }
 0x40a   : > { %7425 = vmatprep.subr.mxu0 %v9492_v51  ;;  %v2177_v35 = vld [vmem:[%s10900_s7 + $0x100] sm:$0xff]  ;;  %v2178_v27 = vld [vmem:[%s10900_s7 + $0x108] sm:$0xff]  ;;  %v2179_v44 = vld [vmem:[%s10900_s7 + $0x110] sm:$0xff] }
 0x40b   : > { %7426 = vmatpush3.msra.mxu0 %v9492_v51  ;;  %11159 = vst [vmem:[#allocation22_spill] sm:$0xff] %v9577_v37  ;;  %v2180_v15 = vld [vmem:[%s10900_s7 + $0x118] sm:$0xff]  ;;  %v2182_v52 = vld [vmem:[%s10900_s7 + $0x128] sm:$0xff]  ;;  %v2183_v14 = vld [vmem:[%s10900_s7 + $0x130] sm:$0xff] }
 0x40c   : > { %7427 = vmatprep.subr.mxu0 %v9498_v29  ;;  %v2184_v36 = vld [vmem:[%s10900_s7 + $0x138] sm:$0xff]  ;;  %v2185_v45 = vld [vmem:[%s10900_s7 + $0x140] sm:$0xff]  ;;  %v2186_v62 = vld [vmem:[%s10900_s7 + $0x148] sm:$0xff] }
 0x40d   : > { %7428 = vmatpush3.msra.mxu0 %v9498_v29  ;;  %v2187_v19 = vld [vmem:[%s10900_s7 + $0x150] sm:$0xff]  ;;  %v2188_v42 = vld [vmem:[%s10900_s7 + $0x158] sm:$0xff]  ;;  %v2190_v55 = vld [vmem:[%s10900_s7 + $0x168] sm:$0xff] }
 0x40e   : > { %7429 = vmatprep.subr.mxu0 %v9504_v30  ;;  %v2191_v41 = vld [vmem:[%s10900_s7 + $0x170] sm:$0xff]  ;;  %v2192_v18 = vld [vmem:[%s10900_s7 + $0x178] sm:$0xff] }
 0x40f   : > { %7430 = vmatpush3.msra.mxu0 %v9504_v30  ;;  %v2979_v38 = vld [vmem:[#allocation13 + $0x8] sm:$0xff] }
 0x410   : > { %7431 = vmatprep.subr.mxu0 %v9510_v33  ;;  %3087 = vmatprep.mubr.f32.mxu1 %v2979_v38  ;;  %v11168_v38 = vld [vmem:[#allocation62_spill] sm:$0xff] }
 0x411   : > { %7432 = vmatpush3.msra.mxu0 %v9510_v33 }
 0x412   : > { %7433 = vmatprep.subr.mxu0 %v9519_v10 }
 0x413   : > { %7434 = vmatpush3.msra.mxu0 %v9519_v10 }
 0x414   : > { %7435 = vmatprep.subr.mxu0 %v9528_v43 }
 0x415   : > { %7436 = vmatpush3.msra.mxu0 %v9528_v43 }
 0x416   : > { %7437 = vmatprep.subr.mxu0 %v9537_v11 }
 0x417   : > { %7438 = vmatpush3.msra.mxu0 %v9537_v11 }
 0x418   : > { %7439 = vmatprep.subr.mxu0 %v9546_v39 }
 0x419   : > { %7440 = vmatpush3.msra.mxu0 %v9546_v39 }
 0x41a   : > { %7441 = vmatprep.subr.mxu0 %v9553_v20 }
 0x41b   : > { %7442 = vmatpush3.msra.mxu0 %v9553_v20 }
 0x41c   : > { %7443 = vmatprep.subr.mxu0 %v9560_v47 }
 0x41d   : > { %7444 = vmatpush3.msra.mxu0 %v9560_v47 }
 0x41e   : > { %7445 = vmatprep.subr.mxu0 %v9566_v48 }
 0x41f   : > { %7446 = vmatpush3.msra.mxu0 %v9566_v48 }
 0x420   : > { %7447 = vmatprep.subr.mxu0 %v9572_v23 }
 0x421   : > { %7448 = vmatpush3.msra.mxu0 %v9572_v23 }
 0x422   : > { %7449 = vmatprep.subr.mxu0 %v9577_v37 }
 0x423   : > { %7450 = vmatpush3.msra.mxu0 %v9577_v37 }
 0x424   : > { %7451 = vmatprep.subr.mxu0 %v9582_v21 }
 0x425   : > { %7452 = vmatpush3.msra.mxu0 %v9582_v21 }
 0x426   : > { %7454 = vmatmul.mubr.msk.f32.vlgmr.msra.gmra.mxu0 %vm748_vm1, %v2146_v26 }
 0x427   : > { %7456 = vmatprep.mubr.msk.f32.mxu0 %vm748_vm1, %v2147_v12 }
 0x42a   : > { %7457 = vmatmul.mubr.msk.f32.gmra.mxu0 %vm748_vm1, %v2148_v34 }
 0x42b   : > { %7459 = vmatprep.mubr.msk.f32.mxu0 %vm748_vm1, %v2149_v6 }
 0x42e   : > { %7460 = vmatmul.mubr.msk.f32.gmra.mxu0 %vm748_vm1, %v2150_v13 }
 0x42f   : > { %7462 = vmatprep.mubr.msk.f32.mxu0 %vm748_vm1, %v2151_v31 }
 0x432   : > { %7463 = vmatmul.mubr.msk.f32.gmra.mxu0 %vm748_vm1, %v2152_v46 }
 0x433   : > { %7465 = vmatprep.mubr.msk.f32.mxu0 %vm748_vm1, %v2153_v56 }
 0x436   : > { %7466 = vmatmul.mubr.msk.f32.gmra.mxu0 %vm748_vm1, %v2154_v25 }
 0x437   : > { %7468 = vmatprep.mubr.msk.f32.mxu0 %vm748_vm1, %v2155_v59 }
 0x43a   : > { %7469 = vmatmul.mubr.msk.f32.gmra.mxu0 %vm748_vm1, %v2156_v16 }
 0x43b   : > { %7471 = vmatprep.mubr.msk.f32.mxu0 %vm748_vm1, %v2157_v57 }
 0x43e   : > { %7472 = vmatmul.mubr.msk.f32.gmra.mxu0 %vm748_vm1, %v2158_v60 }
 0x43f   : > { %7474 = vmatprep.mubr.msk.f32.mxu0 %vm748_vm1, %v2159_v17 }
 0x442   : > { %7475 = vmatmul.mubr.msk.f32.gmra.mxu0 %vm748_vm1, %v2160_v22 }
 0x443   : > { %7477 = vmatprep.mubr.msk.f32.mxu0 %vm748_vm1, %v2161_v40 }
 0x446   : > { %7478 = vmatmul.mubr.msk.f32.gmra.mxu0 %vm748_vm1, %v2162_v0 }
 0x447   : > { %7480 = vmatprep.mubr.msk.f32.mxu0 %vm748_vm1, %v2163_v4 }
 0x44a   : > { %7481 = vmatmul.mubr.msk.f32.gmra.mxu0 %vm748_vm1, %v2164_v61 }
 0x44b   : > { %7483 = vmatprep.mubr.msk.f32.mxu0 %vm748_vm1, %v2165_v50 }
 0x44e   : > { %7484 = vmatmul.mubr.msk.f32.gmra.mxu0 %vm748_vm1, %v2166_v8 }
 0x44f   : > { %7486 = vmatprep.mubr.msk.f32.mxu0 %vm748_vm1, %v2167_v28 }
 0x452   : > { %7487 = vmatmul.mubr.msk.f32.gmra.mxu0 %vm748_vm1, %v2168_v58 }
 0x453   : > { %7489 = vmatprep.mubr.msk.f32.mxu0 %vm748_vm1, %v2169_v63 }
 0x456   : > { %7490 = vmatmul.mubr.msk.f32.gmra.mxu0 %vm748_vm1, %v2170_v2 }
 0x457   : > { %7492 = vmatprep.mubr.msk.f32.mxu0 %vm748_vm1, %v2171_v5 }
 0x45a   : > { %7493 = vmatmul.mubr.msk.f32.gmra.mxu0 %vm748_vm1, %v2172_v7 }
 0x45b   : > { %7495 = vmatprep.mubr.msk.f32.mxu0 %vm748_vm1, %v2173_v9 }
 0x45e   : > { %7496 = vmatmul.mubr.msk.f32.gmra.mxu0 %vm748_vm1, %v2174_v3 }
 0x45f   : > { %7498 = vmatprep.mubr.msk.f32.mxu0 %vm748_vm1, %v2175_v1 }
 0x462   : > { %7499 = vmatmul.mubr.msk.f32.gmra.mxu0 %vm748_vm1, %v2176_v53  ;;  %v11162_v53 = vld [vmem:[#allocation57_spill] sm:$0xff] }
 0x463   : > { %7501 = vmatprep.mubr.msk.f32.mxu0 %vm748_vm1, %v2177_v35 }
 0x466   : > { %7502 = vmatmul.mubr.msk.f32.gmra.mxu0 %vm748_vm1, %v2178_v27 }
 0x467   : > { %7504 = vmatprep.mubr.msk.f32.mxu0 %vm748_vm1, %v2179_v44  ;;  %v11163_v44 = vld [vmem:[#allocation56_spill] sm:$0xff] }
 0x46a   : > { %7505 = vmatmul.mubr.msk.f32.gmra.mxu0 %vm748_vm1, %v2180_v15 }
 0x46b   : > { %7507 = vmatprep.mubr.msk.f32.mxu0 %vm748_vm1, %v2181_v24  ;;  %v11164_v24 = vld [vmem:[#allocation59_spill] sm:$0xff] }
 0x46e   : > { %7508 = vmatmul.mubr.msk.f32.gmra.mxu0 %vm748_vm1, %v2182_v52 }
 0x46f   : > { %7510 = vmatprep.mubr.msk.f32.mxu0 %vm748_vm1, %v2183_v14 }
 0x472   : > { %7511 = vmatmul.mubr.msk.f32.gmra.mxu0 %vm748_vm1, %v2184_v36  ;;  %v11165_v36 = vld [vmem:[#allocation60_spill] sm:$0xff] }
 0x473   : > { %7513 = vmatprep.mubr.msk.f32.mxu0 %vm748_vm1, %v2185_v45 }
 0x476   : > { %7514 = vmatmul.mubr.msk.f32.gmra.mxu0 %vm748_vm1, %v2186_v62 }
 0x477   : > { %7516 = vmatprep.mubr.msk.f32.mxu0 %vm748_vm1, %v2187_v19  ;;  %v11166_v19 = vld [vmem:[#allocation58_spill] sm:$0xff] }
 0x47a   : > { %7517 = vmatmul.mubr.msk.f32.gmra.mxu0 %vm748_vm1, %v2188_v42 }
 0x47b   : > { %7519 = vmatprep.mubr.msk.f32.mxu0 %vm748_vm1, %v2189_v32  ;;  %v11167_v32 = vld [vmem:[#allocation61_spill] sm:$0xff] }
 0x47e   : > { %7520 = vmatmul.mubr.msk.f32.gmra.mxu0 %vm748_vm1, %v2190_v55 }
 0x47f   : > { %7522 = vmatprep.mubr.msk.f32.mxu0 %vm748_vm1, %v2191_v41 }
 0x482   : > { %7523 = vmatmul.mubr.msk.f32.gmra.mxu0 %vm748_vm1, %v2192_v18 }
 0x4e6   : > { %v9775_v26 = vpop.f32.mrf.mxu0 }
 0x4e8   : > { %v9777_v12 = vpop.f32.mrf.mxu0 }
 0x4ea   : > { %v9779_v34 = vpop.f32.mrf.mxu0 }
 0x4ec   : > { %v9781_v6 = vpop.f32.mrf.mxu0 }
 0x4ee   : > { %v9783_v13 = vpop.f32.mrf.mxu0 }
 0x4f0   : > { %v9785_v31 = vpop.f32.mrf.mxu0 }
 0x4f2   : > { %v9787_v46 = vpop.f32.mrf.mxu0 }
 0x4f4   : > { %v9789_v56 = vpop.f32.mrf.mxu0 }
 0x4f6   : > { %v7467_v25 = vpop.f32.mrf.mxu0 }
 0x4f8   : > { %v9791_v59 = vpop.f32.mrf.mxu0 }
 0x4fa   : > { %v7470_v16 = vpop.f32.mrf.mxu0 }
 0x4fc   : > { %v2741_v57 = vpop.f32.mrf.mxu0 }
 0x4fe   : > { %v7473_v60 = vpop.f32.mrf.mxu0 }
 0x4ff   : > { %v2757_v55 = vadd.f32 %v7473_v60, %v11167_v32  ;;  %v11174_v32 = vld [vmem:[#allocation72_spill] sm:$0xff] }
 0x500   : > { %v2751_v17 = vpop.f32.mrf.mxu0 }
 0x501   : > { %v2943_v60 = vmax.f32 %v2757_v55, 0.0 }
 0x502   : > { %v7476_v22 = vpop.f32.mrf.mxu0 }
 0x503   : > { %v2767_v35 = vadd.f32 %v7476_v22, %v11162_v53  ;;  %v11169_v22 = vld [vmem:[#allocation63_spill] sm:$0xff] }
 0x504   : > { %v2761_v40 = vpop.f32.mrf.mxu0  ;;  %v2752_v53 = vadd.f32 %v2751_v17, %v11169_v22  ;;  %v11177_v22 = vld [vmem:[#allocation80_spill] sm:$0xff] }
 0x505   : > { %v2762_v52 = vadd.f32 %v2761_v40, %v11164_v24  ;;  %v2945_v41 = vmax.f32 %v2767_v35, 0.0  ;;  %v11170_v40 = vld [vmem:[#allocation64_spill] sm:$0xff]  ;;  %v11171_v24 = vld [vmem:[#allocation65_spill] sm:$0xff] }
 0x506   : > { %v9793_v0 = vpop.f32.mrf.mxu0 }
 0x508   : > { %v9795_v4 = vpop.f32.mrf.mxu0 }
 0x50a   : > { %v9797_v61 = vpop.f32.mrf.mxu0 }
 0x50c   : > { %v9799_v50 = vpop.f32.mrf.mxu0 }
 0x50e   : > { %v9801_v8 = vpop.f32.mrf.mxu0 }
 0x510   : > { %v9803_v28 = vpop.f32.mrf.mxu0 }
 0x512   : > { %v7488_v58 = vpop.f32.mrf.mxu0 }
 0x514   : > { %v2801_v63 = vpop.f32.mrf.mxu0 }
 0x516   : > { %v7491_v2 = vpop.f32.mrf.mxu0 }
 0x518   : > { %v2811_v5 = vpop.f32.mrf.mxu0 }
 0x51a   : > { %v7494_v7 = vpop.f32.mrf.mxu0 }
 0x51c   : > { %v2821_v9 = vpop.f32.mrf.mxu0 }
 0x51e   : > { %v7497_v3 = vpop.f32.mrf.mxu0 }
 0x51f   : > { %v2837_v45 = vadd.f32 %v7497_v3, %v11165_v36  ;;  %v2827_v3 = vadd.f32 %v7494_v7, %v11170_v40  ;;  %v11172_v36 = vld [vmem:[#allocation68_spill] sm:$0xff]  ;;  %v2817_v7 = vadd.f32 %v7491_v2, %v11174_v32  ;;  %v11178_v2 = vld [vmem:[#allocation82_spill] sm:$0xff] }
 0x520   : > { %v2831_v1 = vpop.f32.mrf.mxu0  ;;  %v2807_v40 = vadd.f32 %v7488_v58, %v11178_v2  ;;  %v11182_v58 = vld [vmem:[#allocation91_spill] sm:$0xff] }
 0x521   : > { %v2832_v21 = vadd.f32 %v2831_v1, %v11168_v38  ;;  %v2822_v1 = vadd.f32 %v2821_v9, %v11172_v36  ;;  %v11176_v38 = vld [vmem:[#allocation77_spill] sm:$0xff] }
 0x522   : > { %v7500_v27 = vpop.f32.mrf.mxu0  ;;  %v2812_v9 = vadd.f32 %v2811_v5, %v11176_v38  ;;  %v11180_v5 = vld [vmem:[#allocation87_spill] sm:$0xff] }
 0x523   : > { %v2847_v15 = vadd.f32 %v7500_v27, %v11163_v44  ;;  %v2944_v27 = vmax.f32 %v2762_v52, 0.0  ;;  %v2942_v52 = vmax.f32 %v2752_v53, 0.0 }
 0x524   : > { %v2841_v14 = vpop.f32.mrf.mxu0  ;;  %v2954_v36 = vmax.f32 %v2812_v9, 0.0 }
 0x525   : > { %v2961_v62 = vmax.f32 %v2847_v15, 0.0  ;;  %v2842_v42 = vadd.f32 %v2841_v14, %v11166_v19  ;;  %v2959_v15 = vmax.f32 %v2837_v45, 0.0  ;;  %v2747_v14 = vadd.f32 %v7470_v16, %v11171_v24 }
 0x526   : > { %v9811_v18 = vpop.f32.mrf.mxu0  ;;  %v2958_v19 = vmax.f32 %v2832_v21, 0.0  ;;  %v2957_v45 = vmax.f32 %v2827_v3, 0.0  ;;  %v2956_v21 = vmax.f32 %v2822_v1, 0.0  ;;  %v2955_v3 = vmax.f32 %v2817_v7, 0.0 }
 0x527   : > { %v2960_v37 = vmax.f32 %v2842_v42, 0.0  ;;  %6746 = vmatprep.subr.mxu1 %v2961_v62  ;;  %v11173_v62 = vld [vmem:[#allocation70_spill] sm:$0xff]  ;;  %v2941_v55 = vmax.f32 %v2747_v14, 0.0 }
 0x528   : > { %v9815_v44 = vpop.f32.mrf.mxu0  ;;  %6747 = vmatpush3.msra.mxu1 %v2945_v41  ;;  %v2742_v17 = vadd.f32 %v2741_v57, %v11173_v62  ;;  %v2732_v57 = vadd.f32 %v9791_v59, %v11177_v22  ;;  %v11181_v59 = vld [vmem:[#allocation90_spill] sm:$0xff]  ;;  %v11187_v22 = vld [vmem:[#allocation96_spill] sm:$0xff] }
 0x529   : > { %6748 = vmatprep.subr.mxu1 %v2960_v37  ;;  %v11175_v37 = vld [vmem:[#allocation75_spill] sm:$0xff]  ;;  %v2722_v1 = vadd.f32 %v9789_v56, %v11181_v59 }
 0x52a   : > { %v9819_v35 = vpop.f32.mrf.mxu0  ;;  %6749 = vmatpush3.msra.mxu1 %v2944_v27  ;;  %v2737_v16 = vadd.f32 %v7467_v25, %v11175_v37  ;;  %v2940_v53 = vmax.f32 %v2742_v17, 0.0  ;;  %v11179_v25 = vld [vmem:[#allocation85_spill] sm:$0xff]  ;;  %v2797_v17 = vadd.f32 %v9801_v8, %v11182_v58  ;;  %v11186_v8 = vld [vmem:[#allocation95_spill] sm:$0xff] }
 0x52b   : > { %6750 = vmatprep.subr.mxu1 %v2959_v15  ;;  %v2727_v15 = vadd.f32 %v9787_v46, %v11179_v25  ;;  %v11183_v46 = vld [vmem:[#allocation92_spill] sm:$0xff]  ;;  %v2936_v38 = vmax.f32 %v2722_v1, 0.0 }
 0x52c   : > { %v9823_v42 = vpop.f32.mrf.mxu0  ;;  %6751 = vmatpush3.msra.mxu1 %v2943_v60  ;;  %v2939_v24 = vmax.f32 %v2737_v16, 0.0  ;;  %v2802_v60 = vadd.f32 %v2801_v63, %v11180_v5  ;;  %v2717_v32 = vadd.f32 %v9783_v13, %v11183_v46  ;;  %v11184_v63 = vld [vmem:[#allocation93_spill] sm:$0xff]  ;;  %v11185_v16 = vld [vmem:[#allocation94_spill] sm:$0xff]  ;;  %v2951_v13 = vmax.f32 %v2797_v17, 0.0 }
 0x52d   : > { %6752 = vmatprep.subr.mxu1 %v2958_v19  ;;  %v2938_v19 = vmax.f32 %v2732_v57, 0.0  ;;  %v2937_v7 = vmax.f32 %v2727_v15, 0.0  ;;  %v2792_v37 = vadd.f32 %v9803_v28, %v11184_v63  ;;  %v2707_v57 = vadd.f32 %v9779_v34, %v11187_v22  ;;  %v11188_v28 = vld [vmem:[#allocation97_spill] sm:$0xff]  ;;  %v11191_v34 = vld [vmem:[#allocation100_spill] sm:$0xff]  ;;  %v11194_v63 = vld [vmem:[#allocation103_spill] sm:$0xff] }
 0x52e   : > { %v9827_v41 = vpop.f32.mrf.mxu0  ;;  %6753 = vmatpush3.msra.mxu1 %v2942_v52  ;;  %v2953_v52 = vmax.f32 %v2807_v40, 0.0  ;;  %v2952_v56 = vmax.f32 %v2802_v60, 0.0  ;;  %v2782_v40 = vadd.f32 %v9799_v50, %v11188_v28  ;;  %v11192_v50 = vld [vmem:[#allocation101_spill] sm:$0xff]  ;;  %v2981_v28 = vld [vmem:[#allocation13 + $0x18] sm:$0xff] }
 0x52f   : > { %6754 = vmatprep.subr.mxu1 %v2957_v45  ;;  %v2933_v59 = vmax.f32 %v2707_v57, 0.0  ;;  %v11197_v57 = vld [vmem:[#allocation106_spill] sm:$0xff] }
 0x530   : > { %v9832_v27 = vpop.f32.mrf.mxu0  ;;  %6755 = vmatpush3.msra.mxu1 %v2941_v55  ;;  %v2712_v55 = vadd.f32 %v9785_v31, %v11185_v16  ;;  %v11189_v31 = vld [vmem:[#allocation98_spill] sm:$0xff]  ;;  %v2948_v58 = vmax.f32 %v2782_v40, 0.0  ;;  %v2985_v40 = vld [vmem:[#allocation13 + $0x38] sm:$0xff] }
 0x531   : > { %6756 = vmatprep.subr.mxu1 %v2956_v21  ;;  %v2787_v21 = vadd.f32 %v9797_v61, %v11186_v8  ;;  %v2702_v25 = vadd.f32 %v9781_v6, %v11189_v31  ;;  %v11190_v61 = vld [vmem:[#allocation99_spill] sm:$0xff]  ;;  %v11193_v6 = vld [vmem:[#allocation102_spill] sm:$0xff] }
 0x532   : > { %v9837_v14 = vpop.f32.mrf.mxu0  ;;  %6757 = vmatpush3.msra.mxu1 %v2940_v53  ;;  %v2935_v53 = vmax.f32 %v2717_v32, 0.0  ;;  %v2934_v15 = vmax.f32 %v2712_v55, 0.0  ;;  %v2777_v5 = vadd.f32 %v9793_v0, %v11190_v61  ;;  %v2692_v17 = vadd.f32 %v9777_v12, %v11193_v6  ;;  %v2982_v12 = vld [vmem:[#allocation13 + $0x20] sm:$0xff]  ;;  %v11202_v6 = vld [vmem:[#allocation111_spill] sm:$0xff] }
 0x533   : > { %6758 = vmatprep.subr.mxu1 %v2955_v3  ;;  %v2950_v3 = vmax.f32 %v2792_v37, 0.0  ;;  %v2949_v60 = vmax.f32 %v2787_v21, 0.0  ;;  %v11196_v21 = vld [vmem:[#allocation105_spill] sm:$0xff] }
 0x534   : > { %v9842_v62 = vpop.f32.mrf.mxu0  ;;  %6759 = vmatpush3.msra.mxu1 %v2939_v24  ;;  %v2947_v0 = vmax.f32 %v2777_v5, 0.0 }
 0x535   : > { %6760 = vmatprep.subr.mxu1 %v2954_v36  ;;  %v2697_v36 = vadd.f32 %v9775_v26, %v11191_v34  ;;  %v2988_v34 = vld [vmem:[#allocation13 + $0x50] sm:$0xff] }
 0x536   : > { %v9848_v45 = vpop.f32.mrf.mxu0  ;;  %6761 = vmatpush3.msra.mxu1 %v2938_v19  ;;  %v2772_v19 = vadd.f32 %v9795_v4, %v11192_v50  ;;  %v2978_v4 = vld [vmem:[#allocation13] sm:$0xff] }
 0x537   : > { %6762 = vmatprep.subr.mxu1 %v2953_v52  ;;  %v2932_v52 = vmax.f32 %v2702_v25, 0.0  ;;  %v2931_v32 = vmax.f32 %v2697_v36, 0.0  ;;  %v11200_v36 = vld [vmem:[#allocation109_spill] sm:$0xff] }
 0x538   : > { %v9854_v9 = vpop.f32.mrf.mxu0  ;;  %6763 = vmatpush3.msra.mxu1 %v2937_v7  ;;  %v2946_v26 = vmax.f32 %v2772_v19, 0.0 }
 0x539   : > { %6764 = vmatprep.subr.mxu1 %v2952_v56  ;;  %v2930_v56 = vmax.f32 %v2692_v17, 0.0  ;;  %v2887_v17 = vadd.f32 %v9837_v14, %v11202_v6  ;;  %v11205_v14 = vld [vmem:[#allocation114_spill] sm:$0xff]  ;;  %v2989_v6 = vld [vmem:[#allocation13 + $0x58] sm:$0xff] }
 0x53a   : > { %v7518_v2 = vpop.f32.mrf.mxu0  ;;  %6765 = vmatpush3.msra.mxu1 %v2936_v38  ;;  %v11195_v38 = vld [vmem:[#allocation104_spill] sm:$0xff] }
 0x53b   : > { %6766 = vmatprep.subr.mxu1 %v2951_v13 }
 0x53c   : > { %v2901_v24 = vpop.f32.mrf.mxu0  ;;  %6767 = vmatpush3.msra.mxu1 %v2935_v53 }
 0x53d   : > { %6768 = vmatprep.subr.mxu1 %v2950_v3  ;;  %v11198_v3 = vld [vmem:[#allocation107_spill] sm:$0xff] }
 0x53e   : > { %v7521_v1 = vpop.f32.mrf.mxu0  ;;  %6769 = vmatpush3.msra.mxu1 %v2934_v15  ;;  %v2907_v31 = vadd.f32 %v7518_v2, %v11198_v3  ;;  %v11199_v15 = vld [vmem:[#allocation108_spill] sm:$0xff]  ;;  %v11201_v2 = vld [vmem:[#allocation110_spill] sm:$0xff] }
 0x53f   : > { %6770 = vmatprep.subr.mxu1 %v2949_v60  ;;  %v2917_v13 = vadd.f32 %v7521_v1, %v11196_v21  ;;  %v2902_v61 = vadd.f32 %v2901_v24, %v11199_v15  ;;  %v2984_v60 = vld [vmem:[#allocation13 + $0x30] sm:$0xff]  ;;  %v2892_v50 = vadd.f32 %v9854_v9, %v11201_v2  ;;  %v2987_v24 = vld [vmem:[#allocation13 + $0x48] sm:$0xff]  ;;  %v2990_v9 = vld [vmem:[#allocation13 + $0x60] sm:$0xff] }
 0x540   : > { %v2911_v46 = vpop.f32.mrf.mxu0  ;;  %6771 = vmatpush3.msra.mxu1 %v2933_v59  ;;  %v2897_v59 = vadd.f32 %v9848_v45, %v11200_v36  ;;  %v2973_v1 = vmax.f32 %v2907_v31, 0.0  ;;  %v11203_v45 = vld [vmem:[#allocation112_spill] sm:$0xff]  ;;  %v3000_v21 = vld [vmem:[#allocation13 + $0xb0] sm:$0xff]  ;;  %v3009_v15 = vld [vmem:[#allocation13 + $0xf8] sm:$0xff] }
 0x541   : > { %6772 = vmatprep.subr.mxu1 %v2948_v58  ;;  %v2912_v53 = vadd.f32 %v2911_v46, %v11197_v57  ;;  %v2975_v25 = vmax.f32 %v2917_v13, 0.0  ;;  %v2972_v19 = vmax.f32 %v2902_v61, 0.0  ;;  %v2991_v58 = vld [vmem:[#allocation13 + $0x68] sm:$0xff]  ;;  %v2882_v46 = vadd.f32 %v9842_v62, %v11203_v45  ;;  %v2993_v62 = vld [vmem:[#allocation13 + $0x78] sm:$0xff]  ;;  %v3002_v31 = vld [vmem:[#allocation13 + $0xc0] sm:$0xff] }
 0x542   : > { %v7524_v7 = vpop.f32.mrf.mxu0  ;;  %6773 = vmatpush3.msra.mxu1 %v2932_v52  ;;  %v2971_v52 = vmax.f32 %v2897_v59, 0.0  ;;  %v11208_v13 = vld [vmem:[#allocation117_spill] sm:$0xff]  ;;  %v3008_v61 = vld [vmem:[#allocation13 + $0xf0] sm:$0xff]  ;;  %v3014_v36 = vld [vmem:[#allocation13 + $0x120] sm:$0xff] }
 0x543   : > { %v2927_v37 = vadd.f32 %v7524_v7, %v11194_v63  ;;  %6774 = vmatprep.subr.mxu1 %v2947_v0  ;;  %v2974_v5 = vmax.f32 %v2912_v53, 0.0  ;;  %v2970_v0 = vmax.f32 %v2892_v50, 0.0  ;;  %v11204_v7 = vld [vmem:[#allocation113_spill] sm:$0xff]  ;;  %v2969_v63 = vmax.f32 %v2887_v17, 0.0  ;;  %v3018_v59 = vld [vmem:[#allocation13 + $0x140] sm:$0xff]  ;;  %v3021_v2 = vld [vmem:[#allocation13 + $0x158] sm:$0xff] }
 0x544   : > { %v2921_v16 = vpop.f32.mrf.mxu0  ;;  %6775 = vmatpush3.msra.mxu1 %v2931_v32  ;;  %v2994_v32 = vld [vmem:[#allocation13 + $0x80] sm:$0xff]  ;;  %v3020_v50 = vld [vmem:[#allocation13 + $0x150] sm:$0xff] }
 0x545   : > { %v2977_v55 = vmax.f32 %v2927_v37, 0.0  ;;  %v2922_v8 = vadd.f32 %v2921_v16, %v11195_v38  ;;  %6776 = vmatprep.subr.mxu1 %v2946_v26  ;;  %v2877_v26 = vadd.f32 %v9827_v41, %v11204_v7  ;;  %v2872_v37 = vadd.f32 %v9832_v27, %v11205_v14  ;;  %v2997_v16 = vld [vmem:[#allocation13 + $0x98] sm:$0xff]  ;;  %v11207_v41 = vld [vmem:[#allocation116_spill] sm:$0xff]  ;;  %v2996_v27 = vld [vmem:[#allocation13 + $0x90] sm:$0xff] }
 0x546   : > { %6777 = vmatpush3.msra.mxu1 %v2930_v56  ;;  %v2968_v56 = vmax.f32 %v2882_v46, 0.0  ;;  %v2992_v17 = vld [vmem:[#allocation13 + $0x70] sm:$0xff]  ;;  %v2998_v45 = vld [vmem:[#allocation13 + $0xa0] sm:$0xff]  ;;  %v3001_v46 = vld [vmem:[#allocation13 + $0xb8] sm:$0xff] }
 0x547   : > { %v2976_v22 = vmax.f32 %v2922_v8, 0.0  ;;  %3088 = vmatmul.mubr.f32.vlgmr.msra.gmra.mxu1 %v2978_v4  ;;  %7525 = vmatprep.subr.mxu1 %v11124_v49  ;;  %v11206_v4 = vld [vmem:[#allocation115_spill] sm:$0xff]  ;;  %v2967_v38 = vmax.f32 %v2877_v26, 0.0  ;;  %v2862_v8 = vadd.f32 %v9823_v42, %v11207_v41  ;;  %v2999_v42 = vld [vmem:[#allocation13 + $0xa8] sm:$0xff]  ;;  %v3016_v26 = vld [vmem:[#allocation13 + $0x130] sm:$0xff] }
 0x548   : > { %7526 = vmatpush3.msra.mxu1 %v2977_v55  ;;  %3092 = vmatprep.mubr.f32.mxu1 %v2982_v12  ;;  %v2867_v55 = vadd.f32 %v9819_v35, %v11206_v4  ;;  %v2966_v12 = vmax.f32 %v2872_v37, 0.0  ;;  %v11209_v35 = vld [vmem:[#allocation118_spill] sm:$0xff]  ;;  %v3013_v7 = vld [vmem:[#allocation13 + $0x118] sm:$0xff]  ;;  %v3022_v14 = vld [vmem:[#allocation13 + $0x160] sm:$0xff] }
 0x549   : > { %7527 = vmatprep.subr.mxu1 %v11124_v49  ;;  %v2852_v53 = vadd.f32 %v9815_v44, %v11209_v35  ;;  %v3005_v44 = vld [vmem:[#allocation13 + $0xd8] sm:$0xff] }
 0x54a   : > { %7528 = vmatpush3.msra.mxu1 %v2976_v22  ;;  %v2857_v22 = vadd.f32 %v9811_v18, %v11208_v13  ;;  %v2965_v57 = vmax.f32 %v2867_v55, 0.0  ;;  %v3424_v13 = vld [vmem:[#allocation7 + $0x140] sm:$0xff] }
 0x54b   : > { %3093 = vmatmul.mubr.f32.gmra.mxu1 %v2981_v28  ;;  %7529 = vmatprep.subr.mxu1 %v11124_v49  ;;  %v2964_v28 = vmax.f32 %v2862_v8, 0.0  ;;  %v2962_v18 = vmax.f32 %v2852_v53, 0.0 }
 0x54c   : > { %7530 = vmatpush3.msra.mxu1 %v2975_v25  ;;  %3097 = vmatprep.mubr.f32.mxu1 %v2985_v40  ;;  %v3003_v40 = vld [vmem:[#allocation13 + $0xc8] sm:$0xff]  ;;  %v2963_v3 = vmax.f32 %v2857_v22, 0.0  ;;  %v3006_v25 = vld [vmem:[#allocation13 + $0xe0] sm:$0xff] }
 0x54d   : > { %7531 = vmatprep.subr.mxu1 %v11124_v49  ;;  %7632 = vmatprep.mubr.msk.f32.mxu0 %vm748_vm1, %v3424_v13 }
 0x54e   : > { %7532 = vmatpush3.msra.mxu1 %v2974_v5  ;;  %v3012_v5 = vld [vmem:[#allocation13 + $0x110] sm:$0xff] }
 0x54f   : > { %3098 = vmatmul.mubr.f32.gmra.mxu1 %v2984_v60  ;;  %7533 = vmatprep.subr.mxu1 %v11124_v49  ;;  %v3011_v60 = vld [vmem:[#allocation13 + $0x108] sm:$0xff] }
 0x550   : > { %7534 = vmatpush3.msra.mxu1 %v2973_v1  ;;  %3102 = vmatprep.mubr.f32.mxu1 %v2988_v34  ;;  %v3015_v34 = vld [vmem:[#allocation13 + $0x128] sm:$0xff]  ;;  %v3017_v1 = vld [vmem:[#allocation13 + $0x138] sm:$0xff] }
 0x551   : > { %7535 = vmatprep.subr.mxu1 %v11124_v49 }
 0x552   : > { %7536 = vmatpush3.msra.mxu1 %v2972_v19  ;;  %v2980_v19 = vld [vmem:[#allocation13 + $0x10] sm:$0xff] }
 0x553   : > { %3103 = vmatmul.mubr.f32.gmra.mxu1 %v2987_v24  ;;  %7537 = vmatprep.subr.mxu1 %v11124_v49  ;;  %v2983_v24 = vld [vmem:[#allocation13 + $0x28] sm:$0xff] }
 0x554   : > { %7538 = vmatpush3.msra.mxu1 %v2971_v52  ;;  %3107 = vmatprep.mubr.f32.mxu1 %v2991_v58  ;;  %v2986_v58 = vld [vmem:[#allocation13 + $0x40] sm:$0xff]  ;;  %v2995_v52 = vld [vmem:[#allocation13 + $0x88] sm:$0xff] }
 0x555   : > { %7539 = vmatprep.subr.mxu1 %v11124_v49 }
 0x556   : > { %7540 = vmatpush3.msra.mxu1 %v2970_v0  ;;  %v3004_v0 = vld [vmem:[#allocation13 + $0xd0] sm:$0xff] }
 0x557   : > { %3108 = vmatmul.mubr.f32.gmra.mxu1 %v2990_v9  ;;  %7541 = vmatprep.subr.mxu1 %v11124_v49  ;;  %v3007_v9 = vld [vmem:[#allocation13 + $0xe8] sm:$0xff] }
 0x558   : > { %7542 = vmatpush3.msra.mxu1 %v2969_v63  ;;  %3112 = vmatprep.mubr.f32.mxu1 %v2994_v32  ;;  %v3010_v32 = vld [vmem:[#allocation13 + $0x100] sm:$0xff]  ;;  %v3019_v63 = vld [vmem:[#allocation13 + $0x148] sm:$0xff] }
 0x559   : > { %7543 = vmatprep.subr.mxu1 %v11124_v49 }
 0x55a   : > { %7544 = vmatpush3.msra.mxu1 %v2968_v56 }
 0x55b   : > { %3113 = vmatmul.mubr.f32.gmra.mxu1 %v2993_v62  ;;  %7545 = vmatprep.subr.mxu1 %v11124_v49 }
 0x55c   : > { %7546 = vmatpush3.msra.mxu1 %v2967_v38  ;;  %3117 = vmatprep.mubr.f32.mxu1 %v2997_v16 }
 0x55d   : > { %7547 = vmatprep.subr.mxu1 %v11124_v49 }
 0x55e   : > { %7548 = vmatpush3.msra.mxu1 %v2966_v12 }
 0x55f   : > { %3118 = vmatmul.mubr.f32.gmra.mxu1 %v2996_v27  ;;  %7549 = vmatprep.subr.mxu1 %v11124_v49 }
 0x560   : > { %7550 = vmatpush3.msra.mxu1 %v2965_v57  ;;  %3122 = vmatprep.mubr.f32.mxu1 %v3000_v21 }
 0x561   : > { %7551 = vmatprep.subr.mxu1 %v11124_v49 }
 0x562   : > { %7552 = vmatpush3.msra.mxu1 %v2964_v28 }
 0x563   : > { %3123 = vmatmul.mubr.f32.gmra.mxu1 %v2999_v42  ;;  %7553 = vmatprep.subr.mxu1 %v11124_v49 }
 0x564   : > { %7554 = vmatpush3.msra.mxu1 %v2963_v3  ;;  %3127 = vmatprep.mubr.f32.mxu1 %v3003_v40 }
 0x565   : > { %7555 = vmatprep.subr.mxu1 %v11124_v49 }
 0x566   : > { %7556 = vmatpush3.msra.mxu1 %v2962_v18 }
 0x567   : > { %3128 = vmatmul.mubr.f32.gmra.mxu1 %v3002_v31 }
 0x568   : > { %3132 = vmatprep.mubr.f32.mxu1 %v3006_v25 }
 0x56b   : > { %3133 = vmatmul.mubr.f32.gmra.mxu1 %v3005_v44 }
 0x56c   : > { %3137 = vmatprep.mubr.f32.mxu1 %v3009_v15 }
 0x56f   : > { %3138 = vmatmul.mubr.f32.gmra.mxu1 %v3008_v61 }
 0x570   : > { %3142 = vmatprep.mubr.f32.mxu1 %v3012_v5 }
 0x573   : > { %3143 = vmatmul.mubr.f32.gmra.mxu1 %v3011_v60 }
 0x574   : > { %3147 = vmatprep.mubr.f32.mxu1 %v3015_v34 }
 0x577   : > { %3148 = vmatmul.mubr.f32.gmra.mxu1 %v3014_v36 }
 0x578   : > { %3152 = vmatprep.mubr.f32.mxu1 %v3018_v59 }
 0x57b   : > { %3153 = vmatmul.mubr.f32.gmra.mxu1 %v3017_v1 }
 0x57c   : > { %3157 = vmatprep.mubr.f32.mxu1 %v3021_v2 }
 0x57f   : > { %3158 = vmatmul.mubr.f32.gmra.mxu1 %v3020_v50 }
 0x580   : > { %7557 = vmatprep.mubr.msk.f32.mxu1 %vm8338_vm0, %v11124_v49 }
 0x583   : > { %7558 = vmatmul.mubr.f32.vlgmr.msra.gmra.mxu1 %v2980_v19 }
 0x584   : > { %7560 = vmatprep.mubr.msk.f32.mxu1 %vm8338_vm0, %v11124_v49 }
 0x587   : > { %7561 = vmatmul.mubr.f32.gmra.mxu1 %v2983_v24 }
 0x588   : > { %7563 = vmatprep.mubr.msk.f32.mxu1 %vm8338_vm0, %v11124_v49 }
 0x58b   : > { %7564 = vmatmul.mubr.f32.gmra.mxu1 %v2986_v58 }
 0x58c   : > { %7566 = vmatprep.mubr.msk.f32.mxu1 %vm8338_vm0, %v11124_v49 }
 0x58f   : > { %7567 = vmatmul.mubr.f32.gmra.mxu1 %v2989_v6 }
 0x590   : > { %7569 = vmatprep.mubr.msk.f32.mxu1 %vm8338_vm0, %v11124_v49 }
 0x593   : > { %7570 = vmatmul.mubr.f32.gmra.mxu1 %v2992_v17 }
 0x594   : > { %7572 = vmatprep.mubr.msk.f32.mxu1 %vm8338_vm0, %v11124_v49 }
 0x597   : > { %7573 = vmatmul.mubr.f32.gmra.mxu1 %v2995_v52 }
 0x598   : > { %7575 = vmatprep.mubr.msk.f32.mxu1 %vm8338_vm0, %v11124_v49 }
 0x59b   : > { %7576 = vmatmul.mubr.f32.gmra.mxu1 %v2998_v45 }
 0x59c   : > { %7578 = vmatprep.mubr.msk.f32.mxu1 %vm8338_vm0, %v11124_v49 }
 0x59f   : > { %7579 = vmatmul.mubr.f32.gmra.mxu1 %v3001_v46 }
 0x5a0   : > { %7581 = vmatprep.mubr.msk.f32.mxu1 %vm8338_vm0, %v11124_v49 }
 0x5a3   : > { %7582 = vmatmul.mubr.f32.gmra.mxu1 %v3004_v0 }
 0x5a4   : > { %7584 = vmatprep.mubr.msk.f32.mxu1 %vm8338_vm0, %v11124_v49 }
 0x5a7   : > { %7585 = vmatmul.mubr.f32.gmra.mxu1 %v3007_v9 }
 0x5a8   : > { %7587 = vmatprep.mubr.msk.f32.mxu1 %vm8338_vm0, %v11124_v49 }
 0x5ab   : > { %7588 = vmatmul.mubr.f32.gmra.mxu1 %v3010_v32 }
 0x5ac   : > { %7590 = vmatprep.mubr.msk.f32.mxu1 %vm8338_vm0, %v11124_v49 }
 0x5af   : > { %7591 = vmatmul.mubr.f32.gmra.mxu1 %v3013_v7 }
 0x5b0   : > { %7593 = vmatprep.mubr.msk.f32.mxu1 %vm8338_vm0, %v11124_v49 }
 0x5b3   : > { %7594 = vmatmul.mubr.f32.gmra.mxu1 %v3016_v26 }
 0x5b4   : > { %7596 = vmatprep.mubr.msk.f32.mxu1 %vm8338_vm0, %v11124_v49 }
 0x5b7   : > { %7597 = vmatmul.mubr.f32.gmra.mxu1 %v3019_v63 }
 0x5b8   : > { %7599 = vmatprep.mubr.msk.f32.mxu1 %vm8338_vm0, %v11124_v49 }
 0x5bb   : > { %7600 = vmatmul.mubr.f32.gmra.mxu1 %v3022_v14 }
 0x607   : > { %v6778_v37 = vpop.f32.mrf.mxu1 }
 0x609   : > { %v6779_v56 = vpop.f32.mrf.mxu1 }
 0x60a   : > { %v6780_v59 = vadd.f32 %v6779_v56, %v6778_v37 }
 0x60b   : > { %v6781_v62 = vpop.f32.mrf.mxu1 }
 0x60d   : > { %v6782_v16 = vpop.f32.mrf.mxu1 }
 0x60e   : > { %v6783_v19 = vadd.f32 %v6782_v16, %v6781_v62 }
 0x60f   : > { %v6784_v4 = vpop.f32.mrf.mxu1 }
 0x611   : > { %v6785_v55 = vpop.f32.mrf.mxu1 }
 0x612   : > { %v6786_v17 = vadd.f32 %v6785_v55, %v6784_v4 }
 0x613   : > { %v6787_v38 = vpop.f32.mrf.mxu1 }
 0x615   : > { %v6788_v41 = vpop.f32.mrf.mxu1 }
 0x616   : > { %v6789_v0 = vadd.f32 %v6788_v41, %v6787_v38 }
 0x617   : > { %v9944_v8 = vpop.f32.mrf.mxu1 }
 0x619   : > { %v9946_v12 = vpop.f32.mrf.mxu1 }
 0x61b   : > { %v9948_v27 = vpop.f32.mrf.mxu1 }
 0x61d   : > { %v9950_v21 = vpop.f32.mrf.mxu1 }
 0x61f   : > { %v9952_v22 = vpop.f32.mrf.mxu1 }
 0x621   : > { %v9955_v57 = vpop.f32.mrf.mxu1 }
 0x623   : > { %v9957_v35 = vpop.f32.mrf.mxu1 }
 0x625   : > { %v9959_v53 = vpop.f32.mrf.mxu1 }
 0x627   : > { %v9961_v28 = vpop.f32.mrf.mxu1 }
 0x629   : > { %v9963_v42 = vpop.f32.mrf.mxu1 }
 0x62b   : > { %v6805_v40 = vpop.f32.mrf.mxu1 }
 0x62d   : > { %v6806_v3 = vpop.f32.mrf.mxu1 }
 0x62f   : > { %v6808_v18 = vpop.f32.mrf.mxu1 }
 0x631   : > { %v6809_v31 = vpop.f32.mrf.mxu1 }
 0x633   : > { %v6811_v25 = vpop.f32.mrf.mxu1 }
 0x635   : > { %v6812_v44 = vpop.f32.mrf.mxu1 }
 0x637   : > { %v6814_v15 = vpop.f32.mrf.mxu1 }
 0x639   : > { %v6815_v61 = vpop.f32.mrf.mxu1 }
 0x63b   : > { %v6817_v5 = vpop.f32.mrf.mxu1 }
 0x63d   : > { %v6818_v60 = vpop.f32.mrf.mxu1 }
 0x63f   : > { %v6820_v34 = vpop.f32.mrf.mxu1 }
 0x641   : > { %v6821_v36 = vpop.f32.mrf.mxu1 }
 0x643   : > { %v3229_v1 = vpop.f32.mrf.mxu1 }
 0x644   : > { %v9965_v2 = vadd.f32 %v6780_v59, %v3229_v1 }
 0x645   : > { %v7559_v50 = vpop.f32.mrf.mxu1 }
 0x646   : > { %11210 = vst [vmem:[#allocation24_spill] sm:$0xff] %v9965_v2 }
 0x647   : > { %v3234_v24 = vpop.f32.mrf.mxu1 }
 0x648   : > { %v9967_v58 = vadd.f32 %v6783_v19, %v3234_v24 }
 0x649   : > { %v7562_v6 = vpop.f32.mrf.mxu1 }
 0x64a   : > { %11211 = vst [vmem:[#allocation25_spill] sm:$0xff] %v9967_v58 }
 0x64b   : > { %v3239_v52 = vpop.f32.mrf.mxu1 }
 0x64c   : > { %v9969_v45 = vadd.f32 %v6786_v17, %v3239_v52  ;;  %v6819_v52 = vadd.f32 %v6818_v60, %v6817_v5  ;;  %v11212_v5 = vld [vmem:[#allocation119_spill] sm:$0xff] }
 0x64d   : > { %v7565_v46 = vpop.f32.mrf.mxu1 }
 0x64f   : > { %v3244_v9 = vpop.f32.mrf.mxu1 }
 0x650   : > { %v9971_v32 = vadd.f32 %v6789_v0, %v3244_v9  ;;  %v6816_v0 = vadd.f32 %v6815_v61, %v6814_v15  ;;  %v6822_v9 = vadd.f32 %v6821_v36, %v6820_v34  ;;  %v6804_v15 = vadd.f32 %v9963_v42, %v9961_v28  ;;  %v11216_v34 = vld [vmem:[#allocation123_spill] sm:$0xff] }
 0x651   : > { %v7568_v7 = vpop.f32.mrf.mxu1 }
 0x653   : > { %v9973_v26 = vpop.f32.mrf.mxu1 }
 0x655   : > { %v7571_v63 = vpop.f32.mrf.mxu1 }
 0x657   : > { %v3254_v14 = vpop.f32.mrf.mxu1 }
 0x659   : > { %v7574_v37 = vpop.f32.mrf.mxu1 }
 0x65a   : > { %v6813_v37 = vadd.f32 %v6812_v44, %v6811_v25 }
 0x65b   : > { %v3259_v56 = vpop.f32.mrf.mxu1 }
 0x65d   : > { %v7577_v62 = vpop.f32.mrf.mxu1 }
 0x65f   : > { %v3264_v16 = vpop.f32.mrf.mxu1 }
 0x661   : > { %v7580_v13 = vpop.f32.mrf.mxu1 }
 0x663   : > { %v3269_v59 = vpop.f32.mrf.mxu1 }
 0x665   : > { %v7583_v4 = vpop.f32.mrf.mxu1 }
 0x666   : > { %v6810_v4 = vadd.f32 %v6809_v31, %v6808_v18  ;;  %v11215_v31 = vld [vmem:[#allocation122_spill] sm:$0xff] }
 0x667   : > { %v3274_v55 = vpop.f32.mrf.mxu1 }
 0x669   : > { %v7586_v1 = vpop.f32.mrf.mxu1 }
 0x66b   : > { %v3279_v50 = vpop.f32.mrf.mxu1 }
 0x66c   : > { %v3280_v58 = vadd.f32 %v6810_v4, %v3279_v50  ;;  %v11241_v4 = vmov 0.0  }
 0x66d   : > { %v7589_v19 = vpop.f32.mrf.mxu1 }
 0x66f   : > { %v3284_v38 = vpop.f32.mrf.mxu1 }
 0x670   : > { %v3285_v2 = vadd.f32 %v6813_v37, %v3284_v38  ;;  %v11229_v38 = vld [vmem:[#allocation22_spill] sm:$0xff] }
 0x671   : > { %v7592_v41 = vpop.f32.mrf.mxu1 }
 0x672   : > { %v6807_v41 = vadd.f32 %v6806_v3, %v6805_v40  ;;  %v3314_v44 = vadd.f32 %v3285_v2, %v9504_v30  ;;  %v11214_v40 = vld [vmem:[#allocation121_spill] sm:$0xff]  ;;  %v6798_v30 = vadd.f32 %v9955_v57, %v9952_v22  ;;  %v11217_v2 = vld [vmem:[#allocation124_spill] sm:$0xff] }
 0x673   : > { %v3289_v24 = vpop.f32.mrf.mxu1 }
 0x674   : > { %v3290_v62 = vadd.f32 %v6816_v0, %v3289_v24  ;;  %v3275_v25 = vadd.f32 %v6807_v41, %v3274_v55  ;;  %v11227_v55 = vld [vmem:[#allocation129_spill] sm:$0xff]  ;;  %v3429_v41 = vld [vmem:[#allocation7 + $0x168] sm:$0xff] }
 0x675   : > { %v7595_v6 = vpop.f32.mrf.mxu1  ;;  %v11230_v24 = vld [vmem:[#allocation25_spill] sm:$0xff] }
 0x676   : > { %v3315_v6 = vadd.f32 %v3290_v62, %v9498_v29  ;;  %v3313_v29 = vadd.f32 %v3280_v58, %v9510_v33  ;;  %v3312_v3 = vadd.f32 %v3275_v25, %v9519_v10  ;;  %v6795_v33 = vadd.f32 %v9950_v21, %v9948_v27  ;;  %v11219_v58 = vld [vmem:[#allocation125_spill] sm:$0xff]  ;;  %v3425_v62 = vld [vmem:[#allocation7 + $0x148] sm:$0xff] }
 0x677   : > { %v3294_v17 = vpop.f32.mrf.mxu1  ;;  %v6792_v10 = vadd.f32 %v9946_v12, %v9944_v8  ;;  %v11221_v8 = vld [vmem:[#allocation126_spill] sm:$0xff]  ;;  %v3433_v25 = vld [vmem:[#allocation7 + $0x188] sm:$0xff] }
 0x678   : > { %v3295_v7 = vadd.f32 %v6819_v52, %v3294_v17  ;;  %v9994_v28 = vadd.f32 %v11214_v40, %v3315_v6  ;;  %v10010_v22 = vadd.f32 %v11216_v34, %v3313_v29  ;;  %v3255_v57 = vadd.f32 %v6795_v33, %v3254_v14  ;;  %v11233_v52 = vld [vmem:[#allocation23_spill] sm:$0xff]  ;;  %v3430_v6 = vld [vmem:[#allocation7 + $0x170] sm:$0xff]  ;;  %v3439_v40 = vld [vmem:[#allocation7 + $0x1b8] sm:$0xff] }
 0x679   : > { %v7598_v46 = vpop.f32.mrf.mxu1  ;;  %v10018_v27 = vadd.f32 %v11217_v2, %v3312_v3  ;;  %v3438_v29 = vld [vmem:[#allocation7 + $0x1b0] sm:$0xff]  ;;  %v3444_v33 = vld [vmem:[#allocation7 + $0x1e0] sm:$0xff]  ;;  %v3447_v34 = vld [vmem:[#allocation7 + $0x1f8] sm:$0xff] }
 0x67a   : > { %v3316_v1 = vadd.f32 %v3295_v7, %v9492_v51  ;;  %v3270_v51 = vadd.f32 %v6804_v15, %v3269_v59  ;;  %v11234_v46 = vld [vmem:[#allocation24_spill] sm:$0xff]  ;;  %v3432_v15 = vld [vmem:[#allocation7 + $0x180] sm:$0xff]  ;;  %v3451_v2 = vld [vmem:[#allocation7 + $0x218] sm:$0xff] }
 0x67b   : > { %v3299_v63 = vpop.f32.mrf.mxu1  ;;  %11218 = vst [vmem:[#allocation26_spill] sm:$0xff] %v10018_v27  ;;  %v3442_v3 = vld [vmem:[#allocation7 + $0x1d0] sm:$0xff] }
 0x67c   : > { %v3300_v13 = vadd.f32 %v6822_v9, %v3299_v63  ;;  %v3311_v61 = vadd.f32 %v3270_v51, %v9528_v43  ;;  %v3250_v43 = vadd.f32 %v6792_v10, %v9973_v26  ;;  %v11237_v9 = vld [vmem:[#allocation132_spill] sm:$0xff]  ;;  %v11239_v63 = vld [vmem:[#allocation133_spill] sm:$0xff]  ;;  %v3437_v51 = vld [vmem:[#allocation7 + $0x1a8] sm:$0xff] }
 0x67d   : > { %v7601_v49 = vpop.f32.mrf.mxu1  ;;  %v3448_v10 = vld [vmem:[#allocation7 + $0x200] sm:$0xff] }
 0x67e   : > { %v3317_v19 = vadd.f32 %v3300_v13, %v9485_v54  ;;  %v11213_v49 = vld [vmem:[#allocation120_spill] sm:$0xff]  ;;  %v6801_v54 = vadd.f32 %v9959_v53, %v9957_v35  ;;  %v10002_v35 = vadd.f32 %v11215_v31, %v3314_v44  ;;  %v3260_v53 = vadd.f32 %v6798_v30, %v3259_v56  ;;  %v3440_v30 = vld [vmem:[#allocation7 + $0x1c0] sm:$0xff]  ;;  %v3443_v31 = vld [vmem:[#allocation7 + $0x1d8] sm:$0xff] }
 0x67f   : > { %v9986_v18 = vadd.f32 %v11213_v49, %v3316_v1  ;;  %v10025_v56 = vadd.f32 %v11219_v58, %v3311_v61  ;;  %v3307_v26 = vadd.f32 %v3250_v43, %v9560_v47  ;;  %v3305_v47 = vadd.f32 %v9969_v45, %v9572_v23  ;;  %v11235_v45 = vld [vmem:[#allocation131_spill] sm:$0xff]  ;;  %v3426_v13 = vld [vmem:[#allocation7 + $0x150] sm:$0xff]  ;;  %v3427_v1 = vld [vmem:[#allocation7 + $0x158] sm:$0xff] }
 0x680   : > { %v9979_v60 = vadd.f32 %v11212_v5, %v3317_v19  ;;  %v3265_v42 = vadd.f32 %v6801_v54, %v3264_v16  ;;  %v3309_v21 = vadd.f32 %v3260_v53, %v9546_v39  ;;  %v11223_v39 = vld [vmem:[#allocation127_spill] sm:$0xff]  ;;  %v3306_v16 = vadd.f32 %v9971_v32, %v9566_v48  ;;  %v11231_v32 = vld [vmem:[#allocation130_spill] sm:$0xff]  ;;  %v3431_v5 = vld [vmem:[#allocation7 + $0x178] sm:$0xff] }
 0x681   : > { %11220 = vst [vmem:[#allocation27_spill] sm:$0xff] %v10025_v56  ;;  %v10051_v50 = vadd.f32 %v11227_v55, %v3307_v26  ;;  %v3304_v48 = vadd.f32 %v11230_v24, %v11229_v38  ;;  %v3303_v23 = vadd.f32 %v11234_v46, %v11233_v52  ;;  %v10065_v0 = vadd.f32 %v11235_v45, %v3305_v47  ;;  %v3428_v19 = vld [vmem:[#allocation7 + $0x160] sm:$0xff]  ;;  %v3434_v44 = vld [vmem:[#allocation7 + $0x190] sm:$0xff]  ;;  %v3435_v49 = vld [vmem:[#allocation7 + $0x198] sm:$0xff] }
 0x682   : > { %7602 = vmatprep.subr.mxu0 %v9979_v60  ;;  %v3310_v36 = vadd.f32 %v3265_v42, %v9537_v11  ;;  %v3308_v11 = vadd.f32 %v3255_v57, %v9553_v20  ;;  %v10037_v14 = vadd.f32 %v11223_v39, %v3309_v21  ;;  %v11225_v20 = vld [vmem:[#allocation128_spill] sm:$0xff]  ;;  %v10058_v17 = vadd.f32 %v11231_v32, %v3306_v16  ;;  %v3436_v54 = vld [vmem:[#allocation7 + $0x1a0] sm:$0xff]  ;;  %v3441_v42 = vld [vmem:[#allocation7 + $0x1c8] sm:$0xff] }
 0x683   : > { %7603 = vmatpush3.msra.mxu0 %v9979_v60  ;;  %11228 = vst [vmem:[#allocation31_spill] sm:$0xff] %v10051_v50  ;;  %11236 = vst [vmem:[#allocation33_spill] sm:$0xff] %v10065_v0  ;;  %v10070_v7 = vadd.f32 %v11237_v9, %v3304_v48  ;;  %v10075_v37 = vadd.f32 %v11239_v63, %v3303_v23  ;;  %v3445_v53 = vld [vmem:[#allocation7 + $0x1e8] sm:$0xff]  ;;  %v3446_v61 = vld [vmem:[#allocation7 + $0x1f0] sm:$0xff] }
 0x684   : > { %7604 = vmatprep.subr.mxu0 %v9986_v18  ;;  %v10031_v12 = vadd.f32 %v11221_v8, %v3310_v36  ;;  %11224 = vst [vmem:[#allocation29_spill] sm:$0xff] %v10037_v14  ;;  %v10044_v59 = vadd.f32 %v11225_v20, %v3308_v11  ;;  %11232 = vst [vmem:[#allocation32_spill] sm:$0xff] %v10058_v17  ;;  %v3449_v57 = vld [vmem:[#allocation7 + $0x208] sm:$0xff]  ;;  %v3450_v36 = vld [vmem:[#allocation7 + $0x210] sm:$0xff] }
 0x685   : > { %7605 = vmatpush3.msra.mxu0 %v9986_v18  ;;  %11238 = vst [vmem:[#allocation34_spill] sm:$0xff] %v10070_v7  ;;  %11240 = vst [vmem:[#allocation35_spill] sm:$0xff] %v10075_v37  ;;  %v3452_v43 = vld [vmem:[#allocation7 + $0x220] sm:$0xff]  ;;  %v3453_v21 = vld [vmem:[#allocation7 + $0x228] sm:$0xff] }
 0x686   : > { %7606 = vmatprep.subr.mxu0 %v9994_v28  ;;  %11222 = vst [vmem:[#allocation28_spill] sm:$0xff] %v10031_v12  ;;  %11226 = vst [vmem:[#allocation30_spill] sm:$0xff] %v10044_v59  ;;  %v3454_v58 = vld [vmem:[#allocation7 + $0x230] sm:$0xff]  ;;  %v3455_v11 = vld [vmem:[#allocation7 + $0x238] sm:$0xff] }
 0x687   : > { %7607 = vmatpush3.msra.mxu0 %v9994_v28  ;;  %v3456_v8 = vld [vmem:[#allocation7 + $0x240] sm:$0xff]  ;;  %v3457_v26 = vld [vmem:[#allocation7 + $0x248] sm:$0xff]  ;;  %v3458_v39 = vld [vmem:[#allocation7 + $0x250] sm:$0xff] }
 0x688   : > { %7608 = vmatprep.subr.mxu0 %v10002_v35  ;;  %v3459_v16 = vld [vmem:[#allocation7 + $0x258] sm:$0xff]  ;;  %v3460_v20 = vld [vmem:[#allocation7 + $0x260] sm:$0xff]  ;;  %v3461_v47 = vld [vmem:[#allocation7 + $0x268] sm:$0xff] }
 0x689   : > { %7609 = vmatpush3.msra.mxu0 %v10002_v35  ;;  %v3462_v55 = vld [vmem:[#allocation7 + $0x270] sm:$0xff]  ;;  %v3463_v38 = vld [vmem:[#allocation7 + $0x278] sm:$0xff] }
 0x68a   : > { %7610 = vmatprep.subr.mxu0 %v10010_v22  ;;  %v4132_v24 = vld [vmem:[#allocation10 + $0x170] sm:$0xff] }
 0x68b   : > { %7611 = vmatpush3.msra.mxu0 %v10010_v22  ;;  %4285 = vmatprep.mubr.f32.mxu1 %v4132_v24  ;;  %v11245_v24 = vld [vmem:[#allocation138_spill] sm:$0xff] }
 0x68c   : > { %7612 = vmatprep.subr.mxu0 %v10018_v27 }
 0x68d   : > { %7613 = vmatpush3.msra.mxu0 %v10018_v27 }
 0x68e   : > { %7614 = vmatprep.subr.mxu0 %v10025_v56 }
 0x68f   : > { %7615 = vmatpush3.msra.mxu0 %v10025_v56 }
 0x690   : > { %7616 = vmatprep.subr.mxu0 %v10031_v12 }
 0x691   : > { %7617 = vmatpush3.msra.mxu0 %v10031_v12 }
 0x692   : > { %7618 = vmatprep.subr.mxu0 %v10037_v14 }
 0x693   : > { %7619 = vmatpush3.msra.mxu0 %v10037_v14 }
 0x694   : > { %7620 = vmatprep.subr.mxu0 %v10044_v59 }
 0x695   : > { %7621 = vmatpush3.msra.mxu0 %v10044_v59  ;;  %v11247_v59 = vld [vmem:[#allocation139_spill] sm:$0xff] }
 0x696   : > { %7622 = vmatprep.subr.mxu0 %v10051_v50 }
 0x697   : > { %7623 = vmatpush3.msra.mxu0 %v10051_v50 }
 0x698   : > { %7624 = vmatprep.subr.mxu0 %v10058_v17 }
 0x699   : > { %7625 = vmatpush3.msra.mxu0 %v10058_v17 }
 0x69a   : > { %7626 = vmatprep.subr.mxu0 %v10065_v0 }
 0x69b   : > { %7627 = vmatpush3.msra.mxu0 %v10065_v0  ;;  %v11246_v0 = vld [vmem:[#allocation136_spill] sm:$0xff] }
 0x69c   : > { %7628 = vmatprep.subr.mxu0 %v10070_v7 }
 0x69d   : > { %7629 = vmatpush3.msra.mxu0 %v10070_v7 }
 0x69e   : > { %7630 = vmatprep.subr.mxu0 %v10075_v37 }
 0x69f   : > { %7631 = vmatpush3.msra.mxu0 %v10075_v37 }
 0x6a0   : > { %7633 = vmatmul.mubr.msk.f32.vlgmr.msra.gmra.mxu0 %vm748_vm1, %v3425_v62  ;;  %7692 = vmatprep.subr.mxu0 %v11241_v4 }
 0x6a1   : > { %7635 = vmatprep.mubr.msk.f32.mxu0 %vm748_vm1, %v3426_v13 }
 0x6a4   : > { %7636 = vmatmul.mubr.msk.f32.gmra.mxu0 %vm748_vm1, %v3427_v1 }
 0x6a5   : > { %7638 = vmatprep.mubr.msk.f32.mxu0 %vm748_vm1, %v3428_v19 }
 0x6a8   : > { %7639 = vmatmul.mubr.msk.f32.gmra.mxu0 %vm748_vm1, %v3429_v41 }
 0x6a9   : > { %7641 = vmatprep.mubr.msk.f32.mxu0 %vm748_vm1, %v3430_v6 }
 0x6ac   : > { %7642 = vmatmul.mubr.msk.f32.gmra.mxu0 %vm748_vm1, %v3431_v5 }
 0x6ad   : > { %7644 = vmatprep.mubr.msk.f32.mxu0 %vm748_vm1, %v3432_v15 }
 0x6b0   : > { %7645 = vmatmul.mubr.msk.f32.gmra.mxu0 %vm748_vm1, %v3433_v25 }
 0x6b1   : > { %7647 = vmatprep.mubr.msk.f32.mxu0 %vm748_vm1, %v3434_v44 }
 0x6b4   : > { %7648 = vmatmul.mubr.msk.f32.gmra.mxu0 %vm748_vm1, %v3435_v49 }
 0x6b5   : > { %7650 = vmatprep.mubr.msk.f32.mxu0 %vm748_vm1, %v3436_v54  ;;  %v10148_v54 = vpop.permute.xlu1 %3702 }
 0x6b8   : > { %7651 = vmatmul.mubr.msk.f32.gmra.mxu0 %vm748_vm1, %v3437_v51 }
 0x6b9   : > { %7653 = vmatprep.mubr.msk.f32.mxu0 %vm748_vm1, %v3438_v29  ;;  %v10152_v29 = vpop.permute.xlu0 %3607 }
 0x6bc   : > { %7654 = vmatmul.mubr.msk.f32.gmra.mxu0 %vm748_vm1, %v3439_v40 }
 0x6bd   : > { %7656 = vmatprep.mubr.msk.f32.mxu0 %vm748_vm1, %v3440_v30 }
 0x6c0   : > { %7657 = vmatmul.mubr.msk.f32.gmra.mxu0 %vm748_vm1, %v3441_v42  ;;  %v10158_v42 = vpop.permute.xlu1 %3527 }
 0x6c1   : > { %7659 = vmatprep.mubr.msk.f32.mxu0 %vm748_vm1, %v3442_v3 }
 0x6c4   : > { %7660 = vmatmul.mubr.msk.f32.gmra.mxu0 %vm748_vm1, %v3443_v31  ;;  %v10162_v31 = vpop.permute.xlu0 %3697 }
 0x6c5   : > { %7662 = vmatprep.mubr.msk.f32.mxu0 %vm748_vm1, %v3444_v33 }
 0x6c8   : > { %7663 = vmatmul.mubr.msk.f32.gmra.mxu0 %vm748_vm1, %v3445_v53 }
 0x6c9   : > { %7665 = vmatprep.mubr.msk.f32.mxu0 %vm748_vm1, %v3446_v61  ;;  %v10166_v61 = vpop.permute.xlu1 %3602 }
 0x6cc   : > { %7666 = vmatmul.mubr.msk.f32.gmra.mxu0 %vm748_vm1, %v3447_v34 }
 0x6cd   : > { %7668 = vmatprep.mubr.msk.f32.mxu0 %vm748_vm1, %v3448_v10  ;;  %v10168_v10 = vpop.permute.xlu0 %3522 }
 0x6d0   : > { %7669 = vmatmul.mubr.msk.f32.gmra.mxu0 %vm748_vm1, %v3449_v57 }
 0x6d1   : > { %7671 = vmatprep.mubr.msk.f32.mxu0 %vm748_vm1, %v3450_v36 }
 0x6d4   : > { %7672 = vmatmul.mubr.msk.f32.gmra.mxu0 %vm748_vm1, %v3451_v2  ;;  %v10170_v2 = vpop.permute.xlu1 %3692 }
 0x6d5   : > { %7674 = vmatprep.mubr.msk.f32.mxu0 %vm748_vm1, %v3452_v43 }
 0x6d8   : > { %7675 = vmatmul.mubr.msk.f32.gmra.mxu0 %vm748_vm1, %v3453_v21  ;;  %v10172_v21 = vpop.permute.xlu0 %3597 }
 0x6d9   : > { %7677 = vmatprep.mubr.msk.f32.mxu0 %vm748_vm1, %v3454_v58 }
 0x6dc   : > { %7678 = vmatmul.mubr.msk.f32.gmra.mxu0 %vm748_vm1, %v3455_v11  ;;  %v11242_v11 = vld [vmem:[#allocation135_spill] sm:$0xff]  ;;  %v10181_v50 = vpop.permute.xlu0 %3687 }
 0x6dd   : > { %7680 = vmatprep.mubr.msk.f32.mxu0 %vm748_vm1, %v3456_v8 }
 0x6e0   : > { %7681 = vmatmul.mubr.msk.f32.gmra.mxu0 %vm748_vm1, %v3457_v26 }
 0x6e1   : > { %7683 = vmatprep.mubr.msk.f32.mxu0 %vm748_vm1, %v3458_v39  ;;  %v11243_v39 = vld [vmem:[#allocation134_spill] sm:$0xff] }
 0x6e4   : > { %7684 = vmatmul.mubr.msk.f32.gmra.mxu0 %vm748_vm1, %v3459_v16 }
 0x6e5   : > { %7686 = vmatprep.mubr.msk.f32.mxu0 %vm748_vm1, %v3460_v20  ;;  %v10176_v20 = vpop.permute.xlu1 %3517 }
 0x6e8   : > { %7687 = vmatmul.mubr.msk.f32.gmra.mxu0 %vm748_vm1, %v3461_v47  ;;  %v11244_v47 = vld [vmem:[#allocation137_spill] sm:$0xff] }
 0x6e9   : > { %7689 = vmatprep.mubr.msk.f32.mxu0 %vm748_vm1, %v3462_v55 }
 0x6ec   : > { %7690 = vmatmul.mubr.msk.f32.gmra.mxu0 %vm748_vm1, %v3463_v38 }
 0x6ed   : > { %7708 = vmatprep.mubr.msk.f32.mxu0 %vm8338_vm0, %v11241_v4 }
 0x760   : > { %v10122_v48 = vpop.f32.mrf.mxu0 }
 0x762   : > { %v10124_v32 = vpop.f32.mrf.mxu0 }
 0x764   : > { %v10126_v52 = vpop.f32.mrf.mxu0 }
 0x766   : > { %v10128_v46 = vpop.f32.mrf.mxu0 }
 0x768   : > { %v10130_v23 = vpop.f32.mrf.mxu0 }
 0x76a   : > { %v10132_v45 = vpop.f32.mrf.mxu0 }
 0x76c   : > { %v10134_v9 = vpop.f32.mrf.mxu0 }
 0x76e   : > { %v10136_v63 = vpop.f32.mrf.mxu0 }
 0x770   : > { %v10138_v62 = vpop.f32.mrf.mxu0 }
 0x772   : > { %v10140_v13 = vpop.f32.mrf.mxu0 }
 0x774   : > { %v7649_v1 = vpop.f32.mrf.mxu0 }
 0x776   : > { %v3941_v19 = vpop.f32.mrf.mxu0 }
 0x778   : > { %v7652_v41 = vpop.f32.mrf.mxu0 }
 0x779   : > { %v3957_v14 = vadd.f32 %v7652_v41, %v11247_v59  ;;  %v11251_v59 = vld [vmem:[#allocation143_spill] sm:$0xff] }
 0x77a   : > { %v3951_v6 = vpop.f32.mrf.mxu0  ;;  %v3947_v41 = vadd.f32 %v7649_v1, %v11251_v59 }
 0x77c   : > { %v7655_v5 = vpop.f32.mrf.mxu0 }
 0x77d   : > { %v3967_v8 = vadd.f32 %v7655_v5, %v11242_v11  ;;  %v11248_v5 = vld [vmem:[#allocation140_spill] sm:$0xff] }
 0x77e   : > { %v3961_v15 = vpop.f32.mrf.mxu0 }
 0x77f   : > { %v3962_v55 = vadd.f32 %v3961_v15, %v11244_v47  ;;  %v4105_v12 = vmax.f32 %v3967_v8, 0.0  ;;  %v4103_v8 = vmax.f32 %v3957_v14, 0.0  ;;  %v11255_v14 = vld [vmem:[#allocation147_spill] sm:$0xff] }
 0x780   : > { %v10142_v25 = vpop.f32.mrf.mxu0  ;;  %v3937_v1 = vadd.f32 %v10138_v62, %v11255_v14  ;;  %v11262_v14 = vld [vmem:[#allocation154_spill] sm:$0xff] }
 0x781   : > { %v4104_v15 = vmax.f32 %v3962_v55, 0.0  ;;  %v11253_v55 = vld [vmem:[#allocation145_spill] sm:$0xff] }
 0x782   : > { %v10144_v44 = vpop.f32.mrf.mxu0 }
 0x784   : > { %v10146_v49 = vpop.f32.mrf.mxu0 }
 0x786   : > { %v10150_v51 = vpop.f32.mrf.mxu0 }
 0x788   : > { %v10154_v40 = vpop.f32.mrf.mxu0 }
 0x78a   : > { %v10156_v30 = vpop.f32.mrf.mxu0 }
 0x78c   : > { %v10160_v3 = vpop.f32.mrf.mxu0 }
 0x78e   : > { %v10164_v33 = vpop.f32.mrf.mxu0 }
 0x790   : > { %v7670_v53 = vpop.f32.mrf.mxu0 }
 0x792   : > { %v4011_v34 = vpop.f32.mrf.mxu0 }
 0x794   : > { %v7673_v57 = vpop.f32.mrf.mxu0 }
 0x796   : > { %v4021_v36 = vpop.f32.mrf.mxu0 }
 0x798   : > { %v7676_v43 = vpop.f32.mrf.mxu0 }
 0x799   : > { %v4037_v37 = vadd.f32 %v7676_v43, %v11245_v24  ;;  %v11250_v43 = vld [vmem:[#allocation142_spill] sm:$0xff] }
 0x79a   : > { %v4031_v58 = vpop.f32.mrf.mxu0 }
 0x79b   : > { %v4032_v11 = vadd.f32 %v4031_v58, %v11248_v5 }
 0x79c   : > { %v7679_v26 = vpop.f32.mrf.mxu0 }
 0x79d   : > { %v4047_v16 = vadd.f32 %v7679_v26, %v11243_v39  ;;  %v11249_v39 = vld [vmem:[#allocation141_spill] sm:$0xff]  ;;  %v4118_v58 = vmax.f32 %v4032_v11, 0.0 }
 0x79e   : > { %v4041_v38 = vpop.f32.mrf.mxu0  ;;  %v3952_v27 = vadd.f32 %v3951_v6, %v11249_v39  ;;  %v10197_v6 = vpop.permute.xlu0 %3512 }
 0x79f   : > { %v4121_v7 = vmax.f32 %v4047_v16, 0.0  ;;  %v4042_v17 = vadd.f32 %v4041_v38, %v11246_v0  ;;  %v4027_v16 = vadd.f32 %v7673_v57, %v11250_v43  ;;  %v4119_v0 = vmax.f32 %v4037_v37, 0.0  ;;  %v10191_v38 = vpop.permute.xlu1 %3592  ;;  %v11254_v37 = vld [vmem:[#allocation146_spill] sm:$0xff] }
 0x7a0   : > { %v10184_v56 = vpop.f32.mrf.mxu0  ;;  %v4102_v5 = vmax.f32 %v3952_v27, 0.0 }
 0x7a1   : > { %v4120_v26 = vmax.f32 %v4042_v17, 0.0  ;;  %6909 = vmatprep.subr.mxu1 %v4121_v7  ;;  %v11252_v17 = vld [vmem:[#allocation144_spill] sm:$0xff]  ;;  %v4117_v39 = vmax.f32 %v4027_v16, 0.0 }
 0x7a2   : > { %v10188_v47 = vpop.f32.mrf.mxu0  ;;  %6910 = vmatpush3.msra.mxu1 %v4105_v12  ;;  %v4022_v7 = vadd.f32 %v4021_v36, %v11252_v17  ;;  %v3942_v12 = vadd.f32 %v3941_v19, %v11253_v55  ;;  %v11256_v36 = vld [vmem:[#allocation148_spill] sm:$0xff]  ;;  %v11257_v19 = vld [vmem:[#allocation149_spill] sm:$0xff]  ;;  %v10210_v62 = vpop.permute.xlu0 %3587 }
 0x7a3   : > { %6911 = vmatprep.subr.mxu1 %v4120_v26  ;;  %v4017_v26 = vadd.f32 %v7670_v53, %v11254_v37  ;;  %v4012_v11 = vadd.f32 %v4011_v34, %v11256_v36  ;;  %v3683_v59 = vpop.permute.xlu1 %3682  ;;  %v3932_v27 = vadd.f32 %v10140_v13, %v11257_v19  ;;  %v11258_v53 = vld [vmem:[#allocation150_spill] sm:$0xff]  ;;  %v4099_v34 = vmax.f32 %v3937_v1, 0.0 }
 0x7a4   : > { %v10194_v24 = vpop.f32.mrf.mxu0  ;;  %6912 = vmatpush3.msra.mxu1 %v4104_v15  ;;  %v4101_v15 = vmax.f32 %v3947_v41, 0.0  ;;  %v4100_v17 = vmax.f32 %v3942_v12, 0.0  ;;  %v4007_v16 = vadd.f32 %v10160_v3, %v11258_v53  ;;  %v11259_v41 = vld [vmem:[#allocation151_spill] sm:$0xff] }
 0x7a5   : > { %6913 = vmatprep.subr.mxu1 %v4119_v0  ;;  %v4116_v0 = vmax.f32 %v4022_v7, 0.0  ;;  %v3927_v55 = vadd.f32 %v10134_v9, %v11259_v41  ;;  %v4114_v13 = vmax.f32 %v4012_v11, 0.0  ;;  %v11263_v11 = vld [vmem:[#allocation155_spill] sm:$0xff]  ;;  %v3897_v41 = vadd.f32 %v10122_v48, %v10197_v6 }
 0x7a6   : > { %v10200_v57 = vpop.f32.mrf.mxu0  ;;  %6914 = vmatpush3.msra.mxu1 %v4103_v8  ;;  %v4113_v9 = vmax.f32 %v4007_v16, 0.0 }
 0x7a7   : > { %6915 = vmatprep.subr.mxu1 %v4118_v58  ;;  %v4115_v58 = vmax.f32 %v4017_v26, 0.0  ;;  %v4098_v26 = vmax.f32 %v3932_v27, 0.0 }
 0x7a8   : > { %v7688_v43 = vpop.f32.mrf.mxu0  ;;  %6916 = vmatpush3.msra.mxu1 %v4102_v5  ;;  %v11260_v5 = vld [vmem:[#allocation152_spill] sm:$0xff] }
 0x7a9   : > { %6917 = vmatprep.subr.mxu1 %v4117_v39  ;;  %v4002_v37 = vadd.f32 %v10164_v33, %v11260_v5  ;;  %v11261_v39 = vld [vmem:[#allocation153_spill] sm:$0xff]  ;;  %v4077_v1 = vadd.f32 %v7688_v43, %v10170_v2  ;;  %v3508_v33 = vpop.permute.xlu1 %3507  ;;  %v3678_v2 = vpop.permute.xlu0 %3677 }
 0x7aa   : > { %v4071_v8 = vpop.f32.mrf.mxu0  ;;  %6918 = vmatpush3.msra.mxu1 %v4101_v15  ;;  %v3922_v3 = vadd.f32 %v10136_v63, %v11261_v39  ;;  %v3997_v15 = vadd.f32 %v10154_v40, %v11262_v14  ;;  %v3992_v63 = vadd.f32 %v10156_v30, %v10152_v29  ;;  %v4067_v29 = vadd.f32 %v10194_v24, %v3683_v59  ;;  %v4138_v39 = vld [vmem:[#allocation10 + $0x1a0] sm:$0xff]  ;;  %v4141_v14 = vld [vmem:[#allocation10 + $0x1b8] sm:$0xff] }
 0x7ab   : > { %6919 = vmatprep.subr.mxu1 %v4116_v0  ;;  %v4112_v27 = vmax.f32 %v4002_v37, 0.0  ;;  %v4072_v40 = vadd.f32 %v4071_v8, %v10181_v50  ;;  %v4127_v30 = vmax.f32 %v4077_v1, 0.0  ;;  %v3907_v50 = vadd.f32 %v10126_v52, %v10168_v10  ;;  %v4135_v37 = vld [vmem:[#allocation10 + $0x188] sm:$0xff]  ;;  %v4145_v1 = vld [vmem:[#allocation10 + $0x1d8] sm:$0xff] }
 0x7ac   : > { %v7691_v7 = vpop.f32.mrf.mxu0  ;;  %6920 = vmatpush3.msra.mxu1 %v4100_v17  ;;  %v4097_v17 = vmax.f32 %v3927_v55, 0.0  ;;  %v4096_v43 = vmax.f32 %v3922_v3, 0.0  ;;  %v4111_v16 = vmax.f32 %v3997_v15, 0.0  ;;  %v3902_v24 = vadd.f32 %v10128_v46, %v10176_v20  ;;  %v4139_v3 = vld [vmem:[#allocation10 + $0x1a8] sm:$0xff]  ;;  %v4142_v15 = vld [vmem:[#allocation10 + $0x1c0] sm:$0xff] }
 0x7ad   : > { %v4087_v12 = vadd.f32 %v7691_v7, %v10148_v54  ;;  %6921 = vmatprep.subr.mxu1 %v4115_v58  ;;  %v3917_v54 = vadd.f32 %v10130_v23, %v11263_v11  ;;  %v3987_v23 = vadd.f32 %v10146_v49, %v10166_v61  ;;  %v4062_v58 = vadd.f32 %v10200_v57, %v3678_v2  ;;  %v3673_v61 = vpop.permute.xlu1 %3672  ;;  %v3668_v57 = vpop.permute.xlu0 %3667  ;;  %v4146_v11 = vld [vmem:[#allocation10 + $0x1e0] sm:$0xff]  ;;  %v4156_v2 = vld [vmem:[#allocation10 + $0x230] sm:$0xff] }
 0x7ae   : > { %v4081_v36 = vpop.f32.mrf.mxu0  ;;  %6922 = vmatpush3.msra.mxu1 %v4099_v34  ;;  %v4126_v49 = vmax.f32 %v4072_v40, 0.0  ;;  %v3977_v52 = vadd.f32 %v10142_v25, %v10191_v38  ;;  %v4093_v55 = vmax.f32 %v3907_v50, 0.0  ;;  %v3972_v46 = vadd.f32 %v10144_v44, %v10210_v62  ;;  %v4154_v40 = vld [vmem:[#allocation10 + $0x220] sm:$0xff]  ;;  %v4163_v50 = vld [vmem:[#allocation10 + $0x268] sm:$0xff] }
 0x7af   : > { %v4129_v0 = vmax.f32 %v4087_v12, 0.0  ;;  %v4082_v19 = vadd.f32 %v4081_v36, %v10162_v31  ;;  %6923 = vmatprep.subr.mxu1 %v4114_v13  ;;  %v3912_v31 = vadd.f32 %v10132_v45, %v10158_v42  ;;  %v4095_v8 = vmax.f32 %v3917_v54, 0.0  ;;  %v4136_v13 = vld [vmem:[#allocation10 + $0x190] sm:$0xff]  ;;  %v4134_v12 = vld [vmem:[#allocation10 + $0x180] sm:$0xff] }
 0x7b0   : > { %6924 = vmatpush3.msra.mxu1 %v4098_v26  ;;  %v3982_v45 = vadd.f32 %v10150_v51, %v10172_v21  ;;  %v4110_v42 = vmax.f32 %v3992_v63, 0.0  ;;  %v4109_v10 = vmax.f32 %v3987_v23, 0.0  ;;  %v4057_v51 = vadd.f32 %v10184_v56, %v3673_v61  ;;  %v4137_v26 = vld [vmem:[#allocation10 + $0x198] sm:$0xff]  ;;  %v4140_v36 = vld [vmem:[#allocation10 + $0x1b0] sm:$0xff]  ;;  %v4150_v54 = vld [vmem:[#allocation10 + $0x200] sm:$0xff] }
 0x7b1   : > { %v4128_v53 = vmax.f32 %v4082_v19, 0.0  ;;  %6925 = vmatprep.subr.mxu1 %v4113_v9  ;;  %7693 = vmatpush3.msra.mxu0 %v4129_v0  ;;  %v4094_v59 = vmax.f32 %v3912_v31, 0.0  ;;  %v4125_v21 = vmax.f32 %v4067_v29, 0.0  ;;  %v4052_v25 = vadd.f32 %v10188_v47, %v3668_v57  ;;  %v4133_v47 = vld [vmem:[#allocation10 + $0x178] sm:$0xff]  ;;  %v4144_v9 = vld [vmem:[#allocation10 + $0x1d0] sm:$0xff]  ;;  %v4143_v0 = vld [vmem:[#allocation10 + $0x1c8] sm:$0xff] }
 0x7b2   : > { %6926 = vmatpush3.msra.mxu1 %v4097_v17  ;;  %7694 = vmatprep.subr.mxu0 %v11241_v4  ;;  %v4108_v20 = vmax.f32 %v3982_v45, 0.0  ;;  %v4124_v38 = vmax.f32 %v4062_v58, 0.0  ;;  %v3892_v56 = vadd.f32 %v10124_v32, %v3508_v33  ;;  %v4092_v34 = vmax.f32 %v3902_v24, 0.0  ;;  %v4131_v32 = vld [vmem:[#allocation10 + $0x168] sm:$0xff]  ;;  %v4148_v33 = vld [vmem:[#allocation10 + $0x1f0] sm:$0xff]  ;;  %v4149_v63 = vld [vmem:[#allocation10 + $0x1f8] sm:$0xff] }
 0x7b3   : > { %6927 = vmatprep.subr.mxu1 %v4112_v27  ;;  %7695 = vmatpush3.msra.mxu0 %v4128_v53  ;;  %v4107_v48 = vmax.f32 %v3977_v52, 0.0  ;;  %v4123_v6 = vmax.f32 %v4057_v51, 0.0  ;;  %v4091_v7 = vmax.f32 %v3897_v41, 0.0  ;;  %v4106_v44 = vmax.f32 %v3972_v46, 0.0  ;;  %v4147_v19 = vld [vmem:[#allocation10 + $0x1e8] sm:$0xff]  ;;  %v4153_v27 = vld [vmem:[#allocation10 + $0x218] sm:$0xff] }
 0x7b4   : > { %6928 = vmatpush3.msra.mxu1 %v4096_v43  ;;  %7696 = vmatprep.subr.mxu0 %v11241_v4  ;;  %v4122_v62 = vmax.f32 %v4052_v25, 0.0  ;;  %v4090_v5 = vmax.f32 %v3892_v56, 0.0  ;;  %v4151_v17 = vld [vmem:[#allocation10 + $0x208] sm:$0xff]  ;;  %v4152_v53 = vld [vmem:[#allocation10 + $0x210] sm:$0xff]  ;;  %v4157_v31 = vld [vmem:[#allocation10 + $0x238] sm:$0xff] }
 0x7b5   : > { %6929 = vmatprep.subr.mxu1 %v4111_v16  ;;  %7697 = vmatpush3.msra.mxu0 %v4127_v30  ;;  %v4155_v43 = vld [vmem:[#allocation10 + $0x228] sm:$0xff]  ;;  %v4160_v16 = vld [vmem:[#allocation10 + $0x250] sm:$0xff]  ;;  %v4158_v29 = vld [vmem:[#allocation10 + $0x240] sm:$0xff] }
 0x7b6   : > { %6930 = vmatpush3.msra.mxu1 %v4095_v8  ;;  %7698 = vmatprep.subr.mxu0 %v11241_v4  ;;  %v4159_v23 = vld [vmem:[#allocation10 + $0x248] sm:$0xff]  ;;  %v4162_v30 = vld [vmem:[#allocation10 + $0x260] sm:$0xff]  ;;  %v4161_v8 = vld [vmem:[#allocation10 + $0x258] sm:$0xff] }
 0x7b7   : > { %6931 = vmatprep.subr.mxu1 %v4110_v42  ;;  %7699 = vmatpush3.msra.mxu0 %v4126_v49  ;;  %v4165_v45 = vld [vmem:[#allocation10 + $0x278] sm:$0xff]  ;;  %v4166_v42 = vld [vmem:[#allocation10 + $0x280] sm:$0xff]  ;;  %v4164_v58 = vld [vmem:[#allocation10 + $0x270] sm:$0xff] }
 0x7b8   : > { %6932 = vmatpush3.msra.mxu1 %v4094_v59  ;;  %7700 = vmatprep.subr.mxu0 %v11241_v4  ;;  %v4168_v49 = vld [vmem:[#allocation10 + $0x290] sm:$0xff]  ;;  %v4169_v61 = vld [vmem:[#allocation10 + $0x298] sm:$0xff]  ;;  %v4167_v24 = vld [vmem:[#allocation10 + $0x288] sm:$0xff] }
 0x7b9   : > { %6933 = vmatprep.subr.mxu1 %v4109_v10  ;;  %7701 = vmatpush3.msra.mxu0 %v4125_v21  ;;  %v4171_v59 = vld [vmem:[#allocation10 + $0x2a8] sm:$0xff]  ;;  %v4172_v52 = vld [vmem:[#allocation10 + $0x2b0] sm:$0xff]  ;;  %v4170_v10 = vld [vmem:[#allocation10 + $0x2a0] sm:$0xff] }
 0x7ba   : > { %6934 = vmatpush3.msra.mxu1 %v4093_v55  ;;  %7702 = vmatprep.subr.mxu0 %v11241_v4  ;;  %v4174_v51 = vld [vmem:[#allocation10 + $0x2c0] sm:$0xff]  ;;  %v4175_v21 = vld [vmem:[#allocation10 + $0x2c8] sm:$0xff]  ;;  %v4173_v57 = vld [vmem:[#allocation10 + $0x2b8] sm:$0xff] }
 0x7bb   : > { %6935 = vmatprep.subr.mxu1 %v4108_v20  ;;  %7703 = vmatpush3.msra.mxu0 %v4124_v38  ;;  %v6381_v41 = vld [vmem:[%s10900_s7 + $0x180] sm:$0xff] }
 0x7bc   : > { %6936 = vmatpush3.msra.mxu1 %v4092_v34  ;;  %7704 = vmatprep.subr.mxu0 %v11241_v4 }
 0x7bd   : > { %6937 = vmatprep.subr.mxu1 %v4107_v48  ;;  %7705 = vmatpush3.msra.mxu0 %v4123_v6 }
 0x7be   : > { %6938 = vmatpush3.msra.mxu1 %v4091_v7  ;;  %7706 = vmatprep.subr.mxu0 %v11241_v4 }
 0x7bf   : > { %6939 = vmatprep.subr.mxu1 %v4106_v44  ;;  %7707 = vmatpush3.msra.mxu0 %v4122_v62 }
 0x7c0   : > { %6940 = vmatpush3.msra.mxu1 %v4090_v5  ;;  %7709 = vmatmul.mubr.msk.f32.vlgmr.msra.gmra.mxu0 %vm1699_vm2, %v4133_v47 }
 0x7c1   : > { %4286 = vmatmul.mubr.f32.vlgmr.msra.gmra.mxu1 %v4131_v32  ;;  %7711 = vmatprep.mubr.msk.f32.mxu0 %vm8338_vm0, %v11241_v4 }
 0x7c2   : > { %4290 = vmatprep.mubr.f32.mxu1 %v4135_v37 }
 0x7c4   : > { %7712 = vmatmul.mubr.msk.f32.gmra.mxu0 %vm1699_vm2, %v4136_v13 }
 0x7c5   : > { %4291 = vmatmul.mubr.f32.gmra.mxu1 %v4134_v12  ;;  %7714 = vmatprep.mubr.msk.f32.mxu0 %vm8338_vm0, %v11241_v4 }
 0x7c6   : > { %4295 = vmatprep.mubr.f32.mxu1 %v4138_v39 }
 0x7c8   : > { %7715 = vmatmul.mubr.msk.f32.gmra.mxu0 %vm1699_vm2, %v4139_v3 }
 0x7c9   : > { %4296 = vmatmul.mubr.f32.gmra.mxu1 %v4137_v26  ;;  %7717 = vmatprep.mubr.msk.f32.mxu0 %vm8338_vm0, %v11241_v4 }
 0x7ca   : > { %4300 = vmatprep.mubr.f32.mxu1 %v4141_v14 }
 0x7cc   : > { %7718 = vmatmul.mubr.msk.f32.gmra.mxu0 %vm1699_vm2, %v4142_v15 }
 0x7cd   : > { %4301 = vmatmul.mubr.f32.gmra.mxu1 %v4140_v36  ;;  %7720 = vmatprep.mubr.msk.f32.mxu0 %vm8338_vm0, %v11241_v4 }
 0x7ce   : > { %4305 = vmatprep.mubr.f32.mxu1 %v4144_v9 }
 0x7d0   : > { %7721 = vmatmul.mubr.msk.f32.gmra.mxu0 %vm1699_vm2, %v4145_v1 }
 0x7d1   : > { %4306 = vmatmul.mubr.f32.gmra.mxu1 %v4143_v0  ;;  %7723 = vmatprep.mubr.msk.f32.mxu0 %vm8338_vm0, %v11241_v4 }
 0x7d2   : > { %4310 = vmatprep.mubr.f32.mxu1 %v4147_v19 }
 0x7d4   : > { %7724 = vmatmul.mubr.msk.f32.gmra.mxu0 %vm1699_vm2, %v4148_v33 }
 0x7d5   : > { %4311 = vmatmul.mubr.f32.gmra.mxu1 %v4146_v11  ;;  %7726 = vmatprep.mubr.msk.f32.mxu0 %vm8338_vm0, %v11241_v4 }
 0x7d6   : > { %4315 = vmatprep.mubr.f32.mxu1 %v4150_v54 }
 0x7d8   : > { %7727 = vmatmul.mubr.msk.f32.gmra.mxu0 %vm1699_vm2, %v4151_v17 }
 0x7d9   : > { %4316 = vmatmul.mubr.f32.gmra.mxu1 %v4149_v63  ;;  %7729 = vmatprep.mubr.msk.f32.mxu0 %vm8338_vm0, %v11241_v4 }
 0x7da   : > { %4320 = vmatprep.mubr.f32.mxu1 %v4153_v27 }
 0x7dc   : > { %7730 = vmatmul.mubr.msk.f32.gmra.mxu0 %vm1699_vm2, %v4154_v40 }
 0x7dd   : > { %4321 = vmatmul.mubr.f32.gmra.mxu1 %v4152_v53  ;;  %7732 = vmatprep.mubr.msk.f32.mxu0 %vm8338_vm0, %v11241_v4 }
 0x7de   : > { %4325 = vmatprep.mubr.f32.mxu1 %v4156_v2 }
 0x7e0   : > { %7733 = vmatmul.mubr.msk.f32.gmra.mxu0 %vm1699_vm2, %v4157_v31 }
 0x7e1   : > { %4326 = vmatmul.mubr.f32.gmra.mxu1 %v4155_v43  ;;  %7735 = vmatprep.mubr.msk.f32.mxu0 %vm8338_vm0, %v11241_v4 }
 0x7e2   : > { %4330 = vmatprep.mubr.f32.mxu1 %v4159_v23 }
 0x7e4   : > { %7736 = vmatmul.mubr.msk.f32.gmra.mxu0 %vm1699_vm2, %v4160_v16 }
 0x7e5   : > { %4331 = vmatmul.mubr.f32.gmra.mxu1 %v4158_v29  ;;  %7738 = vmatprep.mubr.msk.f32.mxu0 %vm8338_vm0, %v11241_v4 }
 0x7e6   : > { %4335 = vmatprep.mubr.f32.mxu1 %v4162_v30 }
 0x7e8   : > { %7739 = vmatmul.mubr.msk.f32.gmra.mxu0 %vm1699_vm2, %v4163_v50 }
 0x7e9   : > { %4336 = vmatmul.mubr.f32.gmra.mxu1 %v4161_v8  ;;  %7741 = vmatprep.mubr.msk.f32.mxu0 %vm8338_vm0, %v11241_v4 }
 0x7ea   : > { %4340 = vmatprep.mubr.f32.mxu1 %v4165_v45 }
 0x7ec   : > { %7742 = vmatmul.mubr.msk.f32.gmra.mxu0 %vm1699_vm2, %v4166_v42 }
 0x7ed   : > { %4341 = vmatmul.mubr.f32.gmra.mxu1 %v4164_v58  ;;  %7744 = vmatprep.mubr.msk.f32.mxu0 %vm8338_vm0, %v11241_v4 }
 0x7ee   : > { %4345 = vmatprep.mubr.f32.mxu1 %v4168_v49 }
 0x7f0   : > { %7745 = vmatmul.mubr.msk.f32.gmra.mxu0 %vm1699_vm2, %v4169_v61 }
 0x7f1   : > { %4346 = vmatmul.mubr.f32.gmra.mxu1 %v4167_v24  ;;  %7747 = vmatprep.mubr.msk.f32.mxu0 %vm8338_vm0, %v11241_v4 }
 0x7f2   : > { %4350 = vmatprep.mubr.f32.mxu1 %v4171_v59 }
 0x7f4   : > { %7748 = vmatmul.mubr.msk.f32.gmra.mxu0 %vm1699_vm2, %v4172_v52 }
 0x7f5   : > { %4351 = vmatmul.mubr.f32.gmra.mxu1 %v4170_v10  ;;  %7750 = vmatprep.mubr.msk.f32.mxu0 %vm8338_vm0, %v11241_v4 }
 0x7f6   : > { %4355 = vmatprep.mubr.f32.mxu1 %v4174_v51 }
 0x7f8   : > { %7751 = vmatmul.mubr.msk.f32.gmra.mxu0 %vm1699_vm2, %v4175_v21 }
 0x7f9   : > { %4356 = vmatmul.mubr.f32.gmra.mxu1 %v4173_v57 }
 0x7fa   : > { %7783 = vmatprep.mubr.msk.f32.mxu1 %vm748_vm1, %v6381_v41 }
 0x880   : > { %v4427_v55 = vpop.f32.mrf.mxu0 }
 0x881   : > { %v6941_v46 = vpop.f32.mrf.mxu1 }
 0x882   : > { %v7710_v20 = vpop.f32.mrf.mxu0 }
 0x883   : > { %v6942_v25 = vpop.f32.mrf.mxu1 }
 0x884   : > { %v6943_v38 = vadd.f32 %v6942_v25, %v6941_v46  ;;  %v4432_v56 = vpop.f32.mrf.mxu0  ;;  %v4605_v46 = vpop.permute.xlu1 %4604 }
 0x885   : > { %v6944_v34 = vpop.f32.mrf.mxu1 }
 0x886   : > { %v10303_v48 = vadd.f32 %v6943_v38, %v4427_v55  ;;  %v7713_v6 = vpop.f32.mrf.mxu0 }
 0x887   : > { %v6945_v7 = vpop.f32.mrf.mxu1 }
 0x888   : > { %v6946_v44 = vadd.f32 %v6945_v7, %v6944_v34  ;;  %v4437_v62 = vpop.f32.mrf.mxu0  ;;  %v4600_v34 = vpop.permute.xlu0 %4599 }
 0x889   : > { %v6947_v47 = vpop.f32.mrf.mxu1 }
 0x88a   : > { %v10305_v5 = vadd.f32 %v6946_v44, %v4432_v56  ;;  %v7716_v32 = vpop.f32.mrf.mxu0 }
 0x88b   : > { %v6948_v37 = vpop.f32.mrf.mxu1 }
 0x88c   : > { %v6949_v13 = vadd.f32 %v6948_v37, %v6947_v47  ;;  %v4442_v12 = vpop.f32.mrf.mxu0 }
 0x88d   : > { %v6950_v39 = vpop.f32.mrf.mxu1 }
 0x88e   : > { %v10307_v3 = vadd.f32 %v6949_v13, %v4437_v62  ;;  %v7719_v26 = vpop.f32.mrf.mxu0  ;;  %v4595_v62 = vpop.permute.xlu1 %4594 }
 0x88f   : > { %v6951_v14 = vpop.f32.mrf.mxu1 }
 0x890   : > { %v6952_v15 = vadd.f32 %v6951_v14, %v6950_v39  ;;  %v10309_v36 = vpop.f32.mrf.mxu0  ;;  %v4590_v14 = vpop.permute.xlu0 %4589 }
 0x891   : > { %v10311_v9 = vpop.f32.mrf.mxu1 }
 0x892   : > { %v10313_v1 = vadd.f32 %v6952_v15, %v4442_v12  ;;  %v7722_v0 = vpop.f32.mrf.mxu0 }
 0x893   : > { %v10315_v19 = vpop.f32.mrf.mxu1 }
 0x894   : > { %v10317_v33 = vpop.f32.mrf.mxu0 }
 0x895   : > { %v10319_v11 = vpop.f32.mrf.mxu1 }
 0x896   : > { %v7725_v54 = vpop.f32.mrf.mxu0 }
 0x897   : > { %v10321_v17 = vpop.f32.mrf.mxu1 }
 0x898   : > { %v10323_v63 = vpop.f32.mrf.mxu0 }
 0x899   : > { %v10325_v27 = vpop.f32.mrf.mxu1 }
 0x89a   : > { %v7728_v40 = vpop.f32.mrf.mxu0 }
 0x89b   : > { %v6960_v53 = vpop.f32.mrf.mxu1  ;;  %v4585_v40 = vpop.permute.xlu1 %4584 }
 0x89c   : > { %v10327_v2 = vpop.f32.mrf.mxu0 }
 0x89d   : > { %v6962_v31 = vpop.f32.mrf.mxu1 }
 0x89e   : > { %v7731_v43 = vpop.f32.mrf.mxu0 }
 0x89f   : > { %v6963_v23 = vpop.f32.mrf.mxu1 }
 0x8a0   : > { %v4467_v16 = vpop.f32.mrf.mxu0 }
 0x8a1   : > { %v6965_v29 = vpop.f32.mrf.mxu1 }
 0x8a2   : > { %v7734_v30 = vpop.f32.mrf.mxu0 }
 0x8a3   : > { %v6966_v50 = vpop.f32.mrf.mxu1 }
 0x8a4   : > { %v4472_v8 = vpop.f32.mrf.mxu0 }
 0x8a5   : > { %v6968_v45 = vpop.f32.mrf.mxu1 }
 0x8a6   : > { %v7737_v42 = vpop.f32.mrf.mxu0 }
 0x8a7   : > { %v6969_v58 = vpop.f32.mrf.mxu1 }
 0x8a8   : > { %v4477_v49 = vpop.f32.mrf.mxu0  ;;  %v6970_v43 = vadd.f32 %v6969_v58, %v6968_v45  ;;  %v4575_v45 = vpop.permute.xlu1 %4574 }
 0x8a9   : > { %v6971_v61 = vpop.f32.mrf.mxu1 }
 0x8aa   : > { %v7740_v24 = vpop.f32.mrf.mxu0 }
 0x8ab   : > { %v6972_v59 = vpop.f32.mrf.mxu1 }
 0x8ac   : > { %v4482_v52 = vpop.f32.mrf.mxu0  ;;  %v6973_v15 = vadd.f32 %v6972_v59, %v6971_v61 }
 0x8ad   : > { %v6974_v10 = vpop.f32.mrf.mxu1 }
 0x8ae   : > { %v7743_v51 = vpop.f32.mrf.mxu0 }
 0x8af   : > { %v6975_v21 = vpop.f32.mrf.mxu1  ;;  %v6967_v51 = vadd.f32 %v6966_v50, %v6965_v29 }
 0x8b0   : > { %v4487_v57 = vpop.f32.mrf.mxu0  ;;  %v6976_v12 = vadd.f32 %v6975_v21, %v6974_v10  ;;  %v4580_v10 = vpop.permute.xlu0 %4579  ;;  %v6964_v21 = vadd.f32 %v6963_v23, %v6962_v31  ;;  %v11267_v23 = vld [vmem:[#allocation26_spill] sm:$0xff] }
 0x8b1   : > { %v6977_v41 = vpop.f32.mrf.mxu1 }
 0x8b2   : > { %v7746_v55 = vpop.f32.mrf.mxu0  ;;  %v4483_v30 = vadd.f32 %v6976_v12, %v4482_v52  ;;  %v4463_v31 = vadd.f32 %v6964_v21, %v10327_v2  ;;  %v6389_v21 = vld [vmem:[%s10900_s7 + $0x1c0] sm:$0xff] }
 0x8b3   : > { %v6978_v20 = vpop.f32.mrf.mxu1  ;;  %v4478_v55 = vadd.f32 %v6973_v15, %v4477_v49  ;;  %v11271_v49 = vld [vmem:[#allocation28_spill] sm:$0xff] }
 0x8b4   : > { %v4492_v25 = vpop.f32.mrf.mxu0  ;;  %v6979_v32 = vadd.f32 %v6978_v20, %v6977_v41  ;;  %v4512_v61 = vadd.f32 %v4483_v30, %v10002_v35  ;;  %v6958_v35 = vadd.f32 %v10321_v17, %v10319_v11  ;;  %v4565_v17 = vpop.permute.xlu1 %4564  ;;  %v4508_v52 = vadd.f32 %v4463_v31, %v11271_v49  ;;  %v6397_v31 = vld [vmem:[%s10900_s7 + $0x200] sm:$0xff]  ;;  %v6407_v49 = vld [vmem:[%s10900_s7 + $0x250] sm:$0xff] }
 0x8b5   : > { %v6980_v38 = vpop.f32.mrf.mxu1  ;;  %v4511_v29 = vadd.f32 %v4478_v55, %v10010_v22  ;;  %v6955_v22 = vadd.f32 %v10315_v19, %v10311_v9  ;;  %v11273_v19 = vld [vmem:[#allocation29_spill] sm:$0xff]  ;;  %v6386_v55 = vld [vmem:[%s10900_s7 + $0x1a8] sm:$0xff] }
 0x8b6   : > { %v7749_v56 = vpop.f32.mrf.mxu0  ;;  %v4488_v0 = vadd.f32 %v6979_v32, %v4487_v57  ;;  %v4453_v2 = vadd.f32 %v6958_v35, %v10317_v33  ;;  %v11275_v33 = vld [vmem:[#allocation30_spill] sm:$0xff]  ;;  %v6396_v35 = vld [vmem:[%s10900_s7 + $0x1f8] sm:$0xff] }
 0x8b7   : > { %v6981_v6 = vpop.f32.mrf.mxu1  ;;  %v10358_v11 = vadd.f32 %v4585_v40, %v4511_v29  ;;  %v4448_v9 = vadd.f32 %v6955_v22, %v10309_v36  ;;  %v6395_v29 = vld [vmem:[%s10900_s7 + $0x1f0] sm:$0xff]  ;;  %v6401_v22 = vld [vmem:[%s10900_s7 + $0x220] sm:$0xff] }
 0x8b8   : > { %v6982_v7 = vadd.f32 %v6981_v6, %v6980_v38  ;;  %v4497_v44 = vpop.f32.mrf.mxu0  ;;  %v4513_v41 = vadd.f32 %v4488_v0, %v9994_v28  ;;  %v4506_v56 = vadd.f32 %v4453_v2, %v11275_v33  ;;  %v4555_v6 = vpop.permute.xlu1 %4554  ;;  %v11285_v0 = vld [vmem:[#allocation35_spill] sm:$0xff]  ;;  %v6413_v33 = vld [vmem:[%s10900_s7 + $0x280] sm:$0xff] }
 0x8b9   : > { %v6983_v47 = vpop.f32.mrf.mxu1  ;;  %11270 = vst [vmem:[#allocation40_spill] sm:$0xff] %v10358_v11  ;;  %v6406_v2 = vld [vmem:[%s10900_s7 + $0x248] sm:$0xff] }
 0x8ba   : > { %v7752_v37 = vpop.f32.mrf.mxu0  ;;  %v4493_v39 = vadd.f32 %v6982_v7, %v4492_v25  ;;  %v4473_v25 = vadd.f32 %v6970_v43, %v4472_v8  ;;  %v10342_v28 = vadd.f32 %v4595_v62, %v4513_v41  ;;  %v10350_v8 = vadd.f32 %v4590_v14, %v4512_v61  ;;  %v11277_v7 = vld [vmem:[#allocation31_spill] sm:$0xff]  ;;  %v11279_v62 = vld [vmem:[#allocation32_spill] sm:$0xff]  ;;  %v11283_v14 = vld [vmem:[#allocation34_spill] sm:$0xff] }
 0x8bb   : > { %v6984_v13 = vpop.f32.mrf.mxu1  ;;  %v4505_v36 = vadd.f32 %v4448_v9, %v11277_v7  ;;  %v6387_v41 = vld [vmem:[%s10900_s7 + $0x1b0] sm:$0xff]  ;;  %v6409_v9 = vld [vmem:[%s10900_s7 + $0x260] sm:$0xff]  ;;  %v6416_v7 = vld [vmem:[%s10900_s7 + $0x298] sm:$0xff] }
 0x8bc   : > { %v6985_v26 = vadd.f32 %v6984_v13, %v6983_v47  ;;  %v4514_v42 = vadd.f32 %v4493_v39, %v9986_v18  ;;  %v4468_v18 = vadd.f32 %v6967_v51, %v4467_v16  ;;  %11266 = vst [vmem:[#allocation38_spill] sm:$0xff] %v10342_v28  ;;  %v4510_v50 = vadd.f32 %v4473_v25, %v11267_v23  ;;  %v11269_v16 = vld [vmem:[#allocation27_spill] sm:$0xff]  ;;  %v11281_v13 = vld [vmem:[#allocation33_spill] sm:$0xff]  ;;  %v6385_v51 = vld [vmem:[%s10900_s7 + $0x1a0] sm:$0xff] }
 0x8bd   : > { %11268 = vst [vmem:[#allocation39_spill] sm:$0xff] %v10350_v8  ;;  %v4504_v47 = vadd.f32 %v10313_v1, %v11279_v62  ;;  %v4503_v12 = vadd.f32 %v10307_v3, %v11281_v13  ;;  %v10392_v39 = vadd.f32 %v4555_v6, %v4505_v36  ;;  %v4502_v1 = vadd.f32 %v10305_v5, %v11283_v14  ;;  %v6390_v25 = vld [vmem:[%s10900_s7 + $0x1c8] sm:$0xff]  ;;  %v6391_v61 = vld [vmem:[%s10900_s7 + $0x1d0] sm:$0xff]  ;;  %v6417_v36 = vld [vmem:[%s10900_s7 + $0x2a0] sm:$0xff] }
 0x8be   : > { %v4498_v54 = vadd.f32 %v6985_v26, %v4497_v44  ;;  %v10336_v59 = vadd.f32 %v4600_v34, %v4514_v42  ;;  %v4509_v58 = vadd.f32 %v4468_v18, %v11269_v16  ;;  %v10364_v57 = vadd.f32 %v4580_v10, %v4510_v50  ;;  %v4545_v26 = vpop.permute.xlu1 %4544  ;;  %v6383_v42 = vld [vmem:[%s10900_s7 + $0x190] sm:$0xff]  ;;  %v6388_v10 = vld [vmem:[%s10900_s7 + $0x1b8] sm:$0xff]  ;;  %v6394_v18 = vld [vmem:[%s10900_s7 + $0x1e8] sm:$0xff] }
 0x8bf   : > { %11282 = vst [vmem:[#allocation42_spill] sm:$0xff] %v10392_v39  ;;  %v10404_v3 = vadd.f32 %v4545_v26, %v4503_v12  ;;  %v6398_v23 = vld [vmem:[%s10900_s7 + $0x208] sm:$0xff]  ;;  %v6399_v50 = vld [vmem:[%s10900_s7 + $0x210] sm:$0xff]  ;;  %v6421_v13 = vld [vmem:[%s10900_s7 + $0x2c0] sm:$0xff] }
 0x8c0   : > { %v4515_v24 = vadd.f32 %v4498_v54, %v9979_v60  ;;  %11265 = vst [vmem:[#allocation37_spill] sm:$0xff] %v10336_v59  ;;  %v6961_v60 = vadd.f32 %v6960_v53, %v10325_v27  ;;  %v4570_v27 = vpop.permute.xlu0 %4569  ;;  %11272 = vst [vmem:[#allocation67_spill] sm:$0xff] %v10364_v57  ;;  %v4501_v54 = vadd.f32 %v10303_v48, %v11285_v0  ;;  %v6382_v48 = vld [vmem:[%s10900_s7 + $0x188] sm:$0xff]  ;;  %v6403_v16 = vld [vmem:[%s10900_s7 + $0x230] sm:$0xff] }
 0x8c1   : > { %v10375_v34 = vadd.f32 %v4570_v27, %v4508_v52  ;;  %11286 = vst [vmem:[#allocation43_spill] sm:$0xff] %v10404_v3  ;;  %v6400_v27 = vld [vmem:[%s10900_s7 + $0x218] sm:$0xff]  ;;  %v6415_v6 = vld [vmem:[%s10900_s7 + $0x290] sm:$0xff]  ;;  %v6418_v62 = vld [vmem:[%s10900_s7 + $0x2a8] sm:$0xff] }
 0x8c2   : > { %v10332_v20 = vadd.f32 %v4605_v46, %v4515_v24  ;;  %v4458_v53 = vadd.f32 %v6961_v60, %v10323_v63  ;;  %v10370_v46 = vadd.f32 %v4575_v45, %v4509_v58  ;;  %v4535_v5 = vpop.permute.xlu1 %4534  ;;  %v6384_v24 = vld [vmem:[%s10900_s7 + $0x198] sm:$0xff]  ;;  %v6393_v60 = vld [vmem:[%s10900_s7 + $0x1e0] sm:$0xff]  ;;  %v6422_v12 = vld [vmem:[%s10900_s7 + $0x2c8] sm:$0xff] }
 0x8c3   : > { %11276 = vst [vmem:[#allocation69_spill] sm:$0xff] %v10375_v34  ;;  %v10412_v30 = vadd.f32 %v4535_v5, %v4501_v54  ;;  %v6392_v45 = vld [vmem:[%s10900_s7 + $0x1d8] sm:$0xff]  ;;  %v6423_v26 = vld [vmem:[%s10900_s7 + $0x2d0] sm:$0xff]  ;;  %v6426_v0 = vld [vmem:[%s10900_s7 + $0x2e8] sm:$0xff] }
 0x8c4   : > { %11264 = vst [vmem:[#allocation36_spill] sm:$0xff] %v10332_v20  ;;  %7753 = vmatprep.subr.mxu1 %v10332_v20  ;;  %v4507_v63 = vadd.f32 %v4458_v53, %v11273_v19  ;;  %11274 = vst [vmem:[#allocation66_spill] sm:$0xff] %v10370_v46  ;;  %v4560_v38 = vpop.permute.xlu0 %4559  ;;  %v6402_v53 = vld [vmem:[%s10900_s7 + $0x228] sm:$0xff]  ;;  %v6404_v58 = vld [vmem:[%s10900_s7 + $0x238] sm:$0xff] }
 0x8c5   : > { %7754 = vmatpush3.msra.mxu1 %v10332_v20  ;;  %v10386_v32 = vadd.f32 %v4560_v38, %v4506_v56  ;;  %11288 = vst [vmem:[#allocation44_spill] sm:$0xff] %v10412_v30  ;;  %v6408_v52 = vld [vmem:[%s10900_s7 + $0x258] sm:$0xff]  ;;  %v6410_v19 = vld [vmem:[%s10900_s7 + $0x268] sm:$0xff]  ;;  %v6427_v54 = vld [vmem:[%s10900_s7 + $0x2f0] sm:$0xff] }
 0x8c6   : > { %7755 = vmatprep.subr.mxu1 %v10336_v59  ;;  %v10380_v44 = vadd.f32 %v4565_v17, %v4507_v63  ;;  %v6405_v17 = vld [vmem:[%s10900_s7 + $0x240] sm:$0xff]  ;;  %v6411_v63 = vld [vmem:[%s10900_s7 + $0x270] sm:$0xff]  ;;  %v6412_v38 = vld [vmem:[%s10900_s7 + $0x278] sm:$0xff] }
 0x8c7   : > { %7756 = vmatpush3.msra.mxu1 %v10336_v59  ;;  %11280 = vst [vmem:[#allocation71_spill] sm:$0xff] %v10386_v32  ;;  %v6414_v56 = vld [vmem:[%s10900_s7 + $0x288] sm:$0xff]  ;;  %v6424_v14 = vld [vmem:[%s10900_s7 + $0x2d8] sm:$0xff]  ;;  %v5459_v5 = vld [vmem:[#allocation13 + $0x170] sm:$0xff] }
 0x8c8   : > { %7757 = vmatprep.subr.mxu1 %v10342_v28  ;;  %11278 = vst [vmem:[#allocation41_spill] sm:$0xff] %v10380_v44  ;;  %v4550_v37 = vpop.permute.xlu0 %4549  ;;  %5567 = vmatprep.mubr.f32.mxu0 %v5459_v5 }
 0x8c9   : > { %7758 = vmatpush3.msra.mxu1 %v10342_v28  ;;  %v10398_v15 = vadd.f32 %v4550_v37, %v4504_v47  ;;  %v6419_v47 = vld [vmem:[%s10900_s7 + $0x2b0] sm:$0xff]  ;;  %v6420_v37 = vld [vmem:[%s10900_s7 + $0x2b8] sm:$0xff] }
 0x8ca   : > { %7759 = vmatprep.subr.mxu1 %v10350_v8 }
 0x8cb   : > { %7760 = vmatpush3.msra.mxu1 %v10350_v8  ;;  %11284 = vst [vmem:[#allocation73_spill] sm:$0xff] %v10398_v15 }
 0x8cc   : > { %7761 = vmatprep.subr.mxu1 %v10358_v11  ;;  %v4540_v40 = vpop.permute.xlu0 %4539 }
 0x8cd   : > { %7762 = vmatpush3.msra.mxu1 %v10358_v11  ;;  %v10408_v43 = vadd.f32 %v4540_v40, %v4502_v1  ;;  %v6425_v1 = vld [vmem:[%s10900_s7 + $0x2e0] sm:$0xff]  ;;  %v6428_v40 = vld [vmem:[%s10900_s7 + $0x2f8] sm:$0xff] }
 0x8ce   : > { %7763 = vmatprep.subr.mxu1 %v10364_v57 }
 0x8cf   : > { %7764 = vmatpush3.msra.mxu1 %v10364_v57  ;;  %11287 = vst [vmem:[#allocation74_spill] sm:$0xff] %v10408_v43 }
 0x8d0   : > { %7765 = vmatprep.subr.mxu1 %v10370_v46 }
 0x8d1   : > { %7766 = vmatpush3.msra.mxu1 %v10370_v46 }
 0x8d2   : > { %7767 = vmatprep.subr.mxu1 %v10375_v34 }
 0x8d3   : > { %7768 = vmatpush3.msra.mxu1 %v10375_v34 }
 0x8d4   : > { %7769 = vmatprep.subr.mxu1 %v10380_v44 }
 0x8d5   : > { %7770 = vmatpush3.msra.mxu1 %v10380_v44 }
 0x8d6   : > { %7771 = vmatprep.subr.mxu1 %v10386_v32 }
 0x8d7   : > { %7772 = vmatpush3.msra.mxu1 %v10386_v32 }
 0x8d8   : > { %7773 = vmatprep.subr.mxu1 %v10392_v39 }
 0x8d9   : > { %7774 = vmatpush3.msra.mxu1 %v10392_v39 }
 0x8da   : > { %7775 = vmatprep.subr.mxu1 %v10398_v15 }
 0x8db   : > { %7776 = vmatpush3.msra.mxu1 %v10398_v15 }
 0x8dc   : > { %7777 = vmatprep.subr.mxu1 %v10404_v3 }
 0x8dd   : > { %7778 = vmatpush3.msra.mxu1 %v10404_v3 }
 0x8de   : > { %7779 = vmatprep.subr.mxu1 %v10408_v43 }
 0x8df   : > { %7780 = vmatpush3.msra.mxu1 %v10408_v43 }
 0x8e0   : > { %7781 = vmatprep.subr.mxu1 %v10412_v30 }
 0x8e1   : > { %7782 = vmatpush3.msra.mxu1 %v10412_v30 }
 0x8e2   : > { %7784 = vmatmul.mubr.msk.f32.vlgmr.msra.gmra.mxu1 %vm748_vm1, %v6382_v48  ;;  %v4878_v48 = vpop.permute.xlu0 %4877 }
 0x8e3   : > { %7786 = vmatprep.mubr.msk.f32.mxu1 %vm748_vm1, %v6383_v42  ;;  %v4798_v42 = vpop.permute.xlu1 %4797 }
 0x8e6   : > { %7787 = vmatmul.mubr.msk.f32.gmra.mxu1 %vm748_vm1, %v6384_v24  ;;  %v10605_v24 = vpop.permute.xlu0 %4872 }
 0x8e7   : > { %7789 = vmatprep.mubr.msk.f32.mxu1 %vm748_vm1, %v6385_v51  ;;  %v4793_v51 = vpop.permute.xlu1 %4792 }
 0x8ea   : > { %7790 = vmatmul.mubr.msk.f32.gmra.mxu1 %vm748_vm1, %v6386_v55  ;;  %v4868_v55 = vpop.permute.xlu0 %4867 }
 0x8eb   : > { %7792 = vmatprep.mubr.msk.f32.mxu1 %vm748_vm1, %v6387_v41  ;;  %v4788_v41 = vpop.permute.xlu1 %4787 }
 0x8ee   : > { %7793 = vmatmul.mubr.msk.f32.gmra.mxu1 %vm748_vm1, %v6388_v10  ;;  %v10607_v10 = vpop.permute.xlu0 %4862 }
 0x8ef   : > { %7795 = vmatprep.mubr.msk.f32.mxu1 %vm748_vm1, %v6389_v21 }
 0x8f2   : > { %7796 = vmatmul.mubr.msk.f32.gmra.mxu1 %vm748_vm1, %v6390_v25  ;;  %v10611_v25 = vpop.permute.xlu1 %4782 }
 0x8f3   : > { %7798 = vmatprep.mubr.msk.f32.mxu1 %vm748_vm1, %v6391_v61 }
 0x8f6   : > { %7799 = vmatmul.mubr.msk.f32.gmra.mxu1 %vm748_vm1, %v6392_v45 }
 0x8f7   : > { %7801 = vmatprep.mubr.msk.f32.mxu1 %vm748_vm1, %v6393_v60  ;;  %v10617_v60 = vpop.permute.xlu0 %4857 }
 0x8fa   : > { %7802 = vmatmul.mubr.msk.f32.gmra.mxu1 %vm748_vm1, %v6394_v18 }
 0x8fb   : > { %7804 = vmatprep.mubr.msk.f32.mxu1 %vm748_vm1, %v6395_v29  ;;  %v10621_v29 = vpop.permute.xlu1 %4777 }
 0x8fe   : > { %7805 = vmatmul.mubr.msk.f32.gmra.mxu1 %vm748_vm1, %v6396_v35 }
 0x8ff   : > { %7807 = vmatprep.mubr.msk.f32.mxu1 %vm748_vm1, %v6397_v31 }
 0x902   : > { %7808 = vmatmul.mubr.msk.f32.gmra.mxu1 %vm748_vm1, %v6398_v23  ;;  %v10627_v23 = vpop.permute.xlu0 %4852 }
 0x903   : > { %7810 = vmatprep.mubr.msk.f32.mxu1 %vm748_vm1, %v6399_v50 }
 0x906   : > { %7811 = vmatmul.mubr.msk.f32.gmra.mxu1 %vm748_vm1, %v6400_v27  ;;  %v10631_v27 = vpop.permute.xlu1 %4772 }
 0x907   : > { %7813 = vmatprep.mubr.msk.f32.mxu1 %vm748_vm1, %v6401_v22 }
 0x90a   : > { %7814 = vmatmul.mubr.msk.f32.gmra.mxu1 %vm748_vm1, %v6402_v53 }
 0x90b   : > { %7816 = vmatprep.mubr.msk.f32.mxu1 %vm748_vm1, %v6403_v16  ;;  %v10637_v16 = vpop.permute.xlu0 %4847 }
 0x90e   : > { %7817 = vmatmul.mubr.msk.f32.gmra.mxu1 %vm748_vm1, %v6404_v58 }
 0x90f   : > { %7819 = vmatprep.mubr.msk.f32.mxu1 %vm748_vm1, %v6405_v17  ;;  %v10641_v17 = vpop.permute.xlu1 %4767 }
 0x912   : > { %7820 = vmatmul.mubr.msk.f32.gmra.mxu1 %vm748_vm1, %v6406_v2 }
 0x913   : > { %7822 = vmatprep.mubr.msk.f32.mxu1 %vm748_vm1, %v6407_v49 }
 0x916   : > { %7823 = vmatmul.mubr.msk.f32.gmra.mxu1 %vm748_vm1, %v6408_v52  ;;  %v10645_v52 = vpop.permute.xlu0 %4842 }
 0x917   : > { %7825 = vmatprep.mubr.msk.f32.mxu1 %vm748_vm1, %v6409_v9 }
 0x91a   : > { %7826 = vmatmul.mubr.msk.f32.gmra.mxu1 %vm748_vm1, %v6410_v19  ;;  %v10647_v19 = vpop.permute.xlu1 %4762 }
 0x91b   : > { %7828 = vmatprep.mubr.msk.f32.mxu1 %vm748_vm1, %v6411_v63 }
 0x91e   : > { %7829 = vmatmul.mubr.msk.f32.gmra.mxu1 %vm748_vm1, %v6412_v38 }
 0x91f   : > { %7831 = vmatprep.mubr.msk.f32.mxu1 %vm748_vm1, %v6413_v33  ;;  %v10649_v33 = vpop.permute.xlu0 %4837 }
 0x922   : > { %7832 = vmatmul.mubr.msk.f32.gmra.mxu1 %vm748_vm1, %v6414_v56 }
 0x923   : > { %7834 = vmatprep.mubr.msk.f32.mxu1 %vm748_vm1, %v6415_v6  ;;  %v10651_v6 = vpop.permute.xlu1 %4757 }
 0x926   : > { %7835 = vmatmul.mubr.msk.f32.gmra.mxu1 %vm748_vm1, %v6416_v7 }
 0x927   : > { %7837 = vmatprep.mubr.msk.f32.mxu1 %vm748_vm1, %v6417_v36 }
 0x92a   : > { %7838 = vmatmul.mubr.msk.f32.gmra.mxu1 %vm748_vm1, %v6418_v62  ;;  %v10657_v62 = vpop.permute.xlu0 %4832 }
 0x92b   : > { %7840 = vmatprep.mubr.msk.f32.mxu1 %vm748_vm1, %v6419_v47 }
 0x92e   : > { %7841 = vmatmul.mubr.msk.f32.gmra.mxu1 %vm748_vm1, %v6420_v37  ;;  %v10661_v37 = vpop.permute.xlu1 %4752 }
 0x92f   : > { %7843 = vmatprep.mubr.msk.f32.mxu1 %vm748_vm1, %v6421_v13 }
 0x932   : > { %7844 = vmatmul.mubr.msk.f32.gmra.mxu1 %vm748_vm1, %v6422_v12 }
 0x933   : > { %7846 = vmatprep.mubr.msk.f32.mxu1 %vm748_vm1, %v6423_v26  ;;  %v10667_v26 = vpop.permute.xlu0 %4827 }
 0x936   : > { %7847 = vmatmul.mubr.msk.f32.gmra.mxu1 %vm748_vm1, %v6424_v14 }
 0x937   : > { %7849 = vmatprep.mubr.msk.f32.mxu1 %vm748_vm1, %v6425_v1  ;;  %v10671_v1 = vpop.permute.xlu1 %4747 }
 0x93a   : > { %7850 = vmatmul.mubr.msk.f32.gmra.mxu1 %vm748_vm1, %v6426_v0 }
 0x93b   : > { %7852 = vmatprep.mubr.msk.f32.mxu1 %vm748_vm1, %v6427_v54  ;;  %v10679_v30 = vpop.permute.xlu1 %4742 }
 0x93e   : > { %7853 = vmatmul.mubr.msk.f32.gmra.mxu1 %vm748_vm1, %v6428_v40  ;;  %v10677_v40 = vpop.permute.xlu0 %4822 }
 0x93f   : > { %v10683_v32 = vpop.permute.xlu1 %4737 }
 0x942   : > { %v10681_v15 = vpop.permute.xlu0 %4817 }
 0x943   : > { %v10687_v8 = vpop.permute.xlu1 %4732 }
 0x946   : > { %v10685_v46 = vpop.permute.xlu0 %4812 }
 0x947   : > { %11296 = vst [vmem:[#allocation48_spill] sm:$0xff] %v10685_v46 }
 0x9a2   : > { %v10609_v21 = vpop.f32.mrf.mxu1 }
 0x9a3   : > { %11289 = vst [vmem:[#allocation76_spill] sm:$0xff] %v10609_v21 }
 0x9a4   : > { %v10613_v61 = vpop.f32.mrf.mxu1 }
 0x9a5   : > { %11290 = vst [vmem:[#allocation45_spill] sm:$0xff] %v10613_v61 }
 0x9a6   : > { %v10615_v45 = vpop.f32.mrf.mxu1 }
 0x9a7   : > { %11291 = vst [vmem:[#allocation78_spill] sm:$0xff] %v10615_v45 }
 0x9a8   : > { %v10619_v18 = vpop.f32.mrf.mxu1 }
 0x9a9   : > { %11292 = vst [vmem:[#allocation46_spill] sm:$0xff] %v10619_v18 }
 0x9aa   : > { %v10623_v35 = vpop.f32.mrf.mxu1 }
 0x9ac   : > { %v10625_v31 = vpop.f32.mrf.mxu1 }
 0x9ae   : > { %v10629_v50 = vpop.f32.mrf.mxu1 }
 0x9b0   : > { %v10633_v22 = vpop.f32.mrf.mxu1 }
 0x9b2   : > { %v10635_v53 = vpop.f32.mrf.mxu1 }
 0x9b4   : > { %v10639_v58 = vpop.f32.mrf.mxu1 }
 0x9b6   : > { %v7800_v2 = vpop.f32.mrf.mxu1 }
 0x9b8   : > { %v10643_v49 = vpop.f32.mrf.mxu1 }
 0x9ba   : > { %v7803_v9 = vpop.f32.mrf.mxu1 }
 0x9bb   : > { %v5236_v21 = vadd.f32 %v7803_v9, %v4788_v41 }
 0x9bc   : > { %v5230_v63 = vpop.f32.mrf.mxu1 }
 0x9be   : > { %v7806_v38 = vpop.f32.mrf.mxu1 }
 0x9bf   : > { %v5246_v57 = vadd.f32 %v7806_v38, %v4798_v42  ;;  %v5231_v42 = vadd.f32 %v5230_v63, %v10611_v25 }
 0x9c0   : > { %v5240_v56 = vpop.f32.mrf.mxu1 }
 0x9c1   : > { %v5241_v20 = vadd.f32 %v5240_v56, %v4793_v51  ;;  %v5196_v56 = vadd.f32 %v10623_v35, %v10671_v1  ;;  %v11297_v1 = vld [vmem:[#allocation78_spill] sm:$0xff] }
 0x9c2   : > { %v10653_v7 = vpop.f32.mrf.mxu1 }
 0x9c3   : > { %11293 = vst [vmem:[#allocation79_spill] sm:$0xff] %v10653_v7  ;;  %v5424_v7 = vmax.f32 %v5246_v57, 0.0  ;;  %v5423_v38 = vmax.f32 %v5241_v20, 0.0  ;;  %v5226_v57 = vadd.f32 %v7800_v2, %v10621_v29  ;;  %v5221_v20 = vadd.f32 %v10643_v49, %v10631_v27 }
 0x9c4   : > { %v10655_v36 = vpop.f32.mrf.mxu1 }
 0x9c5   : > { %11294 = vst [vmem:[#allocation47_spill] sm:$0xff] %v10655_v36  ;;  %v5419_v29 = vmax.f32 %v5221_v20, 0.0 }
 0x9c6   : > { %v10659_v47 = vpop.f32.mrf.mxu1 }
 0x9c7   : > { %v5266_v35 = vadd.f32 %v10659_v47, %v10681_v15 }
 0x9c8   : > { %v10663_v13 = vpop.f32.mrf.mxu1 }
 0x9c9   : > { %11295 = vst [vmem:[#allocation81_spill] sm:$0xff] %v10663_v13  ;;  %v10692_v13 = vpop.permute.xlu0 %4807 }
 0x9ca   : > { %v10665_v12 = vpop.f32.mrf.mxu1  ;;  %v11301_v15 = vld [vmem:[#allocation79_spill] sm:$0xff] }
 0x9cb   : > { %v5256_v47 = vadd.f32 %v11301_v15, %v10692_v13  ;;  %v5474_v15 = vld [vmem:[#allocation13 + $0x1e8] sm:$0xff] }
 0x9cc   : > { %v10669_v14 = vpop.f32.mrf.mxu1 }
 0x9ce   : > { %v10673_v0 = vpop.f32.mrf.mxu1 }
 0x9cf   : > { %v5286_v27 = vadd.f32 %v10673_v0, %v10649_v33 }
 0x9d0   : > { %v10675_v54 = vpop.f32.mrf.mxu1 }
 0x9d1   : > { %v5432_v33 = vmax.f32 %v5286_v27, 0.0 }
 0x9d2   : > { %v7821_v5 = vpop.f32.mrf.mxu1 }
 0x9d4   : > { %v5290_v43 = vpop.f32.mrf.mxu1 }
 0x9d6   : > { %v7824_v3 = vpop.f32.mrf.mxu1 }
 0x9d8   : > { %v5300_v39 = vpop.f32.mrf.mxu1 }
 0x9da   : > { %v7827_v44 = vpop.f32.mrf.mxu1 }
 0x9db   : > { %v5316_v4 = vadd.f32 %v7827_v44, %v4868_v55  ;;  %v10698_v44 = vpop.permute.xlu1 %4727  ;;  %v5421_v55 = vmax.f32 %v5231_v42, 0.0  ;;  %v11298_v42 = vld [vmem:[#allocation48_spill] sm:$0xff] }
 0x9dc   : > { %v5310_v34 = vpop.f32.mrf.mxu1 }
 0x9dd   : > { %v5311_v45 = vadd.f32 %v5310_v34, %v10607_v10  ;;  %v5301_v34 = vadd.f32 %v5300_v39, %v10627_v23  ;;  %v5216_v10 = vadd.f32 %v10635_v53, %v10641_v17 }
 0x9de   : > { %v7830_v11 = vpop.f32.mrf.mxu1 }
 0x9df   : > { %v5326_v28 = vadd.f32 %v7830_v11, %v4878_v48  ;;  %v5422_v48 = vmax.f32 %v5236_v21, 0.0  ;;  %v5437_v51 = vmax.f32 %v5311_v45, 0.0  ;;  %v5420_v21 = vmax.f32 %v5226_v57, 0.0  ;;  %v10716_v25 = vpop.permute.xlu1 %4722 }
 0x9e0   : > { %v5320_v59 = vpop.f32.mrf.mxu1  ;;  %v5435_v45 = vmax.f32 %v5301_v34, 0.0  ;;  %v5418_v17 = vmax.f32 %v5216_v10, 0.0  ;;  %v5428_v34 = vmax.f32 %v5266_v35, 0.0 }
 0x9e1   : > { %v5440_v61 = vmax.f32 %v5326_v28, 0.0  ;;  %v5321_v36 = vadd.f32 %v5320_v59, %v10605_v24  ;;  %v5306_v59 = vadd.f32 %v7824_v3, %v10617_v60  ;;  %v5438_v28 = vmax.f32 %v5316_v4, 0.0  ;;  %v10709_v3 = vpop.permute.xlu0 %4802 }
 0x9e2   : > { %v10690_v18 = vpop.f32.mrf.mxu1  ;;  %v5296_v4 = vadd.f32 %v7821_v5, %v10637_v16  ;;  %v5211_v60 = vadd.f32 %v10639_v58, %v10647_v19  ;;  %v5206_v16 = vadd.f32 %v10629_v50, %v10651_v6  ;;  %v5281_v58 = vadd.f32 %v10675_v54, %v10657_v62 }
 0x9e3   : > { %v5439_v46 = vmax.f32 %v5321_v36, 0.0  ;;  %7072 = vmatprep.subr.mxu0 %v5440_v61  ;;  %v5291_v61 = vadd.f32 %v5290_v43, %v10645_v52  ;;  %v5201_v52 = vadd.f32 %v10633_v22, %v10661_v37  ;;  %v4953_v63 = vpop.permute.xlu1 %4952  ;;  %v5276_v50 = vadd.f32 %v10665_v12, %v10667_v26 }
 0x9e4   : > { %v10696_v11 = vpop.f32.mrf.mxu1  ;;  %7073 = vmatpush3.msra.mxu0 %v5424_v7  ;;  %v5434_v53 = vmax.f32 %v5296_v4, 0.0  ;;  %v5417_v9 = vmax.f32 %v5211_v60, 0.0  ;;  %v5416_v6 = vmax.f32 %v5206_v16, 0.0  ;;  %v5271_v22 = vadd.f32 %v10669_v14, %v10677_v40 }
 0x9e5   : > { %7074 = vmatprep.subr.mxu0 %v5439_v46  ;;  %v5436_v46 = vmax.f32 %v5306_v59, 0.0  ;;  %v4958_v43 = vpop.permute.xlu0 %4957  ;;  %v5433_v49 = vmax.f32 %v5291_v61, 0.0  ;;  %v5431_v36 = vmax.f32 %v5281_v58, 0.0  ;;  %v5191_v62 = vadd.f32 %v10625_v31, %v10679_v30  ;;  %v11300_v59 = vld [vmem:[#allocation46_spill] sm:$0xff] }
 0x9e6   : > { %v10702_v24 = vpop.f32.mrf.mxu1  ;;  %7075 = vmatpush3.msra.mxu0 %v5423_v38  ;;  %v5415_v37 = vmax.f32 %v5201_v52, 0.0  ;;  %v5430_v26 = vmax.f32 %v5276_v50, 0.0  ;;  %v5186_v54 = vadd.f32 %v11297_v1, %v10683_v32  ;;  %v5414_v5 = vmax.f32 %v5196_v56, 0.0  ;;  %v11299_v38 = vld [vmem:[#allocation81_spill] sm:$0xff]  ;;  %v11302_v32 = vld [vmem:[#allocation76_spill] sm:$0xff] }
 0x9e7   : > { %7076 = vmatprep.subr.mxu0 %v5438_v28  ;;  %v4943_v40 = vpop.permute.xlu1 %4942  ;;  %v5261_v30 = vadd.f32 %v11299_v38, %v11298_v42  ;;  %v5429_v31 = vmax.f32 %v5271_v22, 0.0  ;;  %v5181_v28 = vadd.f32 %v11300_v59, %v10687_v8  ;;  %v5413_v57 = vmax.f32 %v5191_v62, 0.0  ;;  %v11304_v8 = vld [vmem:[#allocation45_spill] sm:$0xff]  ;;  %v5467_v38 = vld [vmem:[#allocation13 + $0x1b0] sm:$0xff] }
 0x9e8   : > { %v10707_v41 = vpop.f32.mrf.mxu1  ;;  %7077 = vmatpush3.msra.mxu0 %v5422_v48  ;;  %v5412_v20 = vmax.f32 %v5186_v54, 0.0  ;;  %v5171_v61 = vadd.f32 %v11304_v8, %v10716_v25  ;;  %v5462_v25 = vld [vmem:[#allocation13 + $0x188] sm:$0xff]  ;;  %v5468_v54 = vld [vmem:[#allocation13 + $0x1b8] sm:$0xff] }
 0x9e9   : > { %7078 = vmatprep.subr.mxu0 %v5437_v51  ;;  %v4948_v12 = vpop.permute.xlu0 %4947  ;;  %v5176_v51 = vadd.f32 %v11302_v32, %v10698_v44  ;;  %v5480_v8 = vld [vmem:[#allocation13 + $0x218] sm:$0xff] }
 0x9ea   : > { %v10714_v39 = vpop.f32.mrf.mxu1  ;;  %7079 = vmatpush3.msra.mxu0 %v5421_v55 }
 0x9eb   : > { %7080 = vmatprep.subr.mxu0 %v5436_v46  ;;  %v11303_v46 = vld [vmem:[#allocation47_spill] sm:$0xff]  ;;  %v4933_v13 = vpop.permute.xlu1 %4932  ;;  %v5410_v27 = vmax.f32 %v5176_v51, 0.0 }
 0x9ec   : > { %v10721_v23 = vpop.f32.mrf.mxu1  ;;  %7081 = vmatpush3.msra.mxu0 %v5420_v21  ;;  %v5251_v10 = vadd.f32 %v11303_v46, %v10709_v3  ;;  %v5427_v21 = vmax.f32 %v5261_v30, 0.0  ;;  %v5458_v3 = vld [vmem:[#allocation13 + $0x168] sm:$0xff] }
 0x9ed   : > { %7082 = vmatprep.subr.mxu0 %v5435_v45  ;;  %v4938_v4 = vpop.permute.xlu0 %4937  ;;  %v5411_v45 = vmax.f32 %v5181_v28, 0.0 }
 0x9ee   : > { %v10727_v2 = vpop.f32.mrf.mxu1  ;;  %7083 = vmatpush3.msra.mxu0 %v5419_v29  ;;  %v5426_v29 = vmax.f32 %v5256_v47, 0.0 }
 0x9ef   : > { %7084 = vmatprep.subr.mxu0 %v5434_v53  ;;  %v5425_v53 = vmax.f32 %v5251_v10, 0.0 }
 0x9f0   : > { %v10733_v19 = vpop.f32.mrf.mxu1  ;;  %7085 = vmatpush3.msra.mxu0 %v5418_v17  ;;  %v5409_v17 = vmax.f32 %v5171_v61, 0.0 }
 0x9f1   : > { %7086 = vmatprep.subr.mxu0 %v5433_v49  ;;  %v4928_v49 = vpop.permute.xlu0 %4927 }
 0x9f2   : > { %v10739_v7 = vpop.f32.mrf.mxu1  ;;  %7087 = vmatpush3.msra.mxu0 %v5417_v9 }
 0x9f3   : > { %7088 = vmatprep.subr.mxu0 %v5432_v33  ;;  %v4923_v33 = vpop.permute.xlu1 %4922 }
 0x9f4   : > { %v10745_v0 = vpop.f32.mrf.mxu1  ;;  %7089 = vmatpush3.msra.mxu0 %v5416_v6  ;;  %v11305_v6 = vmov 0.0  }
 0x9f5   : > { %7090 = vmatprep.subr.mxu0 %v5431_v36  ;;  %v5465_v36 = vld [vmem:[#allocation13 + $0x1a0] sm:$0xff] }
 0x9f6   : > { %v7848_v14 = vpop.f32.mrf.mxu1  ;;  %7091 = vmatpush3.msra.mxu0 %v5415_v37 }
 0x9f7   : > { %7092 = vmatprep.subr.mxu0 %v5430_v26  ;;  %v5386_v62 = vadd.f32 %v7848_v14, %v4938_v4  ;;  %v5464_v26 = vld [vmem:[#allocation13 + $0x198] sm:$0xff]  ;;  %v4913_v1 = vpop.permute.xlu1 %4912  ;;  %v5371_v14 = vadd.f32 %v10745_v0, %v4923_v33  ;;  %v5470_v0 = vld [vmem:[#allocation13 + $0x1c8] sm:$0xff] }
 0x9f8   : > { %v5380_v48 = vpop.f32.mrf.mxu1  ;;  %7093 = vmatpush3.msra.mxu0 %v5414_v5  ;;  %v5376_v5 = vadd.f32 %v10739_v7, %v4928_v49  ;;  %v5495_v49 = vld [vmem:[#allocation13 + $0x290] sm:$0xff]  ;;  %v5500_v33 = vld [vmem:[#allocation13 + $0x2b8] sm:$0xff] }
 0x9f9   : > { %7094 = vmatprep.subr.mxu0 %v5429_v31  ;;  %v5471_v31 = vld [vmem:[#allocation13 + $0x1d0] sm:$0xff] }
 0x9fa   : > { %v7851_v55 = vpop.f32.mrf.mxu1  ;;  %7095 = vmatpush3.msra.mxu0 %v5413_v57  ;;  %v5450_v28 = vmax.f32 %v5376_v5, 0.0  ;;  %v5361_v57 = vadd.f32 %v10733_v19, %v4913_v1  ;;  %v5473_v19 = vld [vmem:[#allocation13 + $0x1e0] sm:$0xff]  ;;  %v5490_v1 = vld [vmem:[#allocation13 + $0x268] sm:$0xff]  ;;  %v5496_v5 = vld [vmem:[#allocation13 + $0x298] sm:$0xff] }
 0x9fb   : > { %7096 = vmatprep.subr.mxu0 %v5428_v34  ;;  %v5396_v50 = vadd.f32 %v7851_v55, %v4948_v12  ;;  %v5381_v12 = vadd.f32 %v5380_v48, %v4933_v13  ;;  %v4903_v7 = vpop.permute.xlu1 %4902  ;;  %v5449_v48 = vmax.f32 %v5371_v14, 0.0  ;;  %v5477_v55 = vld [vmem:[#allocation13 + $0x200] sm:$0xff]  ;;  %v5502_v14 = vld [vmem:[#allocation13 + $0x2c8] sm:$0xff] }
 0x9fc   : > { %v5390_v60 = vpop.f32.mrf.mxu1  ;;  %7097 = vmatpush3.msra.mxu0 %v5412_v20  ;;  %v5351_v32 = vadd.f32 %v10721_v23, %v4903_v7  ;;  %v5447_v51 = vmax.f32 %v5361_v57, 0.0  ;;  %v5476_v23 = vld [vmem:[#allocation13 + $0x1f8] sm:$0xff] }
 0x9fd   : > { %7098 = vmatprep.subr.mxu0 %v5427_v21  ;;  %v5391_v22 = vadd.f32 %v5390_v60, %v4943_v40  ;;  %v5454_v37 = vmax.f32 %v5396_v50, 0.0  ;;  %v5452_v40 = vmax.f32 %v5386_v62, 0.0  ;;  %v5451_v42 = vmax.f32 %v5381_v12, 0.0  ;;  %v5501_v50 = vld [vmem:[#allocation13 + $0x2c0] sm:$0xff]  ;;  %v5472_v62 = vld [vmem:[#allocation13 + $0x1d8] sm:$0xff] }
 0x9fe   : > { %v7854_v44 = vpop.f32.mrf.mxu1  ;;  %7099 = vmatpush3.msra.mxu0 %v5411_v45  ;;  %v5445_v10 = vmax.f32 %v5351_v32, 0.0  ;;  %v5481_v12 = vld [vmem:[#allocation13 + $0x220] sm:$0xff] }
 0x9ff   : > { %v5406_v16 = vadd.f32 %v7854_v44, %v4958_v43  ;;  %7100 = vmatprep.subr.mxu0 %v5426_v29  ;;  %v5461_v43 = vld [vmem:[#allocation13 + $0x180] sm:$0xff]  ;;  %v5453_v35 = vmax.f32 %v5391_v22, 0.0  ;;  %v4893_v20 = vpop.permute.xlu1 %4892  ;;  %v5483_v29 = vld [vmem:[#allocation13 + $0x230] sm:$0xff]  ;;  %v5482_v44 = vld [vmem:[#allocation13 + $0x228] sm:$0xff] }
 0xa00   : > { %v5400_v58 = vpop.f32.mrf.mxu1  ;;  %7101 = vmatpush3.msra.mxu0 %v5410_v27  ;;  %v5463_v22 = vld [vmem:[#allocation13 + $0x190] sm:$0xff] }
 0xa01   : > { %v5456_v52 = vmax.f32 %v5406_v16, 0.0  ;;  %v5401_v9 = vadd.f32 %v5400_v58, %v4953_v63  ;;  %7102 = vmatprep.subr.mxu0 %v5425_v53  ;;  %v4918_v63 = vpop.permute.xlu0 %4917  ;;  %v5486_v53 = vld [vmem:[#allocation13 + $0x248] sm:$0xff]  ;;  %v5489_v16 = vld [vmem:[#allocation13 + $0x260] sm:$0xff]  ;;  %v5492_v58 = vld [vmem:[#allocation13 + $0x278] sm:$0xff] }
 0xa02   : > { %7103 = vmatpush3.msra.mxu0 %v5409_v17  ;;  %v5366_v59 = vadd.f32 %v10727_v2, %v4918_v63  ;;  %v5488_v17 = vld [vmem:[#allocation13 + $0x258] sm:$0xff]  ;;  %v5478_v63 = vld [vmem:[#allocation13 + $0x208] sm:$0xff] }
 0xa03   : > { %v5455_v56 = vmax.f32 %v5401_v9, 0.0  ;;  %5568 = vmatmul.mubr.f32.vlgmr.msra.gmra.mxu0 %v5458_v3  ;;  %7855 = vmatprep.subr.mxu0 %v11305_v6  ;;  %v5491_v3 = vld [vmem:[#allocation13 + $0x270] sm:$0xff]  ;;  %v5498_v9 = vld [vmem:[#allocation13 + $0x2a8] sm:$0xff] }
 0xa04   : > { %7856 = vmatpush3.msra.mxu0 %v5456_v52  ;;  %5572 = vmatprep.mubr.f32.mxu0 %v5462_v25  ;;  %v5448_v34 = vmax.f32 %v5366_v59, 0.0  ;;  %v5494_v52 = vld [vmem:[#allocation13 + $0x288] sm:$0xff]  ;;  %v5497_v25 = vld [vmem:[#allocation13 + $0x2a0] sm:$0xff] }
 0xa05   : > { %7857 = vmatprep.subr.mxu0 %v11305_v6  ;;  %v4908_v30 = vpop.permute.xlu0 %4907 }
 0xa06   : > { %7858 = vmatpush3.msra.mxu0 %v5455_v56  ;;  %v5356_v47 = vadd.f32 %v10714_v39, %v4908_v30  ;;  %v5341_v39 = vadd.f32 %v10707_v41, %v4893_v20  ;;  %v5479_v41 = vld [vmem:[#allocation13 + $0x210] sm:$0xff]  ;;  %v5460_v56 = vld [vmem:[#allocation13 + $0x178] sm:$0xff] }
 0xa07   : > { %5573 = vmatmul.mubr.f32.gmra.mxu0 %v5461_v43  ;;  %7859 = vmatprep.subr.mxu0 %v11305_v6  ;;  %v5466_v43 = vld [vmem:[#allocation13 + $0x1a8] sm:$0xff]  ;;  %v5904_v20 = vld [vmem:[%s10904_s11] sm:$0xff] }
 0xa08   : > { %7860 = vmatpush3.msra.mxu0 %v5454_v37  ;;  %5577 = vmatprep.mubr.f32.mxu0 %v5465_v36  ;;  %v5446_v46 = vmax.f32 %v5356_v47, 0.0  ;;  %v5443_v13 = vmax.f32 %v5341_v39, 0.0  ;;  %v5469_v36 = vld [vmem:[#allocation13 + $0x1c0] sm:$0xff]  ;;  %v5475_v37 = vld [vmem:[#allocation13 + $0x1f0] sm:$0xff] }
 0xa09   : > { %7861 = vmatprep.subr.mxu0 %v11305_v6  ;;  %v4898_v2 = vpop.permute.xlu0 %4897  ;;  %7962 = vmatprep.mubr.msk.f32.mxu1 %vm748_vm1, %v5904_v20 }
 0xa0a   : > { %7862 = vmatpush3.msra.mxu0 %v5453_v35  ;;  %v5346_v4 = vadd.f32 %v10702_v24, %v4898_v2  ;;  %v4883_v24 = vpop.permute.xlu1 %4882  ;;  %v5484_v35 = vld [vmem:[#allocation13 + $0x238] sm:$0xff] }
 0xa0b   : > { %5578 = vmatmul.mubr.f32.gmra.mxu0 %v5464_v26  ;;  %7863 = vmatprep.subr.mxu0 %v11305_v6  ;;  %v5331_v60 = vadd.f32 %v10696_v11, %v4883_v24  ;;  %v5485_v11 = vld [vmem:[#allocation13 + $0x240] sm:$0xff]  ;;  %v5487_v26 = vld [vmem:[#allocation13 + $0x250] sm:$0xff] }
 0xa0c   : > { %7864 = vmatpush3.msra.mxu0 %v5452_v40  ;;  %5582 = vmatprep.mubr.f32.mxu0 %v5468_v54  ;;  %v5444_v45 = vmax.f32 %v5346_v4, 0.0  ;;  %v5493_v54 = vld [vmem:[#allocation13 + $0x280] sm:$0xff]  ;;  %v5499_v40 = vld [vmem:[#allocation13 + $0x2b0] sm:$0xff] }
 0xa0d   : > { %7865 = vmatprep.subr.mxu0 %v11305_v6  ;;  %v4888_v21 = vpop.permute.xlu0 %4887 }
 0xa0e   : > { %7866 = vmatpush3.msra.mxu0 %v5451_v42  ;;  %v5336_v61 = vadd.f32 %v10690_v18, %v4888_v21  ;;  %v5441_v18 = vmax.f32 %v5331_v60, 0.0 }
 0xa0f   : > { %5583 = vmatmul.mubr.f32.gmra.mxu0 %v5467_v38  ;;  %7867 = vmatprep.subr.mxu0 %v11305_v6 }
 0xa10   : > { %7868 = vmatpush3.msra.mxu0 %v5450_v28  ;;  %5587 = vmatprep.mubr.f32.mxu0 %v5471_v31  ;;  %v5442_v27 = vmax.f32 %v5336_v61, 0.0 }
 0xa11   : > { %7869 = vmatprep.subr.mxu0 %v11305_v6 }
 0xa12   : > { %7870 = vmatpush3.msra.mxu0 %v5449_v48 }
 0xa13   : > { %5588 = vmatmul.mubr.f32.gmra.mxu0 %v5470_v0  ;;  %7871 = vmatprep.subr.mxu0 %v11305_v6 }
 0xa14   : > { %7872 = vmatpush3.msra.mxu0 %v5448_v34  ;;  %5592 = vmatprep.mubr.f32.mxu0 %v5474_v15 }
 0xa15   : > { %7873 = vmatprep.subr.mxu0 %v11305_v6 }
 0xa16   : > { %7874 = vmatpush3.msra.mxu0 %v5447_v51 }
 0xa17   : > { %5593 = vmatmul.mubr.f32.gmra.mxu0 %v5473_v19  ;;  %7875 = vmatprep.subr.mxu0 %v11305_v6 }
 0xa18   : > { %7876 = vmatpush3.msra.mxu0 %v5446_v46  ;;  %5597 = vmatprep.mubr.f32.mxu0 %v5477_v55 }
 0xa19   : > { %7877 = vmatprep.subr.mxu0 %v11305_v6 }
 0xa1a   : > { %7878 = vmatpush3.msra.mxu0 %v5445_v10 }
 0xa1b   : > { %5598 = vmatmul.mubr.f32.gmra.mxu0 %v5476_v23  ;;  %7879 = vmatprep.subr.mxu0 %v11305_v6 }
 0xa1c   : > { %7880 = vmatpush3.msra.mxu0 %v5444_v45  ;;  %5602 = vmatprep.mubr.f32.mxu0 %v5480_v8 }
 0xa1d   : > { %7881 = vmatprep.subr.mxu0 %v11305_v6 }
 0xa1e   : > { %7882 = vmatpush3.msra.mxu0 %v5443_v13 }
 0xa1f   : > { %5603 = vmatmul.mubr.f32.gmra.mxu0 %v5479_v41  ;;  %7883 = vmatprep.subr.mxu0 %v11305_v6 }
 0xa20   : > { %7884 = vmatpush3.msra.mxu0 %v5442_v27  ;;  %5607 = vmatprep.mubr.f32.mxu0 %v5483_v29 }
 0xa21   : > { %7885 = vmatprep.subr.mxu0 %v11305_v6 }
 0xa22   : > { %7886 = vmatpush3.msra.mxu0 %v5441_v18 }
 0xa23   : > { %5608 = vmatmul.mubr.f32.gmra.mxu0 %v5482_v44 }
 0xa24   : > { %5612 = vmatprep.mubr.f32.mxu0 %v5486_v53 }
 0xa27   : > { %5613 = vmatmul.mubr.f32.gmra.mxu0 %v5485_v11 }
 0xa28   : > { %5617 = vmatprep.mubr.f32.mxu0 %v5489_v16 }
 0xa2b   : > { %5618 = vmatmul.mubr.f32.gmra.mxu0 %v5488_v17 }
 0xa2c   : > { %5622 = vmatprep.mubr.f32.mxu0 %v5492_v58 }
 0xa2f   : > { %5623 = vmatmul.mubr.f32.gmra.mxu0 %v5491_v3 }
 0xa30   : > { %5627 = vmatprep.mubr.f32.mxu0 %v5495_v49 }
 0xa33   : > { %5628 = vmatmul.mubr.f32.gmra.mxu0 %v5494_v52 }
 0xa34   : > { %5632 = vmatprep.mubr.f32.mxu0 %v5498_v9 }
 0xa37   : > { %5633 = vmatmul.mubr.f32.gmra.mxu0 %v5497_v25 }
 0xa38   : > { %5637 = vmatprep.mubr.f32.mxu0 %v5501_v50 }
 0xa3b   : > { %5638 = vmatmul.mubr.f32.gmra.mxu0 %v5500_v33 }
 0xa3c   : > { %7887 = vmatprep.mubr.msk.f32.mxu0 %vm8338_vm0, %v11305_v6 }
 0xa3f   : > { %7888 = vmatmul.mubr.f32.vlgmr.msra.gmra.mxu0 %v5460_v56 }
 0xa40   : > { %7890 = vmatprep.mubr.msk.f32.mxu0 %vm8338_vm0, %v11305_v6 }
 0xa43   : > { %7891 = vmatmul.mubr.f32.gmra.mxu0 %v5463_v22 }
 0xa44   : > { %7893 = vmatprep.mubr.msk.f32.mxu0 %vm8338_vm0, %v11305_v6 }
 0xa47   : > { %7894 = vmatmul.mubr.f32.gmra.mxu0 %v5466_v43 }
 0xa48   : > { %7896 = vmatprep.mubr.msk.f32.mxu0 %vm8338_vm0, %v11305_v6 }
 0xa4b   : > { %7897 = vmatmul.mubr.f32.gmra.mxu0 %v5469_v36 }
 0xa4c   : > { %7899 = vmatprep.mubr.msk.f32.mxu0 %vm8338_vm0, %v11305_v6 }
 0xa4f   : > { %7900 = vmatmul.mubr.f32.gmra.mxu0 %v5472_v62 }
 0xa50   : > { %7902 = vmatprep.mubr.msk.f32.mxu0 %vm8338_vm0, %v11305_v6 }
 0xa53   : > { %7903 = vmatmul.mubr.f32.gmra.mxu0 %v5475_v37 }
 0xa54   : > { %7905 = vmatprep.mubr.msk.f32.mxu0 %vm8338_vm0, %v11305_v6 }
 0xa57   : > { %7906 = vmatmul.mubr.f32.gmra.mxu0 %v5478_v63 }
 0xa58   : > { %7908 = vmatprep.mubr.msk.f32.mxu0 %vm8338_vm0, %v11305_v6 }
 0xa5b   : > { %7909 = vmatmul.mubr.f32.gmra.mxu0 %v5481_v12 }
 0xa5c   : > { %7911 = vmatprep.mubr.msk.f32.mxu0 %vm8338_vm0, %v11305_v6 }
 0xa5f   : > { %7912 = vmatmul.mubr.f32.gmra.mxu0 %v5484_v35 }
 0xa60   : > { %7914 = vmatprep.mubr.msk.f32.mxu0 %vm8338_vm0, %v11305_v6 }
 0xa63   : > { %7915 = vmatmul.mubr.f32.gmra.mxu0 %v5487_v26 }
 0xa64   : > { %7917 = vmatprep.mubr.msk.f32.mxu0 %vm8338_vm0, %v11305_v6 }
 0xa67   : > { %7918 = vmatmul.mubr.f32.gmra.mxu0 %v5490_v1 }
 0xa68   : > { %7920 = vmatprep.mubr.msk.f32.mxu0 %vm8338_vm0, %v11305_v6 }
 0xa6b   : > { %7921 = vmatmul.mubr.f32.gmra.mxu0 %v5493_v54 }
 0xa6c   : > { %7923 = vmatprep.mubr.msk.f32.mxu0 %vm8338_vm0, %v11305_v6 }
 0xa6f   : > { %7924 = vmatmul.mubr.f32.gmra.mxu0 %v5496_v5 }
 0xa70   : > { %7926 = vmatprep.mubr.msk.f32.mxu0 %vm8338_vm0, %v11305_v6 }
 0xa73   : > { %7927 = vmatmul.mubr.f32.gmra.mxu0 %v5499_v40 }
 0xa74   : > { %7929 = vmatprep.mubr.msk.f32.mxu0 %vm8338_vm0, %v11305_v6 }
 0xa77   : > { %7930 = vmatmul.mubr.f32.gmra.mxu0 %v5502_v14 }
 0xac3   : > { %v7104_v42 = vpop.f32.mrf.mxu0 }
 0xac5   : > { %v7105_v38 = vpop.f32.mrf.mxu0 }
 0xac6   : > { %v7106_v30 = vadd.f32 %v7105_v38, %v7104_v42 }
 0xac7   : > { %v7107_v31 = vpop.f32.mrf.mxu0 }
 0xac9   : > { %v7108_v59 = vpop.f32.mrf.mxu0 }
 0xaca   : > { %v7109_v28 = vadd.f32 %v7108_v59, %v7107_v31 }
 0xacb   : > { %v7110_v7 = vpop.f32.mrf.mxu0 }
 0xacd   : > { %v7111_v57 = vpop.f32.mrf.mxu0 }
 0xace   : > { %v7112_v48 = vadd.f32 %v7111_v57, %v7110_v7  ;;  %v5887_v57 = vpop.permute.xlu0 %5886 }
 0xacf   : > { %v7113_v0 = vpop.f32.mrf.mxu0 }
 0xad1   : > { %v7114_v15 = vpop.f32.mrf.mxu0 }
 0xad2   : > { %v7115_v47 = vadd.f32 %v7114_v15, %v7113_v0  ;;  %v5882_v15 = vpop.permute.xlu1 %5881 }
 0xad3   : > { %v7116_v34 = vpop.f32.mrf.mxu0 }
 0xad5   : > { %v7117_v2 = vpop.f32.mrf.mxu0 }
 0xad6   : > { %v10819_v32 = vadd.f32 %v7117_v2, %v7116_v34  ;;  %v5877_v34 = vpop.permute.xlu0 %5876 }
 0xad7   : > { %v7119_v51 = vpop.f32.mrf.mxu0 }
 0xad9   : > { %v7120_v6 = vpop.f32.mrf.mxu0 }
 0xada   : > { %v10821_v19 = vadd.f32 %v7120_v6, %v7119_v51 }
 0xadb   : > { %v7122_v55 = vpop.f32.mrf.mxu0 }
 0xadd   : > { %v7123_v4 = vpop.f32.mrf.mxu0 }
 0xade   : > { %v10827_v46 = vadd.f32 %v7123_v4, %v7122_v55  ;;  %v5872_v4 = vpop.permute.xlu1 %5871 }
 0xadf   : > { %v7125_v39 = vpop.f32.mrf.mxu0 }
 0xae1   : > { %v7126_v10 = vpop.f32.mrf.mxu0 }
 0xae2   : > { %v10829_v23 = vadd.f32 %v7126_v10, %v7125_v39 }
 0xae3   : > { %v7128_v21 = vpop.f32.mrf.mxu0 }
 0xae5   : > { %v7129_v8 = vpop.f32.mrf.mxu0 }
 0xae6   : > { %v10831_v61 = vadd.f32 %v7129_v8, %v7128_v21  ;;  %v5867_v8 = vpop.permute.xlu0 %5866 }
 0xae7   : > { %v7131_v45 = vpop.f32.mrf.mxu0 }
 0xae9   : > { %v7132_v24 = vpop.f32.mrf.mxu0 }
 0xaea   : > { %v10833_v60 = vadd.f32 %v7132_v24, %v7131_v45 }
 0xaeb   : > { %v7134_v13 = vpop.f32.mrf.mxu0 }
 0xaed   : > { %v7135_v41 = vpop.f32.mrf.mxu0 }
 0xaee   : > { %v7136_v29 = vadd.f32 %v7135_v41, %v7134_v13  ;;  %v11306_v13 = vld [vmem:[#allocation37_spill] sm:$0xff] }
 0xaef   : > { %v7137_v27 = vpop.f32.mrf.mxu0 }
 0xaf1   : > { %v7138_v18 = vpop.f32.mrf.mxu0 }
 0xaf2   : > { %v7139_v44 = vadd.f32 %v7138_v18, %v7137_v27  ;;  %v11307_v27 = vld [vmem:[#allocation36_spill] sm:$0xff] }
 0xaf3   : > { %v7140_v53 = vpop.f32.mrf.mxu0 }
 0xaf5   : > { %v7141_v11 = vpop.f32.mrf.mxu0 }
 0xaf6   : > { %v7142_v16 = vadd.f32 %v7141_v11, %v7140_v53  ;;  %v11308_v11 = vld [vmem:[#allocation38_spill] sm:$0xff] }
 0xaf7   : > { %v7143_v17 = vpop.f32.mrf.mxu0 }
 0xaf9   : > { %v7144_v58 = vpop.f32.mrf.mxu0 }
 0xafa   : > { %v7145_v51 = vadd.f32 %v7144_v58, %v7143_v17  ;;  %v11309_v58 = vld [vmem:[#allocation39_spill] sm:$0xff] }
 0xafb   : > { %v7146_v3 = vpop.f32.mrf.mxu0 }
 0xafd   : > { %v7147_v49 = vpop.f32.mrf.mxu0 }
 0xafe   : > { %v7148_v20 = vadd.f32 %v7147_v49, %v7146_v3 }
 0xaff   : > { %v5709_v52 = vpop.f32.mrf.mxu0 }
 0xb00   : > { %v10835_v9 = vadd.f32 %v7106_v30, %v5709_v52 }
 0xb01   : > { %v7889_v25 = vpop.f32.mrf.mxu0 }
 0xb03   : > { %v5714_v50 = vpop.f32.mrf.mxu0 }
 0xb04   : > { %v10837_v33 = vadd.f32 %v7109_v28, %v5714_v50  ;;  %v5862_v50 = vpop.permute.xlu1 %5861 }
 0xb05   : > { %v7892_v56 = vpop.f32.mrf.mxu0 }
 0xb07   : > { %v5719_v22 = vpop.f32.mrf.mxu0 }
 0xb08   : > { %v10839_v43 = vadd.f32 %v7112_v48, %v5719_v22 }
 0xb09   : > { %v7895_v36 = vpop.f32.mrf.mxu0 }
 0xb0b   : > { %v5724_v62 = vpop.f32.mrf.mxu0 }
 0xb0c   : > { %v10841_v37 = vadd.f32 %v7115_v47, %v5724_v62  ;;  %v11311_v62 = vld [vmem:[#allocation67_spill] sm:$0xff] }
 0xb0d   : > { %v7898_v63 = vpop.f32.mrf.mxu0 }
 0xb0f   : > { %v10843_v12 = vpop.f32.mrf.mxu0 }
 0xb11   : > { %v7901_v35 = vpop.f32.mrf.mxu0 }
 0xb13   : > { %v5734_v26 = vpop.f32.mrf.mxu0 }
 0xb15   : > { %v7904_v1 = vpop.f32.mrf.mxu0 }
 0xb17   : > { %v5739_v54 = vpop.f32.mrf.mxu0 }
 0xb18   : > { %v5740_v1 = vadd.f32 %v10827_v46, %v5739_v54 }
 0xb19   : > { %v7907_v5 = vpop.f32.mrf.mxu0 }
 0xb1a   : > { %v11312_v5 = vld [vmem:[#allocation66_spill] sm:$0xff] }
 0xb1b   : > { %v5744_v40 = vpop.f32.mrf.mxu0 }
 0xb1d   : > { %v7910_v14 = vpop.f32.mrf.mxu0 }
 0xb1f   : > { %v5749_v42 = vpop.f32.mrf.mxu0 }
 0xb20   : > { %v5750_v56 = vadd.f32 %v10831_v61, %v5749_v42  ;;  %v5735_v42 = vadd.f32 %v10821_v19, %v5734_v26  ;;  %v11316_v19 = vld [vmem:[#allocation42_spill] sm:$0xff] }
 0xb21   : > { %v7913_v38 = vpop.f32.mrf.mxu0 }
 0xb22   : > { %v5791_v14 = vadd.f32 %v5750_v56, %v11312_v5 }
 0xb23   : > { %v5754_v30 = vpop.f32.mrf.mxu0 }
 0xb24   : > { %v5755_v17 = vadd.f32 %v10833_v60, %v5754_v30  ;;  %v5852_v60 = vpop.permute.xlu1 %5851  ;;  %v11313_v30 = vld [vmem:[#allocation69_spill] sm:$0xff] }
 0xb25   : > { %v7916_v31 = vpop.f32.mrf.mxu0 }
 0xb26   : > { %v5792_v63 = vadd.f32 %v5755_v17, %v11311_v62 }
 0xb27   : > { %v5759_v59 = vpop.f32.mrf.mxu0 }
 0xb28   : > { %v5760_v53 = vadd.f32 %v7136_v29, %v5759_v59  ;;  %v5745_v29 = vadd.f32 %v10829_v23, %v5744_v40  ;;  %v5898_v23 = vadd.f32 %v5862_v50, %v5792_v63  ;;  %v5730_v40 = vadd.f32 %v10819_v32, %v10843_v12  ;;  %v11314_v59 = vld [vmem:[#allocation41_spill] sm:$0xff]  ;;  %v5842_v54 = vpop.permute.xlu1 %5841 }
 0xb29   : > { %v7919_v28 = vpop.f32.mrf.mxu0 }
 0xb2a   : > { %v5790_v31 = vadd.f32 %v5745_v29, %v11313_v30  ;;  %v5789_v28 = vadd.f32 %v5740_v1, %v11314_v59  ;;  %v5787_v26 = vadd.f32 %v5730_v40, %v11316_v19 }
 0xb2b   : > { %v5764_v7 = vpop.f32.mrf.mxu0 }
 0xb2c   : > { %v5765_v24 = vadd.f32 %v7139_v44, %v5764_v7  ;;  %v11310_v44 = vld [vmem:[#allocation40_spill] sm:$0xff]  ;;  %v11315_v7 = vld [vmem:[#allocation71_spill] sm:$0xff] }
 0xb2d   : > { %v7922_v48 = vpop.f32.mrf.mxu0  ;;  %v5793_v22 = vadd.f32 %v5760_v53, %v11310_v44 }
 0xb2e   : > { %v5794_v3 = vadd.f32 %v5765_v24, %v11309_v58  ;;  %v5896_v48 = vadd.f32 %v5852_v60, %v5790_v31 }
 0xb2f   : > { %v5769_v0 = vpop.f32.mrf.mxu0  ;;  %v5899_v38 = vadd.f32 %v5867_v8, %v5793_v22 }
 0xb30   : > { %v5770_v10 = vadd.f32 %v7142_v16, %v5769_v0  ;;  %v5857_v16 = vpop.permute.xlu0 %5856  ;;  %v5900_v35 = vadd.f32 %v5872_v4, %v5794_v3 }
 0xb31   : > { %v7925_v47 = vpop.f32.mrf.mxu0  ;;  %v5897_v46 = vadd.f32 %v5857_v16, %v5791_v14 }
 0xb32   : > { %v5795_v52 = vadd.f32 %v5770_v10, %v11308_v11  ;;  %v11317_v47 = vld [vmem:[#allocation73_spill] sm:$0xff]  ;;  %v11320_v10 = vld [vmem:[#allocation44_spill] sm:$0xff] }
 0xb33   : > { %v5774_v2 = vpop.f32.mrf.mxu0  ;;  %v5786_v32 = vadd.f32 %v10841_v37, %v11317_v47  ;;  %v5783_v37 = vadd.f32 %v10835_v9, %v11320_v10 }
 0xb34   : > { %v5775_v55 = vadd.f32 %v7145_v51, %v5774_v2  ;;  %v5901_v36 = vadd.f32 %v5877_v34, %v5795_v52  ;;  %v5847_v61 = vpop.permute.xlu0 %5846  ;;  %v5832_v34 = vpop.permute.xlu1 %5831  ;;  %v11318_v2 = vld [vmem:[#allocation43_spill] sm:$0xff] }
 0xb35   : > { %v7928_v6 = vpop.f32.mrf.mxu0  ;;  %v5785_v51 = vadd.f32 %v10839_v43, %v11318_v2 }
 0xb36   : > { %v5796_v41 = vadd.f32 %v5775_v55, %v11306_v13  ;;  %v11319_v55 = vld [vmem:[#allocation74_spill] sm:$0xff] }
 0xb37   : > { %v5779_v39 = vpop.f32.mrf.mxu0  ;;  %v5784_v4 = vadd.f32 %v10837_v33, %v11319_v55  ;;  %v5905_v33 = vld [vmem:[%s10904_s11 + $0x8] sm:$0x3] }
 0xb38   : > { %v5780_v21 = vadd.f32 %v7148_v20, %v5779_v39  ;;  %v5902_v49 = vadd.f32 %v5882_v15, %v5796_v41  ;;  %v5837_v0 = vpop.permute.xlu0 %5836  ;;  %v5895_v15 = vadd.f32 %v5847_v61, %v5789_v28  ;;  %v5892_v39 = vadd.f32 %v5832_v34, %v5786_v32  ;;  %v5822_v8 = vpop.permute.xlu1 %5821 }
 0xb39   : > { %v7931_v45 = vpop.f32.mrf.mxu0  ;;  %v5893_v6 = vadd.f32 %v5837_v0, %v5787_v26  ;;  %v5890_v43 = vadd.f32 %v5822_v8, %v5784_v4 }
 0xb3a   : > { %v5797_v18 = vadd.f32 %v5780_v21, %v11307_v27 }
 0xb3c   : > { %v5903_v25 = vadd.f32 %v5887_v57, %v5797_v18  ;;  %v5788_v57 = vadd.f32 %v5735_v42, %v11315_v7  ;;  %v5827_v20 = vpop.permute.xlu0 %5826  ;;  %v5911_v27 = vpop.permute.xlu1 %5910 }
 0xb3d   : > { %v5891_v21 = vadd.f32 %v5827_v20, %v5785_v51 }
 0xb3e   : > { %7932 = vmatprep.subr.mxu1 %v5903_v25  ;;  %v5894_v12 = vadd.f32 %v5842_v54, %v5788_v57 }
 0xb3f   : > { %7933 = vmatpush3.msra.mxu1 %v5903_v25 }
 0xb40   : > { %7934 = vmatprep.subr.mxu1 %v5902_v49  ;;  %v5817_v45 = vpop.permute.xlu0 %5816 }
 0xb41   : > { %7935 = vmatpush3.msra.mxu1 %v5902_v49  ;;  %v5889_v24 = vadd.f32 %v5817_v45, %v5783_v37 }
 0xb42   : > { %7936 = vmatprep.subr.mxu1 %v5901_v36 }
 0xb43   : > { %7937 = vmatpush3.msra.mxu1 %v5901_v36 }
 0xb44   : > { %7938 = vmatprep.subr.mxu1 %v5900_v35  ;;  %v5916_v9 = vpop.permute.xlu0 %5915 }
 0xb45   : > { %7939 = vmatpush3.msra.mxu1 %v5900_v35 }
 0xb46   : > { %7940 = vmatprep.subr.mxu1 %v5899_v38 }
 0xb47   : > { %7941 = vmatpush3.msra.mxu1 %v5899_v38 }
 0xb48   : > { %7942 = vmatprep.subr.mxu1 %v5898_v23 }
 0xb49   : > { %7943 = vmatpush3.msra.mxu1 %v5898_v23 }
 0xb4a   : > { %7944 = vmatprep.subr.mxu1 %v5897_v46 }
 0xb4b   : > { %7945 = vmatpush3.msra.mxu1 %v5897_v46 }
 0xb4c   : > { %7946 = vmatprep.subr.mxu1 %v5896_v48 }
 0xb4d   : > { %7947 = vmatpush3.msra.mxu1 %v5896_v48 }
 0xb4e   : > { %7948 = vmatprep.subr.mxu1 %v5895_v15 }
 0xb4f   : > { %7949 = vmatpush3.msra.mxu1 %v5895_v15 }
 0xb50   : > { %7950 = vmatprep.subr.mxu1 %v5894_v12 }
 0xb51   : > { %7951 = vmatpush3.msra.mxu1 %v5894_v12 }
 0xb52   : > { %7952 = vmatprep.subr.mxu1 %v5893_v6 }
 0xb53   : > { %7953 = vmatpush3.msra.mxu1 %v5893_v6 }
 0xb54   : > { %7954 = vmatprep.subr.mxu1 %v5892_v39 }
 0xb55   : > { %7955 = vmatpush3.msra.mxu1 %v5892_v39 }
 0xb56   : > { %7956 = vmatprep.subr.mxu1 %v5891_v21 }
 0xb57   : > { %7957 = vmatpush3.msra.mxu1 %v5891_v21 }
 0xb58   : > { %7958 = vmatprep.subr.mxu1 %v5890_v43 }
 0xb59   : > { %7959 = vmatpush3.msra.mxu1 %v5890_v43 }
 0xb5a   : > { %7960 = vmatprep.subr.mxu1 %v5889_v24 }
 0xb5b   : > { %7961 = vmatpush3.msra.mxu1 %v5889_v24 }
 0xb5c   : > { %7963 = vmatmul.mubr.msk.f32.vlgmr.msra.gmra.mxu1 %vm748_vm1, %v5905_v33 }
 0xc1c   : > { %v7964_v13 = vpop.f32.mrf.mxu1 }
 0xc1d   : > { %v5996_v41 = vadd.f32 %v7964_v13, %v5916_v9  ;;  %6007 = sbr.rel (!%p8444_p5) target bundleno = 3114 (0xc2a), region = 142 }
 0xc1e   : > { %v5990_v18 = vpop.f32.mrf.mxu1 }
 0xc1f   : > { %6000 = vst [vmem:[%s627_s14 + $0x8] sm:$0x3] %v5996_v41  ;;  %v5991_v53 = vadd.f32 %v5990_v18, %v5911_v27 }
 0xc21   : > { %5999 = vst [vmem:[%s627_s14] sm:$0xff] %v5991_v53 }
 0xc26   : > { %v6042_v52 = vld [vmem:[%s627_s14 + $0x8] sm:$0xff] }
 0xc27   : > { %6043 = vst [vmem:[%s6009_s27 + $0x10] sm:$0xff] %v6042_v52 }
 0xc28   : > { %v6040_v11 = vld [vmem:[%s627_s14] sm:$0xff] }
 0xc29   : > { %6041 = vst [vmem:[%s6009_s27] sm:$0xff] %v6040_v11 }
 0xc2a PF: > { %s11323_s27 = sld [smem:[#allocation19_spill]]  ;;  %s11325_s25 = smov %s8319_s26 }
 0xc2b   : > { %s11324_s22 = sld [smem:[#allocation20_spill]] }
 0xc30   : > { %p24_p2 = scmp.ge.s32.totalorder %s11323_s27, 4  }
 0xc31   : > { %s11326_s26 = smov %s11324_s22 }
 0xc32   :  { %26 = sbr.rel (!%p24_p2) target bundleno = 8 (0x8), region = 220 }
 0xc37   :  { %6059 = vsyncpa [#allocation4], 1 }
 0xc38   :  { %6061 = vsyncpa [#allocation4 + $0x1], 1 }
 0xc39   :  { %6062 = vsyncpa [#allocation6], 1 }
 0xc3a   :  { %6063 = vsyncpa [#allocation9], 1 }
 0xc3b   :  { %6064 = vsyncpa [#allocation12], 1 }

</bundles_post_ra>
